<compile_context>
chip_gen: v5e
topology: v5e:2x2
jax: 0.10.0
libtpu: 0.0.40
codegen_flags: <defaults>
</compile_context>

<pallas_src>
import functools
import math

import jax
import jax.numpy as jnp
from jax.experimental import pallas as pl
from jax.experimental.pallas import tpu as pltpu

NUM_LAYERS = 2          # transformer_layers
NEG_FILL = -1e9         # matches masked_fill(..., -1000000000.0)
LN_EPS = 1e-5           # PyTorch LayerNorm default


def _layer_norm(x, g, b):
    mu = jnp.mean(x, axis=-1, keepdims=True)
    xc = x - mu
    var = jnp.mean(xc * xc, axis=-1, keepdims=True)
    return xc * jax.lax.rsqrt(var + LN_EPS) * g + b


def transformer_kernel(x_ref, mask_ref,
                       wqkv_ref, bqkv_ref, wo_ref, w1_ref, b1_ref, w2_ref,
                       lnb_ref, wout_ref, bout_ref,
                       out_ref, *, K, num_layers):
    x3 = x_ref[...]                      # (Bt, L, D)  f32: concat(seq_emb, tgt_emb)
    pad = mask_ref[...]                  # (Bt, 1, L)  f32: 1.0 = key padding

    Bt, L, D = x3.shape
    scale = 1.0 / math.sqrt(D)           # nhead = 1 -> head_dim = D

    # additive key-padding bias; broadcast over the query axis happens in vregs
    key_bias = pad * NEG_FILL            # (Bt, 1, L)

    # flatten batch*seq so projections / FFN use a tall MXU M dimension
    x2 = x3.reshape(Bt * L, D)

    # TODO(synk): at real sizes convert this static layer loop into an
    # "arbitrary" grid axis so only one layer's weights are live at a time.
    for l in range(num_layers):
        lnb = lnb_ref[l]                 # (6, D): [bo, b2, g1, be1, g2, be2]
        wqkv_l = wqkv_ref[l]             # (3, D, D) bf16
        bqkv_l = bqkv_ref[l]             # (3, 1, D) f32

        # --- Q/K/V projections: three lane-aligned D-wide matmuls (bf16 MXU,
        #     f32 accumulation); avoids unaligned lane slices of a fused 3D out.
        xb = x2.astype(jnp.bfloat16)
        q = (jnp.dot(xb, wqkv_l[0], preferred_element_type=jnp.float32)
             + bqkv_l[0]).reshape(Bt, L, D)
        k = (jnp.dot(xb, wqkv_l[1], preferred_element_type=jnp.float32)
             + bqkv_l[1]).reshape(Bt, L, D)
        v = (jnp.dot(xb, wqkv_l[2], preferred_element_type=jnp.float32)
             + bqkv_l[2]).reshape(Bt, L, D)

        # --- single-head attention with key-padding mask (softmax in f32) ---
        scores = jnp.einsum('bqd,bkd->bqk',
                            q.astype(jnp.bfloat16), k.astype(jnp.bfloat16),
                            preferred_element_type=jnp.float32) * scale + key_bias
        scores = scores - jnp.max(scores, axis=-1, keepdims=True)
        p = jnp.exp(scores)
        attn = p * pl.reciprocal(jnp.sum(p, axis=-1, keepdims=True), approx=True)
        ctx = jnp.einsum('bqk,bkd->bqd',
                         attn.astype(jnp.bfloat16), v.astype(jnp.bfloat16),
                         preferred_element_type=jnp.float32).reshape(Bt * L, D)
        sa = jnp.dot(ctx.astype(jnp.bfloat16), wo_ref[l],
                     preferred_element_type=jnp.float32) + lnb[0:1]

        # post-LN residual 1 (f32)
        x2 = _layer_norm(x2 + sa, lnb[2:3], lnb[3:4])

        # --- feed forward (ReLU), bf16 MXU inputs / f32 accumulation ---
        h = jnp.maximum(
            jnp.dot(x2.astype(jnp.bfloat16), w1_ref[l],
                    preferred_element_type=jnp.float32) + b1_ref[l],
            0.0)
        ff = jnp.dot(h.astype(jnp.bfloat16), w2_ref[l],
                     preferred_element_type=jnp.float32) + lnb[1:2]

        # post-LN residual 2 (f32)
        x2 = _layer_norm(x2 + ff, lnb[4:5], lnb[5:6])
        # TODO(synk): dropout (p=0.2) omitted — eval/inference semantics (identity).

    y = x2.reshape(Bt, L, D)
    pad_col = pad.reshape(Bt, L, 1)      # (Bt,1,L) -> (Bt,L,1): same element order

    # masked_fill(pad, 0.0)
    y_zero = y * (1.0 - pad_col)

    # last first_k_cols rows, flattened per batch element
    lastk = y_zero[:, L - K:, :].reshape(Bt, 1, K * D)

    # masked_fill(pad, -1e9) -> max over seq -> out_linear
    y_neg = jnp.where(pad_col > 0.0, NEG_FILL, y_zero)
    pooled = jnp.max(y_neg, axis=1)                                  # (Bt, D)
    out = jnp.dot(pooled.astype(jnp.bfloat16), wout_ref[...],
                  preferred_element_type=jnp.float32) + bout_ref[...]
    out = out.reshape(Bt, 1, D)

    # single fused lane-dense output slab: [lastk | pooled_out | zero padding]
    out_pad = out_ref.shape[2]
    tail = out_pad - K * D - D
    pieces = [lastk, out]
    if tail > 0:
        pieces.append(jnp.zeros((Bt, 1, tail), jnp.float32))
    out_ref[...] = jnp.concatenate(pieces, axis=-1)


def init_params(key, d_model, d_ff, num_layers):
    def nrm(k, shape, scale=0.05, dtype=jnp.float32):
        return (scale * jax.random.normal(k, shape, jnp.float32)).astype(dtype)

    ks = jax.random.split(key, 10)
    # MXU weight matrices stored in bf16 (halves DMA bytes / VMEM);
    # biases and LayerNorm params stay f32 (added to f32 accumulators).
    wqkv = nrm(ks[0], (num_layers, 3, d_model, d_model), dtype=jnp.bfloat16)
    bqkv = nrm(ks[1], (num_layers, 3, 1, d_model))
    wo = nrm(ks[2], (num_layers, d_model, d_model), dtype=jnp.bfloat16)
    w1 = nrm(ks[3], (num_layers, d_model, d_ff), dtype=jnp.bfloat16)
    b1 = nrm(ks[4], (num_layers, 1, d_ff))
    w2 = nrm(ks[5], (num_layers, d_ff, d_model), dtype=jnp.bfloat16)
    bo = nrm(ks[6], (num_layers, 1, d_model))
    b2 = nrm(ks[7], (num_layers, 1, d_model))
    g1 = jnp.ones((num_layers, 1, d_model), jnp.float32)
    be1 = jnp.zeros((num_layers, 1, d_model), jnp.float32)
    g2 = jnp.ones((num_layers, 1, d_model), jnp.float32)
    be2 = jnp.zeros((num_layers, 1, d_model), jnp.float32)
    # packed LN / bias slab: rows = [bo, b2, gamma1, beta1, gamma2, beta2]
    lnb = jnp.concatenate([bo, b2, g1, be1, g2, be2], axis=1)     # (NL, 6, D)
    wout = nrm(ks[8], (d_model, d_model), dtype=jnp.bfloat16)
    bout = nrm(ks[9], (1, d_model))
    return dict(wqkv=wqkv, bqkv=bqkv, wo=wo, w1=w1, b1=b1, w2=w2,
                lnb=lnb, wout=wout, bout=bout)


def transformer_forward(target_emb, sequence_emb, mask, params, first_k_cols,
                        block_b=None):
    B, L, Ds = sequence_emb.shape
    Dt = target_emb.shape[-1]
    D = Ds + Dt
    F = params["w1"].shape[-1]
    K = min(first_k_cols, L)
    OUT_W = K * D + D
    OUT_PAD = ((OUT_W + 127) // 128) * 128

    # concat [sequence_emb, target_emb broadcast over seq] on feature axis
    concat = jnp.concatenate(
        [sequence_emb,
         jnp.broadcast_to(target_emb[:, None, :], (B, L, Dt))],
        axis=-1).astype(jnp.float32)

    # adjust_mask: if a row is fully masked, un-mask its last position
    mask_b = mask.astype(bool)
    fully = jnp.all(mask_b, axis=-1)                       # (B,)
    is_last = jnp.arange(L) == (L - 1)
    mask_adj = jnp.where(fully[:, None] & is_last[None, :], False, mask_b)
    pad = mask_adj.astype(jnp.float32)[:, None, :]         # (B, 1, L)  1.0 = padded

    # --- batch tiling -------------------------------------------------------
    # Target M = Bt*L ~ 256 flattened rows per step (MXU occupancy, step
    # overhead amortization) but keep >= 2 grid steps when B > 1 so the
    # "parallel" axis can be sharded across v7x's 2 TensorCores.
    if block_b is None:
        block_b = max(1, -(-256 // L))                     # ceil(256 / L)
    Bt = max(1, min(block_b, B))
    while Bt > 1 and -(-B // Bt) < 2:
        Bt = max(1, Bt // 2)
    Bp = -(-B // Bt) * Bt
    if Bp != B:
        pb = Bp - B
        concat = jnp.pad(concat, ((0, pb), (0, 0), (0, 0)))
        pad = jnp.pad(pad, ((0, pb), (0, 0), (0, 0)))

    weight_order = ["wqkv", "bqkv", "wo", "w1", "b1", "w2", "lnb", "wout", "bout"]
    weights = [params[n] for n in weight_order]

    # --- cost estimate (lets XLA schedule the wrapper ops around the kernel) -
    M = Bp * L
    flops = 0
    flops += NUM_LAYERS * (3 * 2 * M * D * D)          # q/k/v projections
    flops += NUM_LAYERS * (2 * 2 * Bp * L * L * D)     # scores + context
    flops += NUM_LAYERS * (2 * M * D * D)              # attn out projection
    flops += NUM_LAYERS * (2 * M * D * F + 2 * M * F * D)  # FFN
    flops += 2 * Bp * D * D                            # out_linear
    transcendentals = NUM_LAYERS * Bp * L * (L + 4)    # exp / recip / rsqrt
    bytes_accessed = (concat.size * 4 + pad.size * 4
                      + sum(int(w.nbytes) for w in weights)
                      + Bp * OUT_PAD * 4)
    cost = pl.CostEstimate(flops=int(flops),
                           transcendentals=int(transcendentals),
                           bytes_accessed=int(bytes_accessed))

    kernel_fn = functools.partial(transformer_kernel, K=K, num_layers=NUM_LAYERS)

    def batch_spec(tail_shape):
        nd = len(tail_shape)
        return pl.BlockSpec((Bt,) + tail_shape,
                            lambda b, _nd=nd: (b,) + (0,) * _nd)

    def build(single_buffer_weights):
        def weight_spec(shape):
            nd = len(shape)
            idx = lambda b, _nd=nd: (0,) * _nd
            if single_buffer_weights:
                # constant index_map -> no re-fetch; one buffer is enough.
                return pl.BlockSpec(shape, idx, pipeline_mode=pl.Buffered(1))
            return pl.BlockSpec(shape, idx)

        in_specs = ([batch_spec((L, D)),       # x
                     batch_spec((1, L))]       # key-padding mask
                    + [weight_spec(w.shape) for w in weights])
        out_specs = batch_spec((1, OUT_PAD))   # fused lane-dense output slab

        return pl.pallas_call(
            kernel_fn,
            out_shape=jax.ShapeDtypeStruct((Bp, 1, OUT_PAD), jnp.float32),
            grid=(Bp // Bt,),
            in_specs=in_specs,
            out_specs=out_specs,
            compiler_params=pltpu.CompilerParams(
                dimension_semantics=("parallel",),
                vmem_limit_bytes=32 * 1024 * 1024),
            cost_estimate=cost,
        )

    try:
        slab = build(True)(concat, pad, *weights)
    except Exception:
        # Fallback for runtimes that reject single-buffered weight blocks.
        slab = build(False)(concat, pad, *weights)

    # output_concat = [flatten(last K positions), pooled out_linear]
    return slab[:B, 0, :OUT_W]


if __name__ == "__main__":
    B, L, Ds, Dt = 2, 8, 16, 16
    D = Ds + Dt                 # transformer_in_dim = 32
    F = 64                      # dim_feedforward (small)
    K = 4                       # first_k_cols (small, <= L); K*D = 128 lanes

    key = jax.random.PRNGKey(0)
    k1, k2 = jax.random.split(key)
    target_emb = jax.random.normal(k1, (B, Dt), jnp.float32)
    sequence_emb = jax.random.normal(k2, (B, L, Ds), jnp.float32)

    # mask: 1 = padded position.  Row 0: last 3 positions padded.
    # Row 1: fully padded (exercises adjust_mask).
    mask = jnp.zeros((B, L), jnp.int32)
    mask = mask.at[0, 5:].set(1)
    mask = mask.at[1, :].set(1)

    params = init_params(jax.random.PRNGKey(42), D, F, NUM_LAYERS)

    out = transformer_forward(target_emb, sequence_emb, mask, params, K)
    out = jax.block_until_ready(out)
    assert out.shape == (B, K * D + D), out.shape
    assert bool(jnp.all(jnp.isfinite(out)))
    print("KERNEL_OK")
</pallas_src>

<mosaic_0001>
module attributes {stable_mosaic.version = 11 : i64} {
  func.func @transformer_kernel(%arg0: i32, %arg1: memref<1x8x32xf32, #tpu.memory_space<vmem>>, %arg2: memref<1x1x8xf32, #tpu.memory_space<vmem>>, %arg3: memref<2x3x32x32xbf16, #tpu.memory_space<vmem>>, %arg4: memref<2x3x1x32xf32, #tpu.memory_space<vmem>>, %arg5: memref<2x32x32xbf16, #tpu.memory_space<vmem>>, %arg6: memref<2x32x64xbf16, #tpu.memory_space<vmem>>, %arg7: memref<2x1x64xf32, #tpu.memory_space<vmem>>, %arg8: memref<2x64x32xbf16, #tpu.memory_space<vmem>>, %arg9: memref<2x6x32xf32, #tpu.memory_space<vmem>>, %arg10: memref<32x32xbf16, #tpu.memory_space<vmem>>, %arg11: memref<1x32xf32, #tpu.memory_space<vmem>>, %arg12: memref<1x1x256xf32, #tpu.memory_space<vmem>>) attributes {dimension_semantics = [#tpu.dimension_semantics<parallel>], iteration_bounds = array<i64: 2>, scalar_prefetch = 0 : i64, scratch_operands = 0 : i64, tpu.core_type = #tpu.core_type<tc>, window_params = [{transform_indices = @transform_0, window_bounds = array<i64: 1, 8, 32>}, {transform_indices = @transform_1, window_bounds = array<i64: 1, 1, 8>}, {pipeline_mode = #tpu.pipeline_mode<synchronous>, transform_indices = @transform_2, window_bounds = array<i64: 2, 3, 32, 32>}, {pipeline_mode = #tpu.pipeline_mode<synchronous>, transform_indices = @transform_3, window_bounds = array<i64: 2, 3, 1, 32>}, {pipeline_mode = #tpu.pipeline_mode<synchronous>, transform_indices = @transform_4, window_bounds = array<i64: 2, 32, 32>}, {pipeline_mode = #tpu.pipeline_mode<synchronous>, transform_indices = @transform_5, window_bounds = array<i64: 2, 32, 64>}, {pipeline_mode = #tpu.pipeline_mode<synchronous>, transform_indices = @transform_6, window_bounds = array<i64: 2, 1, 64>}, {pipeline_mode = #tpu.pipeline_mode<synchronous>, transform_indices = @transform_7, window_bounds = array<i64: 2, 64, 32>}, {pipeline_mode = #tpu.pipeline_mode<synchronous>, transform_indices = @transform_8, window_bounds = array<i64: 2, 6, 32>}, {pipeline_mode = #tpu.pipeline_mode<synchronous>, transform_indices = @transform_9, window_bounds = array<i64: 32, 32>}, {pipeline_mode = #tpu.pipeline_mode<synchronous>, transform_indices = @transform_10, window_bounds = array<i64: 1, 32>}, {transform_indices = @transform_11, window_bounds = array<i64: 1, 1, 256>}]} {
    %c0 = arith.constant 0 : index
    %c0_0 = arith.constant 0 : index
    %c0_1 = arith.constant 0 : index
    %0 = vector.load %arg1[%c0, %c0_0, %c0_1] : memref<1x8x32xf32, #tpu.memory_space<vmem>>, vector<1x8x32xf32>
    %c0_2 = arith.constant 0 : index
    %c0_3 = arith.constant 0 : index
    %c0_4 = arith.constant 0 : index
    %1 = vector.load %arg2[%c0_2, %c0_3, %c0_4] : memref<1x1x8xf32, #tpu.memory_space<vmem>>, vector<1x1x8xf32>
    %cst = arith.constant -1.000000e+09 : f32
    %2 = vector.broadcast %cst : f32 to vector<1x1x8xf32>
    %3 = arith.mulf %1, %2 : vector<1x1x8xf32>
    %4 = vector.shape_cast %0 : vector<1x8x32xf32> to vector<8x32xf32>
    %c0_5 = arith.constant 0 : index
    %c0_6 = arith.constant 0 : index
    %c0_7 = arith.constant 0 : index
    %5 = vector.load %arg9[%c0_5, %c0_6, %c0_7] : memref<2x6x32xf32, #tpu.memory_space<vmem>>, vector<1x6x32xf32>
    %6 = vector.shape_cast %5 : vector<1x6x32xf32> to vector<6x32xf32>
    %c0_8 = arith.constant 0 : index
    %c0_9 = arith.constant 0 : index
    %c0_10 = arith.constant 0 : index
    %c0_11 = arith.constant 0 : index
    %7 = vector.load %arg3[%c0_8, %c0_9, %c0_10, %c0_11] : memref<2x3x32x32xbf16, #tpu.memory_space<vmem>>, vector<1x3x32x32xbf16>
    %8 = vector.shape_cast %7 : vector<1x3x32x32xbf16> to vector<3x32x32xbf16>
    %c0_12 = arith.constant 0 : index
    %c0_13 = arith.constant 0 : index
    %c0_14 = arith.constant 0 : index
    %c0_15 = arith.constant 0 : index
    %9 = vector.load %arg4[%c0_12, %c0_13, %c0_14, %c0_15] : memref<2x3x1x32xf32, #tpu.memory_space<vmem>>, vector<1x3x1x32xf32>
    %10 = vector.shape_cast %9 : vector<1x3x1x32xf32> to vector<3x1x32xf32>
    %11 = arith.truncf %4 : vector<8x32xf32> to vector<8x32xbf16>
    %12 = vector.extract_strided_slice %8 {offsets = [0, 0, 0], sizes = [1, 32, 32], strides = [1, 1, 1]} : vector<3x32x32xbf16> to vector<1x32x32xbf16>
    %13 = vector.shape_cast %12 : vector<1x32x32xbf16> to vector<32x32xbf16>
    %cst_16 = arith.constant dense<0.000000e+00> : vector<8x32xf32>
    %14 = tpu.matmul %11, %13, %cst_16 {dimension_numbers = #tpu.dot_dimension_numbers<[1], [0], [0], [1], [0, 0, 1, 1], [], []>} : vector<8x32xbf16>, vector<32x32xbf16>, vector<8x32xf32> -> vector<8x32xf32>
    %15 = vector.extract_strided_slice %10 {offsets = [0, 0, 0], sizes = [1, 1, 32], strides = [1, 1, 1]} : vector<3x1x32xf32> to vector<1x1x32xf32>
    %16 = vector.shape_cast %15 : vector<1x1x32xf32> to vector<1x32xf32>
    %17 = vector.broadcast %16 : vector<1x32xf32> to vector<8x32xf32>
    %18 = arith.addf %14, %17 : vector<8x32xf32>
    %19 = vector.shape_cast %18 : vector<8x32xf32> to vector<1x8x32xf32>
    %20 = vector.extract_strided_slice %8 {offsets = [1, 0, 0], sizes = [1, 32, 32], strides = [1, 1, 1]} : vector<3x32x32xbf16> to vector<1x32x32xbf16>
    %21 = vector.shape_cast %20 : vector<1x32x32xbf16> to vector<32x32xbf16>
    %cst_17 = arith.constant dense<0.000000e+00> : vector<8x32xf32>
    %22 = tpu.matmul %11, %21, %cst_17 {dimension_numbers = #tpu.dot_dimension_numbers<[1], [0], [0], [1], [0, 0, 1, 1], [], []>} : vector<8x32xbf16>, vector<32x32xbf16>, vector<8x32xf32> -> vector<8x32xf32>
    %23 = vector.extract_strided_slice %10 {offsets = [1, 0, 0], sizes = [1, 1, 32], strides = [1, 1, 1]} : vector<3x1x32xf32> to vector<1x1x32xf32>
    %24 = vector.shape_cast %23 : vector<1x1x32xf32> to vector<1x32xf32>
    %25 = vector.broadcast %24 : vector<1x32xf32> to vector<8x32xf32>
    %26 = arith.addf %22, %25 : vector<8x32xf32>
    %27 = vector.shape_cast %26 : vector<8x32xf32> to vector<1x8x32xf32>
    %28 = vector.extract_strided_slice %8 {offsets = [2, 0, 0], sizes = [1, 32, 32], strides = [1, 1, 1]} : vector<3x32x32xbf16> to vector<1x32x32xbf16>
    %29 = vector.shape_cast %28 : vector<1x32x32xbf16> to vector<32x32xbf16>
    %cst_18 = arith.constant dense<0.000000e+00> : vector<8x32xf32>
    %30 = tpu.matmul %11, %29, %cst_18 {dimension_numbers = #tpu.dot_dimension_numbers<[1], [0], [0], [1], [0, 0, 1, 1], [], []>} : vector<8x32xbf16>, vector<32x32xbf16>, vector<8x32xf32> -> vector<8x32xf32>
    %31 = vector.extract_strided_slice %10 {offsets = [2, 0, 0], sizes = [1, 1, 32], strides = [1, 1, 1]} : vector<3x1x32xf32> to vector<1x1x32xf32>
    %32 = vector.shape_cast %31 : vector<1x1x32xf32> to vector<1x32xf32>
    %33 = vector.broadcast %32 : vector<1x32xf32> to vector<8x32xf32>
    %34 = arith.addf %30, %33 : vector<8x32xf32>
    %35 = vector.shape_cast %34 : vector<8x32xf32> to vector<1x8x32xf32>
    %36 = arith.truncf %19 : vector<1x8x32xf32> to vector<1x8x32xbf16>
    %37 = arith.truncf %27 : vector<1x8x32xf32> to vector<1x8x32xbf16>
    "tpu.trace_start"() <{level = 10 : i32, message = "bqd,bkd->bqk"}> : () -> ()
    %cst_19 = arith.constant dense<0.000000e+00> : vector<1x8x8xf32>
    %38 = tpu.matmul %36, %37, %cst_19 {dimension_numbers = #tpu.dot_dimension_numbers<[2], [2], [1], [1], [0, 0, 0, 1, 1, 1], [0], [0]>} : vector<1x8x32xbf16>, vector<1x8x32xbf16>, vector<1x8x8xf32> -> vector<1x8x8xf32>
    "tpu.trace_stop"() : () -> ()
    %cst_20 = arith.constant 0.176776692 : f32
    %39 = vector.broadcast %cst_20 : f32 to vector<1x8x8xf32>
    %40 = arith.mulf %38, %39 : vector<1x8x8xf32>
    %41 = vector.broadcast %3 : vector<1x1x8xf32> to vector<1x8x8xf32>
    %42 = arith.addf %40, %41 : vector<1x8x8xf32>
    %cst_21 = arith.constant dense<0xFF800000> : vector<1x8xf32>
    %43 = vector.multi_reduction <maximumf>, %42, %cst_21 [2] : vector<1x8x8xf32> to vector<1x8xf32>
    %44 = vector.shape_cast %43 : vector<1x8xf32> to vector<1x8x1xf32>
    %45 = vector.broadcast %44 : vector<1x8x1xf32> to vector<1x8x8xf32>
    %46 = arith.subf %42, %45 : vector<1x8x8xf32>
    %47 = math.exp %46 : vector<1x8x8xf32>
    %cst_22 = arith.constant dense<0.000000e+00> : vector<1x8xf32>
    %48 = vector.multi_reduction <add>, %47, %cst_22 [2] : vector<1x8x8xf32> to vector<1x8xf32>
    %49 = vector.shape_cast %48 : vector<1x8xf32> to vector<1x8x1xf32>
    %50 = tpu.reciprocal %49 {approx = true} : vector<1x8x1xf32> -> vector<1x8x1xf32>
    %51 = vector.broadcast %50 : vector<1x8x1xf32> to vector<1x8x8xf32>
    %52 = arith.mulf %47, %51 : vector<1x8x8xf32>
    %53 = arith.truncf %52 : vector<1x8x8xf32> to vector<1x8x8xbf16>
    %54 = arith.truncf %35 : vector<1x8x32xf32> to vector<1x8x32xbf16>
    "tpu.trace_start"() <{level = 10 : i32, message = "bqk,bkd->bqd"}> : () -> ()
    %cst_23 = arith.constant dense<0.000000e+00> : vector<1x8x32xf32>
    %55 = tpu.matmul %53, %54, %cst_23 {dimension_numbers = #tpu.dot_dimension_numbers<[2], [1], [1], [2], [0, 0, 0, 1, 1, 2], [0], [0]>} : vector<1x8x8xbf16>, vector<1x8x32xbf16>, vector<1x8x32xf32> -> vector<1x8x32xf32>
    "tpu.trace_stop"() : () -> ()
    %56 = vector.shape_cast %55 : vector<1x8x32xf32> to vector<8x32xf32>
    %57 = arith.truncf %56 : vector<8x32xf32> to vector<8x32xbf16>
    %c0_24 = arith.constant 0 : index
    %c0_25 = arith.constant 0 : index
    %c0_26 = arith.constant 0 : index
    %58 = vector.load %arg5[%c0_24, %c0_25, %c0_26] : memref<2x32x32xbf16, #tpu.memory_space<vmem>>, vector<1x32x32xbf16>
    %59 = vector.shape_cast %58 : vector<1x32x32xbf16> to vector<32x32xbf16>
    %cst_27 = arith.constant dense<0.000000e+00> : vector<8x32xf32>
    %60 = tpu.matmul %57, %59, %cst_27 {dimension_numbers = #tpu.dot_dimension_numbers<[1], [0], [0], [1], [0, 0, 1, 1], [], []>} : vector<8x32xbf16>, vector<32x32xbf16>, vector<8x32xf32> -> vector<8x32xf32>
    %61 = vector.extract_strided_slice %6 {offsets = [0, 0], sizes = [1, 32], strides = [1, 1]} : vector<6x32xf32> to vector<1x32xf32>
    %62 = vector.broadcast %61 : vector<1x32xf32> to vector<8x32xf32>
    %63 = arith.addf %60, %62 : vector<8x32xf32>
    %64 = arith.addf %4, %63 : vector<8x32xf32>
    %65 = vector.extract_strided_slice %6 {offsets = [2, 0], sizes = [1, 32], strides = [1, 1]} : vector<6x32xf32> to vector<1x32xf32>
    %66 = vector.extract_strided_slice %6 {offsets = [3, 0], sizes = [1, 32], strides = [1, 1]} : vector<6x32xf32> to vector<1x32xf32>
    %cst_28 = arith.constant dense<0.000000e+00> : vector<8xf32>
    %67 = vector.multi_reduction <add>, %64, %cst_28 [1] : vector<8x32xf32> to vector<8xf32>
    %68 = vector.shape_cast %67 : vector<8xf32> to vector<8x1xf32>
    %cst_29 = arith.constant 3.200000e+01 : f32
    %69 = vector.broadcast %cst_29 : f32 to vector<8x1xf32>
    %70 = arith.divf %68, %69 : vector<8x1xf32>
    %71 = vector.broadcast %70 : vector<8x1xf32> to vector<8x32xf32>
    %72 = arith.subf %64, %71 : vector<8x32xf32>
    %73 = arith.mulf %72, %72 : vector<8x32xf32>
    %cst_30 = arith.constant dense<0.000000e+00> : vector<8xf32>
    %74 = vector.multi_reduction <add>, %73, %cst_30 [1] : vector<8x32xf32> to vector<8xf32>
    %75 = vector.shape_cast %74 : vector<8xf32> to vector<8x1xf32>
    %cst_31 = arith.constant 3.200000e+01 : f32
    %76 = vector.broadcast %cst_31 : f32 to vector<8x1xf32>
    %77 = arith.divf %75, %76 : vector<8x1xf32>
    %cst_32 = arith.constant 9.99999974E-6 : f32
    %78 = vector.broadcast %cst_32 : f32 to vector<8x1xf32>
    %79 = arith.addf %77, %78 : vector<8x1xf32>
    %80 = math.rsqrt %79 : vector<8x1xf32>
    %81 = vector.broadcast %80 : vector<8x1xf32> to vector<8x32xf32>
    %82 = arith.mulf %72, %81 : vector<8x32xf32>
    %83 = vector.broadcast %65 : vector<1x32xf32> to vector<8x32xf32>
    %84 = arith.mulf %82, %83 : vector<8x32xf32>
    %85 = vector.broadcast %66 : vector<1x32xf32> to vector<8x32xf32>
    %86 = arith.addf %84, %85 : vector<8x32xf32>
    %87 = arith.truncf %86 : vector<8x32xf32> to vector<8x32xbf16>
    %c0_33 = arith.constant 0 : index
    %c0_34 = arith.constant 0 : index
    %c0_35 = arith.constant 0 : index
    %88 = vector.load %arg6[%c0_33, %c0_34, %c0_35] : memref<2x32x64xbf16, #tpu.memory_space<vmem>>, vector<1x32x64xbf16>
    %89 = vector.shape_cast %88 : vector<1x32x64xbf16> to vector<32x64xbf16>
    %cst_36 = arith.constant dense<0.000000e+00> : vector<8x64xf32>
    %90 = tpu.matmul %87, %89, %cst_36 {dimension_numbers = #tpu.dot_dimension_numbers<[1], [0], [0], [1], [0, 0, 1, 1], [], []>} : vector<8x32xbf16>, vector<32x64xbf16>, vector<8x64xf32> -> vector<8x64xf32>
    %c0_37 = arith.constant 0 : index
    %c0_38 = arith.constant 0 : index
    %c0_39 = arith.constant 0 : index
    %91 = vector.load %arg7[%c0_37, %c0_38, %c0_39] : memref<2x1x64xf32, #tpu.memory_space<vmem>>, vector<1x1x64xf32>
    %92 = vector.shape_cast %91 : vector<1x1x64xf32> to vector<1x64xf32>
    %93 = vector.broadcast %92 : vector<1x64xf32> to vector<8x64xf32>
    %94 = arith.addf %90, %93 : vector<8x64xf32>
    %cst_40 = arith.constant 0.000000e+00 : f32
    %95 = vector.broadcast %cst_40 : f32 to vector<8x64xf32>
    %96 = arith.maximumf %94, %95 : vector<8x64xf32>
    %97 = arith.truncf %96 : vector<8x64xf32> to vector<8x64xbf16>
    %c0_41 = arith.constant 0 : index
    %c0_42 = arith.constant 0 : index
    %c0_43 = arith.constant 0 : index
    %98 = vector.load %arg8[%c0_41, %c0_42, %c0_43] : memref<2x64x32xbf16, #tpu.memory_space<vmem>>, vector<1x64x32xbf16>
    %99 = vector.shape_cast %98 : vector<1x64x32xbf16> to vector<64x32xbf16>
    %cst_44 = arith.constant dense<0.000000e+00> : vector<8x32xf32>
    %100 = tpu.matmul %97, %99, %cst_44 {dimension_numbers = #tpu.dot_dimension_numbers<[1], [0], [0], [1], [0, 0, 1, 1], [], []>} : vector<8x64xbf16>, vector<64x32xbf16>, vector<8x32xf32> -> vector<8x32xf32>
    %101 = vector.extract_strided_slice %6 {offsets = [1, 0], sizes = [1, 32], strides = [1, 1]} : vector<6x32xf32> to vector<1x32xf32>
    %102 = vector.broadcast %101 : vector<1x32xf32> to vector<8x32xf32>
    %103 = arith.addf %100, %102 : vector<8x32xf32>
    %104 = arith.addf %86, %103 : vector<8x32xf32>
    %105 = vector.extract_strided_slice %6 {offsets = [4, 0], sizes = [1, 32], strides = [1, 1]} : vector<6x32xf32> to vector<1x32xf32>
    %106 = vector.extract_strided_slice %6 {offsets = [5, 0], sizes = [1, 32], strides = [1, 1]} : vector<6x32xf32> to vector<1x32xf32>
    %cst_45 = arith.constant dense<0.000000e+00> : vector<8xf32>
    %107 = vector.multi_reduction <add>, %104, %cst_45 [1] : vector<8x32xf32> to vector<8xf32>
    %108 = vector.shape_cast %107 : vector<8xf32> to vector<8x1xf32>
    %cst_46 = arith.constant 3.200000e+01 : f32
    %109 = vector.broadcast %cst_46 : f32 to vector<8x1xf32>
    %110 = arith.divf %108, %109 : vector<8x1xf32>
    %111 = vector.broadcast %110 : vector<8x1xf32> to vector<8x32xf32>
    %112 = arith.subf %104, %111 : vector<8x32xf32>
    %113 = arith.mulf %112, %112 : vector<8x32xf32>
    %cst_47 = arith.constant dense<0.000000e+00> : vector<8xf32>
    %114 = vector.multi_reduction <add>, %113, %cst_47 [1] : vector<8x32xf32> to vector<8xf32>
    %115 = vector.shape_cast %114 : vector<8xf32> to vector<8x1xf32>
    %cst_48 = arith.constant 3.200000e+01 : f32
    %116 = vector.broadcast %cst_48 : f32 to vector<8x1xf32>
    %117 = arith.divf %115, %116 : vector<8x1xf32>
    %cst_49 = arith.constant 9.99999974E-6 : f32
    %118 = vector.broadcast %cst_49 : f32 to vector<8x1xf32>
    %119 = arith.addf %117, %118 : vector<8x1xf32>
    %120 = math.rsqrt %119 : vector<8x1xf32>
    %121 = vector.broadcast %120 : vector<8x1xf32> to vector<8x32xf32>
    %122 = arith.mulf %112, %121 : vector<8x32xf32>
    %123 = vector.broadcast %105 : vector<1x32xf32> to vector<8x32xf32>
    %124 = arith.mulf %122, %123 : vector<8x32xf32>
    %125 = vector.broadcast %106 : vector<1x32xf32> to vector<8x32xf32>
    %126 = arith.addf %124, %125 : vector<8x32xf32>
    %c1 = arith.constant 1 : index
    %c0_50 = arith.constant 0 : index
    %c0_51 = arith.constant 0 : index
    %127 = vector.load %arg9[%c1, %c0_50, %c0_51] : memref<2x6x32xf32, #tpu.memory_space<vmem>>, vector<1x6x32xf32>
    %128 = vector.shape_cast %127 : vector<1x6x32xf32> to vector<6x32xf32>
    %c1_52 = arith.constant 1 : index
    %c0_53 = arith.constant 0 : index
    %c0_54 = arith.constant 0 : index
    %c0_55 = arith.constant 0 : index
    %129 = vector.load %arg3[%c1_52, %c0_53, %c0_54, %c0_55] : memref<2x3x32x32xbf16, #tpu.memory_space<vmem>>, vector<1x3x32x32xbf16>
    %130 = vector.shape_cast %129 : vector<1x3x32x32xbf16> to vector<3x32x32xbf16>
    %c1_56 = arith.constant 1 : index
    %c0_57 = arith.constant 0 : index
    %c0_58 = arith.constant 0 : index
    %c0_59 = arith.constant 0 : index
    %131 = vector.load %arg4[%c1_56, %c0_57, %c0_58, %c0_59] : memref<2x3x1x32xf32, #tpu.memory_space<vmem>>, vector<1x3x1x32xf32>
    %132 = vector.shape_cast %131 : vector<1x3x1x32xf32> to vector<3x1x32xf32>
    %133 = arith.truncf %126 : vector<8x32xf32> to vector<8x32xbf16>
    %134 = vector.extract_strided_slice %130 {offsets = [0, 0, 0], sizes = [1, 32, 32], strides = [1, 1, 1]} : vector<3x32x32xbf16> to vector<1x32x32xbf16>
    %135 = vector.shape_cast %134 : vector<1x32x32xbf16> to vector<32x32xbf16>
    %cst_60 = arith.constant dense<0.000000e+00> : vector<8x32xf32>
    %136 = tpu.matmul %133, %135, %cst_60 {dimension_numbers = #tpu.dot_dimension_numbers<[1], [0], [0], [1], [0, 0, 1, 1], [], []>} : vector<8x32xbf16>, vector<32x32xbf16>, vector<8x32xf32> -> vector<8x32xf32>
    %137 = vector.extract_strided_slice %132 {offsets = [0, 0, 0], sizes = [1, 1, 32], strides = [1, 1, 1]} : vector<3x1x32xf32> to vector<1x1x32xf32>
    %138 = vector.shape_cast %137 : vector<1x1x32xf32> to vector<1x32xf32>
    %139 = vector.broadcast %138 : vector<1x32xf32> to vector<8x32xf32>
    %140 = arith.addf %136, %139 : vector<8x32xf32>
    %141 = vector.shape_cast %140 : vector<8x32xf32> to vector<1x8x32xf32>
    %142 = vector.extract_strided_slice %130 {offsets = [1, 0, 0], sizes = [1, 32, 32], strides = [1, 1, 1]} : vector<3x32x32xbf16> to vector<1x32x32xbf16>
    %143 = vector.shape_cast %142 : vector<1x32x32xbf16> to vector<32x32xbf16>
    %cst_61 = arith.constant dense<0.000000e+00> : vector<8x32xf32>
    %144 = tpu.matmul %133, %143, %cst_61 {dimension_numbers = #tpu.dot_dimension_numbers<[1], [0], [0], [1], [0, 0, 1, 1], [], []>} : vector<8x32xbf16>, vector<32x32xbf16>, vector<8x32xf32> -> vector<8x32xf32>
    %145 = vector.extract_strided_slice %132 {offsets = [1, 0, 0], sizes = [1, 1, 32], strides = [1, 1, 1]} : vector<3x1x32xf32> to vector<1x1x32xf32>
    %146 = vector.shape_cast %145 : vector<1x1x32xf32> to vector<1x32xf32>
    %147 = vector.broadcast %146 : vector<1x32xf32> to vector<8x32xf32>
    %148 = arith.addf %144, %147 : vector<8x32xf32>
    %149 = vector.shape_cast %148 : vector<8x32xf32> to vector<1x8x32xf32>
    %150 = vector.extract_strided_slice %130 {offsets = [2, 0, 0], sizes = [1, 32, 32], strides = [1, 1, 1]} : vector<3x32x32xbf16> to vector<1x32x32xbf16>
    %151 = vector.shape_cast %150 : vector<1x32x32xbf16> to vector<32x32xbf16>
    %cst_62 = arith.constant dense<0.000000e+00> : vector<8x32xf32>
    %152 = tpu.matmul %133, %151, %cst_62 {dimension_numbers = #tpu.dot_dimension_numbers<[1], [0], [0], [1], [0, 0, 1, 1], [], []>} : vector<8x32xbf16>, vector<32x32xbf16>, vector<8x32xf32> -> vector<8x32xf32>
    %153 = vector.extract_strided_slice %132 {offsets = [2, 0, 0], sizes = [1, 1, 32], strides = [1, 1, 1]} : vector<3x1x32xf32> to vector<1x1x32xf32>
    %154 = vector.shape_cast %153 : vector<1x1x32xf32> to vector<1x32xf32>
    %155 = vector.broadcast %154 : vector<1x32xf32> to vector<8x32xf32>
    %156 = arith.addf %152, %155 : vector<8x32xf32>
    %157 = vector.shape_cast %156 : vector<8x32xf32> to vector<1x8x32xf32>
    %158 = arith.truncf %141 : vector<1x8x32xf32> to vector<1x8x32xbf16>
    %159 = arith.truncf %149 : vector<1x8x32xf32> to vector<1x8x32xbf16>
    "tpu.trace_start"() <{level = 10 : i32, message = "bqd,bkd->bqk"}> : () -> ()
    %cst_63 = arith.constant dense<0.000000e+00> : vector<1x8x8xf32>
    %160 = tpu.matmul %158, %159, %cst_63 {dimension_numbers = #tpu.dot_dimension_numbers<[2], [2], [1], [1], [0, 0, 0, 1, 1, 1], [0], [0]>} : vector<1x8x32xbf16>, vector<1x8x32xbf16>, vector<1x8x8xf32> -> vector<1x8x8xf32>
    "tpu.trace_stop"() : () -> ()
    %cst_64 = arith.constant 0.176776692 : f32
    %161 = vector.broadcast %cst_64 : f32 to vector<1x8x8xf32>
    %162 = arith.mulf %160, %161 : vector<1x8x8xf32>
    %163 = vector.broadcast %3 : vector<1x1x8xf32> to vector<1x8x8xf32>
    %164 = arith.addf %162, %163 : vector<1x8x8xf32>
    %cst_65 = arith.constant dense<0xFF800000> : vector<1x8xf32>
    %165 = vector.multi_reduction <maximumf>, %164, %cst_65 [2] : vector<1x8x8xf32> to vector<1x8xf32>
    %166 = vector.shape_cast %165 : vector<1x8xf32> to vector<1x8x1xf32>
    %167 = vector.broadcast %166 : vector<1x8x1xf32> to vector<1x8x8xf32>
    %168 = arith.subf %164, %167 : vector<1x8x8xf32>
    %169 = math.exp %168 : vector<1x8x8xf32>
    %cst_66 = arith.constant dense<0.000000e+00> : vector<1x8xf32>
    %170 = vector.multi_reduction <add>, %169, %cst_66 [2] : vector<1x8x8xf32> to vector<1x8xf32>
    %171 = vector.shape_cast %170 : vector<1x8xf32> to vector<1x8x1xf32>
    %172 = tpu.reciprocal %171 {approx = true} : vector<1x8x1xf32> -> vector<1x8x1xf32>
    %173 = vector.broadcast %172 : vector<1x8x1xf32> to vector<1x8x8xf32>
    %174 = arith.mulf %169, %173 : vector<1x8x8xf32>
    %175 = arith.truncf %174 : vector<1x8x8xf32> to vector<1x8x8xbf16>
    %176 = arith.truncf %157 : vector<1x8x32xf32> to vector<1x8x32xbf16>
    "tpu.trace_start"() <{level = 10 : i32, message = "bqk,bkd->bqd"}> : () -> ()
    %cst_67 = arith.constant dense<0.000000e+00> : vector<1x8x32xf32>
    %177 = tpu.matmul %175, %176, %cst_67 {dimension_numbers = #tpu.dot_dimension_numbers<[2], [1], [1], [2], [0, 0, 0, 1, 1, 2], [0], [0]>} : vector<1x8x8xbf16>, vector<1x8x32xbf16>, vector<1x8x32xf32> -> vector<1x8x32xf32>
    "tpu.trace_stop"() : () -> ()
    %178 = vector.shape_cast %177 : vector<1x8x32xf32> to vector<8x32xf32>
    %179 = arith.truncf %178 : vector<8x32xf32> to vector<8x32xbf16>
    %c1_68 = arith.constant 1 : index
    %c0_69 = arith.constant 0 : index
    %c0_70 = arith.constant 0 : index
    %180 = vector.load %arg5[%c1_68, %c0_69, %c0_70] : memref<2x32x32xbf16, #tpu.memory_space<vmem>>, vector<1x32x32xbf16>
    %181 = vector.shape_cast %180 : vector<1x32x32xbf16> to vector<32x32xbf16>
    %cst_71 = arith.constant dense<0.000000e+00> : vector<8x32xf32>
    %182 = tpu.matmul %179, %181, %cst_71 {dimension_numbers = #tpu.dot_dimension_numbers<[1], [0], [0], [1], [0, 0, 1, 1], [], []>} : vector<8x32xbf16>, vector<32x32xbf16>, vector<8x32xf32> -> vector<8x32xf32>
    %183 = vector.extract_strided_slice %128 {offsets = [0, 0], sizes = [1, 32], strides = [1, 1]} : vector<6x32xf32> to vector<1x32xf32>
    %184 = vector.broadcast %183 : vector<1x32xf32> to vector<8x32xf32>
    %185 = arith.addf %182, %184 : vector<8x32xf32>
    %186 = arith.addf %126, %185 : vector<8x32xf32>
    %187 = vector.extract_strided_slice %128 {offsets = [2, 0], sizes = [1, 32], strides = [1, 1]} : vector<6x32xf32> to vector<1x32xf32>
    %188 = vector.extract_strided_slice %128 {offsets = [3, 0], sizes = [1, 32], strides = [1, 1]} : vector<6x32xf32> to vector<1x32xf32>
    %cst_72 = arith.constant dense<0.000000e+00> : vector<8xf32>
    %189 = vector.multi_reduction <add>, %186, %cst_72 [1] : vector<8x32xf32> to vector<8xf32>
    %190 = vector.shape_cast %189 : vector<8xf32> to vector<8x1xf32>
    %cst_73 = arith.constant 3.200000e+01 : f32
    %191 = vector.broadcast %cst_73 : f32 to vector<8x1xf32>
    %192 = arith.divf %190, %191 : vector<8x1xf32>
    %193 = vector.broadcast %192 : vector<8x1xf32> to vector<8x32xf32>
    %194 = arith.subf %186, %193 : vector<8x32xf32>
    %195 = arith.mulf %194, %194 : vector<8x32xf32>
    %cst_74 = arith.constant dense<0.000000e+00> : vector<8xf32>
    %196 = vector.multi_reduction <add>, %195, %cst_74 [1] : vector<8x32xf32> to vector<8xf32>
    %197 = vector.shape_cast %196 : vector<8xf32> to vector<8x1xf32>
    %cst_75 = arith.constant 3.200000e+01 : f32
    %198 = vector.broadcast %cst_75 : f32 to vector<8x1xf32>
    %199 = arith.divf %197, %198 : vector<8x1xf32>
    %cst_76 = arith.constant 9.99999974E-6 : f32
    %200 = vector.broadcast %cst_76 : f32 to vector<8x1xf32>
    %201 = arith.addf %199, %200 : vector<8x1xf32>
    %202 = math.rsqrt %201 : vector<8x1xf32>
    %203 = vector.broadcast %202 : vector<8x1xf32> to vector<8x32xf32>
    %204 = arith.mulf %194, %203 : vector<8x32xf32>
    %205 = vector.broadcast %187 : vector<1x32xf32> to vector<8x32xf32>
    %206 = arith.mulf %204, %205 : vector<8x32xf32>
    %207 = vector.broadcast %188 : vector<1x32xf32> to vector<8x32xf32>
    %208 = arith.addf %206, %207 : vector<8x32xf32>
    %209 = arith.truncf %208 : vector<8x32xf32> to vector<8x32xbf16>
    %c1_77 = arith.constant 1 : index
    %c0_78 = arith.constant 0 : index
    %c0_79 = arith.constant 0 : index
    %210 = vector.load %arg6[%c1_77, %c0_78, %c0_79] : memref<2x32x64xbf16, #tpu.memory_space<vmem>>, vector<1x32x64xbf16>
    %211 = vector.shape_cast %210 : vector<1x32x64xbf16> to vector<32x64xbf16>
    %cst_80 = arith.constant dense<0.000000e+00> : vector<8x64xf32>
    %212 = tpu.matmul %209, %211, %cst_80 {dimension_numbers = #tpu.dot_dimension_numbers<[1], [0], [0], [1], [0, 0, 1, 1], [], []>} : vector<8x32xbf16>, vector<32x64xbf16>, vector<8x64xf32> -> vector<8x64xf32>
    %c1_81 = arith.constant 1 : index
    %c0_82 = arith.constant 0 : index
    %c0_83 = arith.constant 0 : index
    %213 = vector.load %arg7[%c1_81, %c0_82, %c0_83] : memref<2x1x64xf32, #tpu.memory_space<vmem>>, vector<1x1x64xf32>
    %214 = vector.shape_cast %213 : vector<1x1x64xf32> to vector<1x64xf32>
    %215 = vector.broadcast %214 : vector<1x64xf32> to vector<8x64xf32>
    %216 = arith.addf %212, %215 : vector<8x64xf32>
    %cst_84 = arith.constant 0.000000e+00 : f32
    %217 = vector.broadcast %cst_84 : f32 to vector<8x64xf32>
    %218 = arith.maximumf %216, %217 : vector<8x64xf32>
    %219 = arith.truncf %218 : vector<8x64xf32> to vector<8x64xbf16>
    %c1_85 = arith.constant 1 : index
    %c0_86 = arith.constant 0 : index
    %c0_87 = arith.constant 0 : index
    %220 = vector.load %arg8[%c1_85, %c0_86, %c0_87] : memref<2x64x32xbf16, #tpu.memory_space<vmem>>, vector<1x64x32xbf16>
    %221 = vector.shape_cast %220 : vector<1x64x32xbf16> to vector<64x32xbf16>
    %cst_88 = arith.constant dense<0.000000e+00> : vector<8x32xf32>
    %222 = tpu.matmul %219, %221, %cst_88 {dimension_numbers = #tpu.dot_dimension_numbers<[1], [0], [0], [1], [0, 0, 1, 1], [], []>} : vector<8x64xbf16>, vector<64x32xbf16>, vector<8x32xf32> -> vector<8x32xf32>
    %223 = vector.extract_strided_slice %128 {offsets = [1, 0], sizes = [1, 32], strides = [1, 1]} : vector<6x32xf32> to vector<1x32xf32>
    %224 = vector.broadcast %223 : vector<1x32xf32> to vector<8x32xf32>
    %225 = arith.addf %222, %224 : vector<8x32xf32>
    %226 = arith.addf %208, %225 : vector<8x32xf32>
    %227 = vector.extract_strided_slice %128 {offsets = [4, 0], sizes = [1, 32], strides = [1, 1]} : vector<6x32xf32> to vector<1x32xf32>
    %228 = vector.extract_strided_slice %128 {offsets = [5, 0], sizes = [1, 32], strides = [1, 1]} : vector<6x32xf32> to vector<1x32xf32>
    %cst_89 = arith.constant dense<0.000000e+00> : vector<8xf32>
    %229 = vector.multi_reduction <add>, %226, %cst_89 [1] : vector<8x32xf32> to vector<8xf32>
    %230 = vector.shape_cast %229 : vector<8xf32> to vector<8x1xf32>
    %cst_90 = arith.constant 3.200000e+01 : f32
    %231 = vector.broadcast %cst_90 : f32 to vector<8x1xf32>
    %232 = arith.divf %230, %231 : vector<8x1xf32>
    %233 = vector.broadcast %232 : vector<8x1xf32> to vector<8x32xf32>
    %234 = arith.subf %226, %233 : vector<8x32xf32>
    %235 = arith.mulf %234, %234 : vector<8x32xf32>
    %cst_91 = arith.constant dense<0.000000e+00> : vector<8xf32>
    %236 = vector.multi_reduction <add>, %235, %cst_91 [1] : vector<8x32xf32> to vector<8xf32>
    %237 = vector.shape_cast %236 : vector<8xf32> to vector<8x1xf32>
    %cst_92 = arith.constant 3.200000e+01 : f32
    %238 = vector.broadcast %cst_92 : f32 to vector<8x1xf32>
    %239 = arith.divf %237, %238 : vector<8x1xf32>
    %cst_93 = arith.constant 9.99999974E-6 : f32
    %240 = vector.broadcast %cst_93 : f32 to vector<8x1xf32>
    %241 = arith.addf %239, %240 : vector<8x1xf32>
    %242 = math.rsqrt %241 : vector<8x1xf32>
    %243 = vector.broadcast %242 : vector<8x1xf32> to vector<8x32xf32>
    %244 = arith.mulf %234, %243 : vector<8x32xf32>
    %245 = vector.broadcast %227 : vector<1x32xf32> to vector<8x32xf32>
    %246 = arith.mulf %244, %245 : vector<8x32xf32>
    %247 = vector.broadcast %228 : vector<1x32xf32> to vector<8x32xf32>
    %248 = arith.addf %246, %247 : vector<8x32xf32>
    %249 = vector.shape_cast %248 : vector<8x32xf32> to vector<1x8x32xf32>
    %250 = vector.shape_cast %1 : vector<1x1x8xf32> to vector<1x8x1xf32>
    %cst_94 = arith.constant 1.000000e+00 : f32
    %251 = vector.broadcast %cst_94 : f32 to vector<1x8x1xf32>
    %252 = arith.subf %251, %250 : vector<1x8x1xf32>
    %253 = vector.broadcast %252 : vector<1x8x1xf32> to vector<1x8x32xf32>
    %254 = arith.mulf %249, %253 : vector<1x8x32xf32>
    %255 = vector.extract_strided_slice %254 {offsets = [0, 4, 0], sizes = [1, 4, 32], strides = [1, 1, 1]} : vector<1x8x32xf32> to vector<1x4x32xf32>
    %256 = vector.shape_cast %255 : vector<1x4x32xf32> to vector<1x1x128xf32>
    %cst_95 = arith.constant 0.000000e+00 : f32
    %257 = vector.broadcast %cst_95 : f32 to vector<1x8x1xf32>
    %258 = arith.cmpf ogt, %250, %257 : vector<1x8x1xf32>
    %cst_96 = arith.constant -1.000000e+09 : f32
    %259 = vector.shape_cast %258 : vector<1x8x1xi1> to vector<1x8x1xi1>
    %260 = vector.broadcast %259 : vector<1x8x1xi1> to vector<1x8x32xi1>
    %261 = vector.broadcast %cst_96 : f32 to vector<1x8x32xf32>
    %262 = arith.select %260, %261, %254 : vector<1x8x32xi1>, vector<1x8x32xf32>
    %cst_97 = arith.constant dense<0xFF800000> : vector<1x32xf32>
    %263 = vector.multi_reduction <maximumf>, %262, %cst_97 [1] : vector<1x8x32xf32> to vector<1x32xf32>
    %264 = arith.truncf %263 : vector<1x32xf32> to vector<1x32xbf16>
    %c0_98 = arith.constant 0 : index
    %c0_99 = arith.constant 0 : index
    %265 = vector.load %arg10[%c0_98, %c0_99] : memref<32x32xbf16, #tpu.memory_space<vmem>>, vector<32x32xbf16>
    %cst_100 = arith.constant dense<0.000000e+00> : vector<1x32xf32>
    %266 = tpu.matmul %264, %265, %cst_100 {dimension_numbers = #tpu.dot_dimension_numbers<[1], [0], [0], [1], [0, 0, 1, 1], [], []>} : vector<1x32xbf16>, vector<32x32xbf16>, vector<1x32xf32> -> vector<1x32xf32>
    %c0_101 = arith.constant 0 : index
    %c0_102 = arith.constant 0 : index
    %267 = vector.load %arg11[%c0_101, %c0_102] : memref<1x32xf32, #tpu.memory_space<vmem>>, vector<1x32xf32>
    %268 = arith.addf %266, %267 : vector<1x32xf32>
    %269 = vector.shape_cast %268 : vector<1x32xf32> to vector<1x1x32xf32>
    %cst_103 = arith.constant 0.000000e+00 : f32
    %270 = vector.broadcast %cst_103 : f32 to vector<1x1x96xf32>
    %271 = tpu.concatenate %256, %269, %270 in 2 : vector<1x1x128xf32>, vector<1x1x32xf32>, vector<1x1x96xf32> -> vector<1x1x256xf32>
    %c0_104 = arith.constant 0 : index
    %c0_105 = arith.constant 0 : index
    %c0_106 = arith.constant 0 : index
    %272 = vector.load %arg12[%c0_104, %c0_105, %c0_106] : memref<1x1x256xf32, #tpu.memory_space<vmem>>, vector<1x1x256xf32>
    tpu.vector_store %arg12[%c0_104, %c0_105, %c0_106], %271 {strides = array<i32>} : memref<1x1x256xf32, #tpu.memory_space<vmem>>, vector<1x1x256xf32>,
    return
  }
  func.func @transform_0(%arg0: i32) -> (i32, i32, i32) {
    %c0_i32 = arith.constant 0 : i32
    %c0_i32_0 = arith.constant 0 : i32
    %c0_i32_1 = arith.constant 0 : i32
    return %arg0, %c0_i32, %c0_i32_0 : i32, i32, i32
  }
  func.func @transform_1(%arg0: i32) -> (i32, i32, i32) {
    %c0_i32 = arith.constant 0 : i32
    %c0_i32_0 = arith.constant 0 : i32
    %c0_i32_1 = arith.constant 0 : i32
    return %arg0, %c0_i32, %c0_i32_0 : i32, i32, i32
  }
  func.func @transform_2(%arg0: i32) -> (i32, i32, i32, i32) {
    %c0_i32 = arith.constant 0 : i32
    %c0_i32_0 = arith.constant 0 : i32
    %c0_i32_1 = arith.constant 0 : i32
    %c0_i32_2 = arith.constant 0 : i32
    %c0_i32_3 = arith.constant 0 : i32
    return %c0_i32, %c0_i32_0, %c0_i32_1, %c0_i32_2 : i32, i32, i32, i32
  }
  func.func @transform_3(%arg0: i32) -> (i32, i32, i32, i32) {
    %c0_i32 = arith.constant 0 : i32
    %c0_i32_0 = arith.constant 0 : i32
    %c0_i32_1 = arith.constant 0 : i32
    %c0_i32_2 = arith.constant 0 : i32
    %c0_i32_3 = arith.constant 0 : i32
    return %c0_i32, %c0_i32_0, %c0_i32_1, %c0_i32_2 : i32, i32, i32, i32
  }
  func.func @transform_4(%arg0: i32) -> (i32, i32, i32) {
    %c0_i32 = arith.constant 0 : i32
    %c0_i32_0 = arith.constant 0 : i32
    %c0_i32_1 = arith.constant 0 : i32
    %c0_i32_2 = arith.constant 0 : i32
    return %c0_i32, %c0_i32_0, %c0_i32_1 : i32, i32, i32
  }
  func.func @transform_5(%arg0: i32) -> (i32, i32, i32) {
    %c0_i32 = arith.constant 0 : i32
    %c0_i32_0 = arith.constant 0 : i32
    %c0_i32_1 = arith.constant 0 : i32
    %c0_i32_2 = arith.constant 0 : i32
    return %c0_i32, %c0_i32_0, %c0_i32_1 : i32, i32, i32
  }
  func.func @transform_6(%arg0: i32) -> (i32, i32, i32) {
    %c0_i32 = arith.constant 0 : i32
    %c0_i32_0 = arith.constant 0 : i32
    %c0_i32_1 = arith.constant 0 : i32
    %c0_i32_2 = arith.constant 0 : i32
    return %c0_i32, %c0_i32_0, %c0_i32_1 : i32, i32, i32
  }
  func.func @transform_7(%arg0: i32) -> (i32, i32, i32) {
    %c0_i32 = arith.constant 0 : i32
    %c0_i32_0 = arith.constant 0 : i32
    %c0_i32_1 = arith.constant 0 : i32
    %c0_i32_2 = arith.constant 0 : i32
    return %c0_i32, %c0_i32_0, %c0_i32_1 : i32, i32, i32
  }
  func.func @transform_8(%arg0: i32) -> (i32, i32, i32) {
    %c0_i32 = arith.constant 0 : i32
    %c0_i32_0 = arith.constant 0 : i32
    %c0_i32_1 = arith.constant 0 : i32
    %c0_i32_2 = arith.constant 0 : i32
    return %c0_i32, %c0_i32_0, %c0_i32_1 : i32, i32, i32
  }
  func.func @transform_9(%arg0: i32) -> (i32, i32) {
    %c0_i32 = arith.constant 0 : i32
    %c0_i32_0 = arith.constant 0 : i32
    %c0_i32_1 = arith.constant 0 : i32
    return %c0_i32, %c0_i32_0 : i32, i32
  }
  func.func @transform_10(%arg0: i32) -> (i32, i32) {
    %c0_i32 = arith.constant 0 : i32
    %c0_i32_0 = arith.constant 0 : i32
    %c0_i32_1 = arith.constant 0 : i32
    return %c0_i32, %c0_i32_0 : i32, i32
  }
  func.func @transform_11(%arg0: i32) -> (i32, i32, i32) {
    %c0_i32 = arith.constant 0 : i32
    %c0_i32_0 = arith.constant 0 : i32
    %c0_i32_1 = arith.constant 0 : i32
    return %arg0, %c0_i32, %c0_i32_0 : i32, i32, i32
  }
}

module attributes {stable_mosaic.version = 11 : i64} {
  func.func @transformer_kernel(%arg0: i32, %arg1: memref<1x8x32xf32, #tpu.memory_space<vmem>>, %arg2: memref<1x1x8xf32, #tpu.memory_space<vmem>>, %arg3: memref<2x3x32x32xbf16, #tpu.memory_space<vmem>>, %arg4: memref<2x3x1x32xf32, #tpu.memory_space<vmem>>, %arg5: memref<2x32x32xbf16, #tpu.memory_space<vmem>>, %arg6: memref<2x32x64xbf16, #tpu.memory_space<vmem>>, %arg7: memref<2x1x64xf32, #tpu.memory_space<vmem>>, %arg8: memref<2x64x32xbf16, #tpu.memory_space<vmem>>, %arg9: memref<2x6x32xf32, #tpu.memory_space<vmem>>, %arg10: memref<32x32xbf16, #tpu.memory_space<vmem>>, %arg11: memref<1x32xf32, #tpu.memory_space<vmem>>, %arg12: memref<1x1x256xf32, #tpu.memory_space<vmem>>) attributes {dimension_semantics = [#tpu.dimension_semantics<parallel>], iteration_bounds = array<i64: 2>, scalar_prefetch = 0 : i64, scratch_operands = 0 : i64, tpu.core_type = #tpu.core_type<tc>, window_params = [{transform_indices = @transform_0, window_bounds = array<i64: 1, 8, 32>}, {transform_indices = @transform_1, window_bounds = array<i64: 1, 1, 8>}, {pipeline_mode = #tpu.pipeline_mode<synchronous>, transform_indices = @transform_2, window_bounds = array<i64: 2, 3, 32, 32>}, {pipeline_mode = #tpu.pipeline_mode<synchronous>, transform_indices = @transform_3, window_bounds = array<i64: 2, 3, 1, 32>}, {pipeline_mode = #tpu.pipeline_mode<synchronous>, transform_indices = @transform_4, window_bounds = array<i64: 2, 32, 32>}, {pipeline_mode = #tpu.pipeline_mode<synchronous>, transform_indices = @transform_5, window_bounds = array<i64: 2, 32, 64>}, {pipeline_mode = #tpu.pipeline_mode<synchronous>, transform_indices = @transform_6, window_bounds = array<i64: 2, 1, 64>}, {pipeline_mode = #tpu.pipeline_mode<synchronous>, transform_indices = @transform_7, window_bounds = array<i64: 2, 64, 32>}, {pipeline_mode = #tpu.pipeline_mode<synchronous>, transform_indices = @transform_8, window_bounds = array<i64: 2, 6, 32>}, {pipeline_mode = #tpu.pipeline_mode<synchronous>, transform_indices = @transform_9, window_bounds = array<i64: 32, 32>}, {pipeline_mode = #tpu.pipeline_mode<synchronous>, transform_indices = @transform_10, window_bounds = array<i64: 1, 32>}, {transform_indices = @transform_11, window_bounds = array<i64: 1, 1, 256>}]} {
    %c0 = arith.constant 0 : index
    %c0_0 = arith.constant 0 : index
    %c0_1 = arith.constant 0 : index
    %0 = vector.load %arg1[%c0, %c0_0, %c0_1] : memref<1x8x32xf32, #tpu.memory_space<vmem>>, vector<1x8x32xf32>
    %c0_2 = arith.constant 0 : index
    %c0_3 = arith.constant 0 : index
    %c0_4 = arith.constant 0 : index
    %1 = vector.load %arg2[%c0_2, %c0_3, %c0_4] : memref<1x1x8xf32, #tpu.memory_space<vmem>>, vector<1x1x8xf32>
    %cst = arith.constant -1.000000e+09 : f32
    %2 = vector.broadcast %cst : f32 to vector<1x1x8xf32>
    %3 = arith.mulf %1, %2 : vector<1x1x8xf32>
    %4 = vector.shape_cast %0 : vector<1x8x32xf32> to vector<8x32xf32>
    %c0_5 = arith.constant 0 : index
    %c0_6 = arith.constant 0 : index
    %c0_7 = arith.constant 0 : index
    %5 = vector.load %arg9[%c0_5, %c0_6, %c0_7] : memref<2x6x32xf32, #tpu.memory_space<vmem>>, vector<1x6x32xf32>
    %6 = vector.shape_cast %5 : vector<1x6x32xf32> to vector<6x32xf32>
    %c0_8 = arith.constant 0 : index
    %c0_9 = arith.constant 0 : index
    %c0_10 = arith.constant 0 : index
    %c0_11 = arith.constant 0 : index
    %7 = vector.load %arg3[%c0_8, %c0_9, %c0_10, %c0_11] : memref<2x3x32x32xbf16, #tpu.memory_space<vmem>>, vector<1x3x32x32xbf16>
    %8 = vector.shape_cast %7 : vector<1x3x32x32xbf16> to vector<3x32x32xbf16>
    %c0_12 = arith.constant 0 : index
    %c0_13 = arith.constant 0 : index
    %c0_14 = arith.constant 0 : index
    %c0_15 = arith.constant 0 : index
    %9 = vector.load %arg4[%c0_12, %c0_13, %c0_14, %c0_15] : memref<2x3x1x32xf32, #tpu.memory_space<vmem>>, vector<1x3x1x32xf32>
    %10 = vector.shape_cast %9 : vector<1x3x1x32xf32> to vector<3x1x32xf32>
    %11 = arith.truncf %4 : vector<8x32xf32> to vector<8x32xbf16>
    %12 = vector.extract_strided_slice %8 {offsets = [0, 0, 0], sizes = [1, 32, 32], strides = [1, 1, 1]} : vector<3x32x32xbf16> to vector<1x32x32xbf16>
    %13 = vector.shape_cast %12 : vector<1x32x32xbf16> to vector<32x32xbf16>
    %cst_16 = arith.constant dense<0.000000e+00> : vector<8x32xf32>
    %14 = tpu.matmul %11, %13, %cst_16 {dimension_numbers = #tpu.dot_dimension_numbers<[1], [0], [0], [1], [0, 0, 1, 1], [], []>} : vector<8x32xbf16>, vector<32x32xbf16>, vector<8x32xf32> -> vector<8x32xf32>
    %15 = vector.extract_strided_slice %10 {offsets = [0, 0, 0], sizes = [1, 1, 32], strides = [1, 1, 1]} : vector<3x1x32xf32> to vector<1x1x32xf32>
    %16 = vector.shape_cast %15 : vector<1x1x32xf32> to vector<1x32xf32>
    %17 = vector.broadcast %16 : vector<1x32xf32> to vector<8x32xf32>
    %18 = arith.addf %14, %17 : vector<8x32xf32>
    %19 = vector.shape_cast %18 : vector<8x32xf32> to vector<1x8x32xf32>
    %20 = vector.extract_strided_slice %8 {offsets = [1, 0, 0], sizes = [1, 32, 32], strides = [1, 1, 1]} : vector<3x32x32xbf16> to vector<1x32x32xbf16>
    %21 = vector.shape_cast %20 : vector<1x32x32xbf16> to vector<32x32xbf16>
    %cst_17 = arith.constant dense<0.000000e+00> : vector<8x32xf32>
    %22 = tpu.matmul %11, %21, %cst_17 {dimension_numbers = #tpu.dot_dimension_numbers<[1], [0], [0], [1], [0, 0, 1, 1], [], []>} : vector<8x32xbf16>, vector<32x32xbf16>, vector<8x32xf32> -> vector<8x32xf32>
    %23 = vector.extract_strided_slice %10 {offsets = [1, 0, 0], sizes = [1, 1, 32], strides = [1, 1, 1]} : vector<3x1x32xf32> to vector<1x1x32xf32>
    %24 = vector.shape_cast %23 : vector<1x1x32xf32> to vector<1x32xf32>
    %25 = vector.broadcast %24 : vector<1x32xf32> to vector<8x32xf32>
    %26 = arith.addf %22, %25 : vector<8x32xf32>
    %27 = vector.shape_cast %26 : vector<8x32xf32> to vector<1x8x32xf32>
    %28 = vector.extract_strided_slice %8 {offsets = [2, 0, 0], sizes = [1, 32, 32], strides = [1, 1, 1]} : vector<3x32x32xbf16> to vector<1x32x32xbf16>
    %29 = vector.shape_cast %28 : vector<1x32x32xbf16> to vector<32x32xbf16>
    %cst_18 = arith.constant dense<0.000000e+00> : vector<8x32xf32>
    %30 = tpu.matmul %11, %29, %cst_18 {dimension_numbers = #tpu.dot_dimension_numbers<[1], [0], [0], [1], [0, 0, 1, 1], [], []>} : vector<8x32xbf16>, vector<32x32xbf16>, vector<8x32xf32> -> vector<8x32xf32>
    %31 = vector.extract_strided_slice %10 {offsets = [2, 0, 0], sizes = [1, 1, 32], strides = [1, 1, 1]} : vector<3x1x32xf32> to vector<1x1x32xf32>
    %32 = vector.shape_cast %31 : vector<1x1x32xf32> to vector<1x32xf32>
    %33 = vector.broadcast %32 : vector<1x32xf32> to vector<8x32xf32>
    %34 = arith.addf %30, %33 : vector<8x32xf32>
    %35 = vector.shape_cast %34 : vector<8x32xf32> to vector<1x8x32xf32>
    %36 = arith.truncf %19 : vector<1x8x32xf32> to vector<1x8x32xbf16>
    %37 = arith.truncf %27 : vector<1x8x32xf32> to vector<1x8x32xbf16>
    "tpu.trace_start"() <{level = 10 : i32, message = "bqd,bkd->bqk"}> : () -> ()
    %cst_19 = arith.constant dense<0.000000e+00> : vector<1x8x8xf32>
    %38 = tpu.matmul %36, %37, %cst_19 {dimension_numbers = #tpu.dot_dimension_numbers<[2], [2], [1], [1], [0, 0, 0, 1, 1, 1], [0], [0]>} : vector<1x8x32xbf16>, vector<1x8x32xbf16>, vector<1x8x8xf32> -> vector<1x8x8xf32>
    "tpu.trace_stop"() : () -> ()
    %cst_20 = arith.constant 0.176776692 : f32
    %39 = vector.broadcast %cst_20 : f32 to vector<1x8x8xf32>
    %40 = arith.mulf %38, %39 : vector<1x8x8xf32>
    %41 = vector.broadcast %3 : vector<1x1x8xf32> to vector<1x8x8xf32>
    %42 = arith.addf %40, %41 : vector<1x8x8xf32>
    %cst_21 = arith.constant dense<0xFF800000> : vector<1x8xf32>
    %43 = vector.multi_reduction <maximumf>, %42, %cst_21 [2] : vector<1x8x8xf32> to vector<1x8xf32>
    %44 = vector.shape_cast %43 : vector<1x8xf32> to vector<1x8x1xf32>
    %45 = vector.broadcast %44 : vector<1x8x1xf32> to vector<1x8x8xf32>
    %46 = arith.subf %42, %45 : vector<1x8x8xf32>
    %47 = math.exp %46 : vector<1x8x8xf32>
    %cst_22 = arith.constant dense<0.000000e+00> : vector<1x8xf32>
    %48 = vector.multi_reduction <add>, %47, %cst_22 [2] : vector<1x8x8xf32> to vector<1x8xf32>
    %49 = vector.shape_cast %48 : vector<1x8xf32> to vector<1x8x1xf32>
    %50 = tpu.reciprocal %49 {approx = true} : vector<1x8x1xf32> -> vector<1x8x1xf32>
    %51 = vector.broadcast %50 : vector<1x8x1xf32> to vector<1x8x8xf32>
    %52 = arith.mulf %47, %51 : vector<1x8x8xf32>
    %53 = arith.truncf %52 : vector<1x8x8xf32> to vector<1x8x8xbf16>
    %54 = arith.truncf %35 : vector<1x8x32xf32> to vector<1x8x32xbf16>
    "tpu.trace_start"() <{level = 10 : i32, message = "bqk,bkd->bqd"}> : () -> ()
    %cst_23 = arith.constant dense<0.000000e+00> : vector<1x8x32xf32>
    %55 = tpu.matmul %53, %54, %cst_23 {dimension_numbers = #tpu.dot_dimension_numbers<[2], [1], [1], [2], [0, 0, 0, 1, 1, 2], [0], [0]>} : vector<1x8x8xbf16>, vector<1x8x32xbf16>, vector<1x8x32xf32> -> vector<1x8x32xf32>
    "tpu.trace_stop"() : () -> ()
    %56 = vector.shape_cast %55 : vector<1x8x32xf32> to vector<8x32xf32>
    %57 = arith.truncf %56 : vector<8x32xf32> to vector<8x32xbf16>
    %c0_24 = arith.constant 0 : index
    %c0_25 = arith.constant 0 : index
    %c0_26 = arith.constant 0 : index
    %58 = vector.load %arg5[%c0_24, %c0_25, %c0_26] : memref<2x32x32xbf16, #tpu.memory_space<vmem>>, vector<1x32x32xbf16>
    %59 = vector.shape_cast %58 : vector<1x32x32xbf16> to vector<32x32xbf16>
    %cst_27 = arith.constant dense<0.000000e+00> : vector<8x32xf32>
    %60 = tpu.matmul %57, %59, %cst_27 {dimension_numbers = #tpu.dot_dimension_numbers<[1], [0], [0], [1], [0, 0, 1, 1], [], []>} : vector<8x32xbf16>, vector<32x32xbf16>, vector<8x32xf32> -> vector<8x32xf32>
    %61 = vector.extract_strided_slice %6 {offsets = [0, 0], sizes = [1, 32], strides = [1, 1]} : vector<6x32xf32> to vector<1x32xf32>
    %62 = vector.broadcast %61 : vector<1x32xf32> to vector<8x32xf32>
    %63 = arith.addf %60, %62 : vector<8x32xf32>
    %64 = arith.addf %4, %63 : vector<8x32xf32>
    %65 = vector.extract_strided_slice %6 {offsets = [2, 0], sizes = [1, 32], strides = [1, 1]} : vector<6x32xf32> to vector<1x32xf32>
    %66 = vector.extract_strided_slice %6 {offsets = [3, 0], sizes = [1, 32], strides = [1, 1]} : vector<6x32xf32> to vector<1x32xf32>
    %cst_28 = arith.constant dense<0.000000e+00> : vector<8xf32>
    %67 = vector.multi_reduction <add>, %64, %cst_28 [1] : vector<8x32xf32> to vector<8xf32>
    %68 = vector.shape_cast %67 : vector<8xf32> to vector<8x1xf32>
    %cst_29 = arith.constant 3.200000e+01 : f32
    %69 = vector.broadcast %cst_29 : f32 to vector<8x1xf32>
    %70 = arith.divf %68, %69 : vector<8x1xf32>
    %71 = vector.broadcast %70 : vector<8x1xf32> to vector<8x32xf32>
    %72 = arith.subf %64, %71 : vector<8x32xf32>
    %73 = arith.mulf %72, %72 : vector<8x32xf32>
    %cst_30 = arith.constant dense<0.000000e+00> : vector<8xf32>
    %74 = vector.multi_reduction <add>, %73, %cst_30 [1] : vector<8x32xf32> to vector<8xf32>
    %75 = vector.shape_cast %74 : vector<8xf32> to vector<8x1xf32>
    %cst_31 = arith.constant 3.200000e+01 : f32
    %76 = vector.broadcast %cst_31 : f32 to vector<8x1xf32>
    %77 = arith.divf %75, %76 : vector<8x1xf32>
    %cst_32 = arith.constant 9.99999974E-6 : f32
    %78 = vector.broadcast %cst_32 : f32 to vector<8x1xf32>
    %79 = arith.addf %77, %78 : vector<8x1xf32>
    %80 = math.rsqrt %79 : vector<8x1xf32>
    %81 = vector.broadcast %80 : vector<8x1xf32> to vector<8x32xf32>
    %82 = arith.mulf %72, %81 : vector<8x32xf32>
    %83 = vector.broadcast %65 : vector<1x32xf32> to vector<8x32xf32>
    %84 = arith.mulf %82, %83 : vector<8x32xf32>
    %85 = vector.broadcast %66 : vector<1x32xf32> to vector<8x32xf32>
    %86 = arith.addf %84, %85 : vector<8x32xf32>
    %87 = arith.truncf %86 : vector<8x32xf32> to vector<8x32xbf16>
    %c0_33 = arith.constant 0 : index
    %c0_34 = arith.constant 0 : index
    %c0_35 = arith.constant 0 : index
    %88 = vector.load %arg6[%c0_33, %c0_34, %c0_35] : memref<2x32x64xbf16, #tpu.memory_space<vmem>>, vector<1x32x64xbf16>
    %89 = vector.shape_cast %88 : vector<1x32x64xbf16> to vector<32x64xbf16>
    %cst_36 = arith.constant dense<0.000000e+00> : vector<8x64xf32>
    %90 = tpu.matmul %87, %89, %cst_36 {dimension_numbers = #tpu.dot_dimension_numbers<[1], [0], [0], [1], [0, 0, 1, 1], [], []>} : vector<8x32xbf16>, vector<32x64xbf16>, vector<8x64xf32> -> vector<8x64xf32>
    %c0_37 = arith.constant 0 : index
    %c0_38 = arith.constant 0 : index
    %c0_39 = arith.constant 0 : index
    %91 = vector.load %arg7[%c0_37, %c0_38, %c0_39] : memref<2x1x64xf32, #tpu.memory_space<vmem>>, vector<1x1x64xf32>
    %92 = vector.shape_cast %91 : vector<1x1x64xf32> to vector<1x64xf32>
    %93 = vector.broadcast %92 : vector<1x64xf32> to vector<8x64xf32>
    %94 = arith.addf %90, %93 : vector<8x64xf32>
    %cst_40 = arith.constant 0.000000e+00 : f32
    %95 = vector.broadcast %cst_40 : f32 to vector<8x64xf32>
    %96 = arith.maximumf %94, %95 : vector<8x64xf32>
    %97 = arith.truncf %96 : vector<8x64xf32> to vector<8x64xbf16>
    %c0_41 = arith.constant 0 : index
    %c0_42 = arith.constant 0 : index
    %c0_43 = arith.constant 0 : index
    %98 = vector.load %arg8[%c0_41, %c0_42, %c0_43] : memref<2x64x32xbf16, #tpu.memory_space<vmem>>, vector<1x64x32xbf16>
    %99 = vector.shape_cast %98 : vector<1x64x32xbf16> to vector<64x32xbf16>
    %cst_44 = arith.constant dense<0.000000e+00> : vector<8x32xf32>
    %100 = tpu.matmul %97, %99, %cst_44 {dimension_numbers = #tpu.dot_dimension_numbers<[1], [0], [0], [1], [0, 0, 1, 1], [], []>} : vector<8x64xbf16>, vector<64x32xbf16>, vector<8x32xf32> -> vector<8x32xf32>
    %101 = vector.extract_strided_slice %6 {offsets = [1, 0], sizes = [1, 32], strides = [1, 1]} : vector<6x32xf32> to vector<1x32xf32>
    %102 = vector.broadcast %101 : vector<1x32xf32> to vector<8x32xf32>
    %103 = arith.addf %100, %102 : vector<8x32xf32>
    %104 = arith.addf %86, %103 : vector<8x32xf32>
    %105 = vector.extract_strided_slice %6 {offsets = [4, 0], sizes = [1, 32], strides = [1, 1]} : vector<6x32xf32> to vector<1x32xf32>
    %106 = vector.extract_strided_slice %6 {offsets = [5, 0], sizes = [1, 32], strides = [1, 1]} : vector<6x32xf32> to vector<1x32xf32>
    %cst_45 = arith.constant dense<0.000000e+00> : vector<8xf32>
    %107 = vector.multi_reduction <add>, %104, %cst_45 [1] : vector<8x32xf32> to vector<8xf32>
    %108 = vector.shape_cast %107 : vector<8xf32> to vector<8x1xf32>
    %cst_46 = arith.constant 3.200000e+01 : f32
    %109 = vector.broadcast %cst_46 : f32 to vector<8x1xf32>
    %110 = arith.divf %108, %109 : vector<8x1xf32>
    %111 = vector.broadcast %110 : vector<8x1xf32> to vector<8x32xf32>
    %112 = arith.subf %104, %111 : vector<8x32xf32>
    %113 = arith.mulf %112, %112 : vector<8x32xf32>
    %cst_47 = arith.constant dense<0.000000e+00> : vector<8xf32>
    %114 = vector.multi_reduction <add>, %113, %cst_47 [1] : vector<8x32xf32> to vector<8xf32>
    %115 = vector.shape_cast %114 : vector<8xf32> to vector<8x1xf32>
    %cst_48 = arith.constant 3.200000e+01 : f32
    %116 = vector.broadcast %cst_48 : f32 to vector<8x1xf32>
    %117 = arith.divf %115, %116 : vector<8x1xf32>
    %cst_49 = arith.constant 9.99999974E-6 : f32
    %118 = vector.broadcast %cst_49 : f32 to vector<8x1xf32>
    %119 = arith.addf %117, %118 : vector<8x1xf32>
    %120 = math.rsqrt %119 : vector<8x1xf32>
    %121 = vector.broadcast %120 : vector<8x1xf32> to vector<8x32xf32>
    %122 = arith.mulf %112, %121 : vector<8x32xf32>
    %123 = vector.broadcast %105 : vector<1x32xf32> to vector<8x32xf32>
    %124 = arith.mulf %122, %123 : vector<8x32xf32>
    %125 = vector.broadcast %106 : vector<1x32xf32> to vector<8x32xf32>
    %126 = arith.addf %124, %125 : vector<8x32xf32>
    %c1 = arith.constant 1 : index
    %c0_50 = arith.constant 0 : index
    %c0_51 = arith.constant 0 : index
    %127 = vector.load %arg9[%c1, %c0_50, %c0_51] : memref<2x6x32xf32, #tpu.memory_space<vmem>>, vector<1x6x32xf32>
    %128 = vector.shape_cast %127 : vector<1x6x32xf32> to vector<6x32xf32>
    %c1_52 = arith.constant 1 : index
    %c0_53 = arith.constant 0 : index
    %c0_54 = arith.constant 0 : index
    %c0_55 = arith.constant 0 : index
    %129 = vector.load %arg3[%c1_52, %c0_53, %c0_54, %c0_55] : memref<2x3x32x32xbf16, #tpu.memory_space<vmem>>, vector<1x3x32x32xbf16>
    %130 = vector.shape_cast %129 : vector<1x3x32x32xbf16> to vector<3x32x32xbf16>
    %c1_56 = arith.constant 1 : index
    %c0_57 = arith.constant 0 : index
    %c0_58 = arith.constant 0 : index
    %c0_59 = arith.constant 0 : index
    %131 = vector.load %arg4[%c1_56, %c0_57, %c0_58, %c0_59] : memref<2x3x1x32xf32, #tpu.memory_space<vmem>>, vector<1x3x1x32xf32>
    %132 = vector.shape_cast %131 : vector<1x3x1x32xf32> to vector<3x1x32xf32>
    %133 = arith.truncf %126 : vector<8x32xf32> to vector<8x32xbf16>
    %134 = vector.extract_strided_slice %130 {offsets = [0, 0, 0], sizes = [1, 32, 32], strides = [1, 1, 1]} : vector<3x32x32xbf16> to vector<1x32x32xbf16>
    %135 = vector.shape_cast %134 : vector<1x32x32xbf16> to vector<32x32xbf16>
    %cst_60 = arith.constant dense<0.000000e+00> : vector<8x32xf32>
    %136 = tpu.matmul %133, %135, %cst_60 {dimension_numbers = #tpu.dot_dimension_numbers<[1], [0], [0], [1], [0, 0, 1, 1], [], []>} : vector<8x32xbf16>, vector<32x32xbf16>, vector<8x32xf32> -> vector<8x32xf32>
    %137 = vector.extract_strided_slice %132 {offsets = [0, 0, 0], sizes = [1, 1, 32], strides = [1, 1, 1]} : vector<3x1x32xf32> to vector<1x1x32xf32>
    %138 = vector.shape_cast %137 : vector<1x1x32xf32> to vector<1x32xf32>
    %139 = vector.broadcast %138 : vector<1x32xf32> to vector<8x32xf32>
    %140 = arith.addf %136, %139 : vector<8x32xf32>
    %141 = vector.shape_cast %140 : vector<8x32xf32> to vector<1x8x32xf32>
    %142 = vector.extract_strided_slice %130 {offsets = [1, 0, 0], sizes = [1, 32, 32], strides = [1, 1, 1]} : vector<3x32x32xbf16> to vector<1x32x32xbf16>
    %143 = vector.shape_cast %142 : vector<1x32x32xbf16> to vector<32x32xbf16>
    %cst_61 = arith.constant dense<0.000000e+00> : vector<8x32xf32>
    %144 = tpu.matmul %133, %143, %cst_61 {dimension_numbers = #tpu.dot_dimension_numbers<[1], [0], [0], [1], [0, 0, 1, 1], [], []>} : vector<8x32xbf16>, vector<32x32xbf16>, vector<8x32xf32> -> vector<8x32xf32>
    %145 = vector.extract_strided_slice %132 {offsets = [1, 0, 0], sizes = [1, 1, 32], strides = [1, 1, 1]} : vector<3x1x32xf32> to vector<1x1x32xf32>
    %146 = vector.shape_cast %145 : vector<1x1x32xf32> to vector<1x32xf32>
    %147 = vector.broadcast %146 : vector<1x32xf32> to vector<8x32xf32>
    %148 = arith.addf %144, %147 : vector<8x32xf32>
    %149 = vector.shape_cast %148 : vector<8x32xf32> to vector<1x8x32xf32>
    %150 = vector.extract_strided_slice %130 {offsets = [2, 0, 0], sizes = [1, 32, 32], strides = [1, 1, 1]} : vector<3x32x32xbf16> to vector<1x32x32xbf16>
    %151 = vector.shape_cast %150 : vector<1x32x32xbf16> to vector<32x32xbf16>
    %cst_62 = arith.constant dense<0.000000e+00> : vector<8x32xf32>
    %152 = tpu.matmul %133, %151, %cst_62 {dimension_numbers = #tpu.dot_dimension_numbers<[1], [0], [0], [1], [0, 0, 1, 1], [], []>} : vector<8x32xbf16>, vector<32x32xbf16>, vector<8x32xf32> -> vector<8x32xf32>
    %153 = vector.extract_strided_slice %132 {offsets = [2, 0, 0], sizes = [1, 1, 32], strides = [1, 1, 1]} : vector<3x1x32xf32> to vector<1x1x32xf32>
    %154 = vector.shape_cast %153 : vector<1x1x32xf32> to vector<1x32xf32>
    %155 = vector.broadcast %154 : vector<1x32xf32> to vector<8x32xf32>
    %156 = arith.addf %152, %155 : vector<8x32xf32>
    %157 = vector.shape_cast %156 : vector<8x32xf32> to vector<1x8x32xf32>
    %158 = arith.truncf %141 : vector<1x8x32xf32> to vector<1x8x32xbf16>
    %159 = arith.truncf %149 : vector<1x8x32xf32> to vector<1x8x32xbf16>
    "tpu.trace_start"() <{level = 10 : i32, message = "bqd,bkd->bqk"}> : () -> ()
    %cst_63 = arith.constant dense<0.000000e+00> : vector<1x8x8xf32>
    %160 = tpu.matmul %158, %159, %cst_63 {dimension_numbers = #tpu.dot_dimension_numbers<[2], [2], [1], [1], [0, 0, 0, 1, 1, 1], [0], [0]>} : vector<1x8x32xbf16>, vector<1x8x32xbf16>, vector<1x8x8xf32> -> vector<1x8x8xf32>
    "tpu.trace_stop"() : () -> ()
    %cst_64 = arith.constant 0.176776692 : f32
    %161 = vector.broadcast %cst_64 : f32 to vector<1x8x8xf32>
    %162 = arith.mulf %160, %161 : vector<1x8x8xf32>
    %163 = vector.broadcast %3 : vector<1x1x8xf32> to vector<1x8x8xf32>
    %164 = arith.addf %162, %163 : vector<1x8x8xf32>
    %cst_65 = arith.constant dense<0xFF800000> : vector<1x8xf32>
    %165 = vector.multi_reduction <maximumf>, %164, %cst_65 [2] : vector<1x8x8xf32> to vector<1x8xf32>
    %166 = vector.shape_cast %165 : vector<1x8xf32> to vector<1x8x1xf32>
    %167 = vector.broadcast %166 : vector<1x8x1xf32> to vector<1x8x8xf32>
    %168 = arith.subf %164, %167 : vector<1x8x8xf32>
    %169 = math.exp %168 : vector<1x8x8xf32>
    %cst_66 = arith.constant dense<0.000000e+00> : vector<1x8xf32>
    %170 = vector.multi_reduction <add>, %169, %cst_66 [2] : vector<1x8x8xf32> to vector<1x8xf32>
    %171 = vector.shape_cast %170 : vector<1x8xf32> to vector<1x8x1xf32>
    %172 = tpu.reciprocal %171 {approx = true} : vector<1x8x1xf32> -> vector<1x8x1xf32>
    %173 = vector.broadcast %172 : vector<1x8x1xf32> to vector<1x8x8xf32>
    %174 = arith.mulf %169, %173 : vector<1x8x8xf32>
    %175 = arith.truncf %174 : vector<1x8x8xf32> to vector<1x8x8xbf16>
    %176 = arith.truncf %157 : vector<1x8x32xf32> to vector<1x8x32xbf16>
    "tpu.trace_start"() <{level = 10 : i32, message = "bqk,bkd->bqd"}> : () -> ()
    %cst_67 = arith.constant dense<0.000000e+00> : vector<1x8x32xf32>
    %177 = tpu.matmul %175, %176, %cst_67 {dimension_numbers = #tpu.dot_dimension_numbers<[2], [1], [1], [2], [0, 0, 0, 1, 1, 2], [0], [0]>} : vector<1x8x8xbf16>, vector<1x8x32xbf16>, vector<1x8x32xf32> -> vector<1x8x32xf32>
    "tpu.trace_stop"() : () -> ()
    %178 = vector.shape_cast %177 : vector<1x8x32xf32> to vector<8x32xf32>
    %179 = arith.truncf %178 : vector<8x32xf32> to vector<8x32xbf16>
    %c1_68 = arith.constant 1 : index
    %c0_69 = arith.constant 0 : index
    %c0_70 = arith.constant 0 : index
    %180 = vector.load %arg5[%c1_68, %c0_69, %c0_70] : memref<2x32x32xbf16, #tpu.memory_space<vmem>>, vector<1x32x32xbf16>
    %181 = vector.shape_cast %180 : vector<1x32x32xbf16> to vector<32x32xbf16>
    %cst_71 = arith.constant dense<0.000000e+00> : vector<8x32xf32>
    %182 = tpu.matmul %179, %181, %cst_71 {dimension_numbers = #tpu.dot_dimension_numbers<[1], [0], [0], [1], [0, 0, 1, 1], [], []>} : vector<8x32xbf16>, vector<32x32xbf16>, vector<8x32xf32> -> vector<8x32xf32>
    %183 = vector.extract_strided_slice %128 {offsets = [0, 0], sizes = [1, 32], strides = [1, 1]} : vector<6x32xf32> to vector<1x32xf32>
    %184 = vector.broadcast %183 : vector<1x32xf32> to vector<8x32xf32>
    %185 = arith.addf %182, %184 : vector<8x32xf32>
    %186 = arith.addf %126, %185 : vector<8x32xf32>
    %187 = vector.extract_strided_slice %128 {offsets = [2, 0], sizes = [1, 32], strides = [1, 1]} : vector<6x32xf32> to vector<1x32xf32>
    %188 = vector.extract_strided_slice %128 {offsets = [3, 0], sizes = [1, 32], strides = [1, 1]} : vector<6x32xf32> to vector<1x32xf32>
    %cst_72 = arith.constant dense<0.000000e+00> : vector<8xf32>
    %189 = vector.multi_reduction <add>, %186, %cst_72 [1] : vector<8x32xf32> to vector<8xf32>
    %190 = vector.shape_cast %189 : vector<8xf32> to vector<8x1xf32>
    %cst_73 = arith.constant 3.200000e+01 : f32
    %191 = vector.broadcast %cst_73 : f32 to vector<8x1xf32>
    %192 = arith.divf %190, %191 : vector<8x1xf32>
    %193 = vector.broadcast %192 : vector<8x1xf32> to vector<8x32xf32>
    %194 = arith.subf %186, %193 : vector<8x32xf32>
    %195 = arith.mulf %194, %194 : vector<8x32xf32>
    %cst_74 = arith.constant dense<0.000000e+00> : vector<8xf32>
    %196 = vector.multi_reduction <add>, %195, %cst_74 [1] : vector<8x32xf32> to vector<8xf32>
    %197 = vector.shape_cast %196 : vector<8xf32> to vector<8x1xf32>
    %cst_75 = arith.constant 3.200000e+01 : f32
    %198 = vector.broadcast %cst_75 : f32 to vector<8x1xf32>
    %199 = arith.divf %197, %198 : vector<8x1xf32>
    %cst_76 = arith.constant 9.99999974E-6 : f32
    %200 = vector.broadcast %cst_76 : f32 to vector<8x1xf32>
    %201 = arith.addf %199, %200 : vector<8x1xf32>
    %202 = math.rsqrt %201 : vector<8x1xf32>
    %203 = vector.broadcast %202 : vector<8x1xf32> to vector<8x32xf32>
    %204 = arith.mulf %194, %203 : vector<8x32xf32>
    %205 = vector.broadcast %187 : vector<1x32xf32> to vector<8x32xf32>
    %206 = arith.mulf %204, %205 : vector<8x32xf32>
    %207 = vector.broadcast %188 : vector<1x32xf32> to vector<8x32xf32>
    %208 = arith.addf %206, %207 : vector<8x32xf32>
    %209 = arith.truncf %208 : vector<8x32xf32> to vector<8x32xbf16>
    %c1_77 = arith.constant 1 : index
    %c0_78 = arith.constant 0 : index
    %c0_79 = arith.constant 0 : index
    %210 = vector.load %arg6[%c1_77, %c0_78, %c0_79] : memref<2x32x64xbf16, #tpu.memory_space<vmem>>, vector<1x32x64xbf16>
    %211 = vector.shape_cast %210 : vector<1x32x64xbf16> to vector<32x64xbf16>
    %cst_80 = arith.constant dense<0.000000e+00> : vector<8x64xf32>
    %212 = tpu.matmul %209, %211, %cst_80 {dimension_numbers = #tpu.dot_dimension_numbers<[1], [0], [0], [1], [0, 0, 1, 1], [], []>} : vector<8x32xbf16>, vector<32x64xbf16>, vector<8x64xf32> -> vector<8x64xf32>
    %c1_81 = arith.constant 1 : index
    %c0_82 = arith.constant 0 : index
    %c0_83 = arith.constant 0 : index
    %213 = vector.load %arg7[%c1_81, %c0_82, %c0_83] : memref<2x1x64xf32, #tpu.memory_space<vmem>>, vector<1x1x64xf32>
    %214 = vector.shape_cast %213 : vector<1x1x64xf32> to vector<1x64xf32>
    %215 = vector.broadcast %214 : vector<1x64xf32> to vector<8x64xf32>
    %216 = arith.addf %212, %215 : vector<8x64xf32>
    %cst_84 = arith.constant 0.000000e+00 : f32
    %217 = vector.broadcast %cst_84 : f32 to vector<8x64xf32>
    %218 = arith.maximumf %216, %217 : vector<8x64xf32>
    %219 = arith.truncf %218 : vector<8x64xf32> to vector<8x64xbf16>
    %c1_85 = arith.constant 1 : index
    %c0_86 = arith.constant 0 : index
    %c0_87 = arith.constant 0 : index
    %220 = vector.load %arg8[%c1_85, %c0_86, %c0_87] : memref<2x64x32xbf16, #tpu.memory_space<vmem>>, vector<1x64x32xbf16>
    %221 = vector.shape_cast %220 : vector<1x64x32xbf16> to vector<64x32xbf16>
    %cst_88 = arith.constant dense<0.000000e+00> : vector<8x32xf32>
    %222 = tpu.matmul %219, %221, %cst_88 {dimension_numbers = #tpu.dot_dimension_numbers<[1], [0], [0], [1], [0, 0, 1, 1], [], []>} : vector<8x64xbf16>, vector<64x32xbf16>, vector<8x32xf32> -> vector<8x32xf32>
    %223 = vector.extract_strided_slice %128 {offsets = [1, 0], sizes = [1, 32], strides = [1, 1]} : vector<6x32xf32> to vector<1x32xf32>
    %224 = vector.broadcast %223 : vector<1x32xf32> to vector<8x32xf32>
    %225 = arith.addf %222, %224 : vector<8x32xf32>
    %226 = arith.addf %208, %225 : vector<8x32xf32>
    %227 = vector.extract_strided_slice %128 {offsets = [4, 0], sizes = [1, 32], strides = [1, 1]} : vector<6x32xf32> to vector<1x32xf32>
    %228 = vector.extract_strided_slice %128 {offsets = [5, 0], sizes = [1, 32], strides = [1, 1]} : vector<6x32xf32> to vector<1x32xf32>
    %cst_89 = arith.constant dense<0.000000e+00> : vector<8xf32>
    %229 = vector.multi_reduction <add>, %226, %cst_89 [1] : vector<8x32xf32> to vector<8xf32>
    %230 = vector.shape_cast %229 : vector<8xf32> to vector<8x1xf32>
    %cst_90 = arith.constant 3.200000e+01 : f32
    %231 = vector.broadcast %cst_90 : f32 to vector<8x1xf32>
    %232 = arith.divf %230, %231 : vector<8x1xf32>
    %233 = vector.broadcast %232 : vector<8x1xf32> to vector<8x32xf32>
    %234 = arith.subf %226, %233 : vector<8x32xf32>
    %235 = arith.mulf %234, %234 : vector<8x32xf32>
    %cst_91 = arith.constant dense<0.000000e+00> : vector<8xf32>
    %236 = vector.multi_reduction <add>, %235, %cst_91 [1] : vector<8x32xf32> to vector<8xf32>
    %237 = vector.shape_cast %236 : vector<8xf32> to vector<8x1xf32>
    %cst_92 = arith.constant 3.200000e+01 : f32
    %238 = vector.broadcast %cst_92 : f32 to vector<8x1xf32>
    %239 = arith.divf %237, %238 : vector<8x1xf32>
    %cst_93 = arith.constant 9.99999974E-6 : f32
    %240 = vector.broadcast %cst_93 : f32 to vector<8x1xf32>
    %241 = arith.addf %239, %240 : vector<8x1xf32>
    %242 = math.rsqrt %241 : vector<8x1xf32>
    %243 = vector.broadcast %242 : vector<8x1xf32> to vector<8x32xf32>
    %244 = arith.mulf %234, %243 : vector<8x32xf32>
    %245 = vector.broadcast %227 : vector<1x32xf32> to vector<8x32xf32>
    %246 = arith.mulf %244, %245 : vector<8x32xf32>
    %247 = vector.broadcast %228 : vector<1x32xf32> to vector<8x32xf32>
    %248 = arith.addf %246, %247 : vector<8x32xf32>
    %249 = vector.shape_cast %248 : vector<8x32xf32> to vector<1x8x32xf32>
    %250 = vector.shape_cast %1 : vector<1x1x8xf32> to vector<1x8x1xf32>
    %cst_94 = arith.constant 1.000000e+00 : f32
    %251 = vector.broadcast %cst_94 : f32 to vector<1x8x1xf32>
    %252 = arith.subf %251, %250 : vector<1x8x1xf32>
    %253 = vector.broadcast %252 : vector<1x8x1xf32> to vector<1x8x32xf32>
    %254 = arith.mulf %249, %253 : vector<1x8x32xf32>
    %255 = vector.extract_strided_slice %254 {offsets = [0, 4, 0], sizes = [1, 4, 32], strides = [1, 1, 1]} : vector<1x8x32xf32> to vector<1x4x32xf32>
    %256 = vector.shape_cast %255 : vector<1x4x32xf32> to vector<1x1x128xf32>
    %cst_95 = arith.constant 0.000000e+00 : f32
    %257 = vector.broadcast %cst_95 : f32 to vector<1x8x1xf32>
    %258 = arith.cmpf ogt, %250, %257 : vector<1x8x1xf32>
    %cst_96 = arith.constant -1.000000e+09 : f32
    %259 = vector.shape_cast %258 : vector<1x8x1xi1> to vector<1x8x1xi1>
    %260 = vector.broadcast %259 : vector<1x8x1xi1> to vector<1x8x32xi1>
    %261 = vector.broadcast %cst_96 : f32 to vector<1x8x32xf32>
    %262 = arith.select %260, %261, %254 : vector<1x8x32xi1>, vector<1x8x32xf32>
    %cst_97 = arith.constant dense<0xFF800000> : vector<1x32xf32>
    %263 = vector.multi_reduction <maximumf>, %262, %cst_97 [1] : vector<1x8x32xf32> to vector<1x32xf32>
    %264 = arith.truncf %263 : vector<1x32xf32> to vector<1x32xbf16>
    %c0_98 = arith.constant 0 : index
    %c0_99 = arith.constant 0 : index
    %265 = vector.load %arg10[%c0_98, %c0_99] : memref<32x32xbf16, #tpu.memory_space<vmem>>, vector<32x32xbf16>
    %cst_100 = arith.constant dense<0.000000e+00> : vector<1x32xf32>
    %266 = tpu.matmul %264, %265, %cst_100 {dimension_numbers = #tpu.dot_dimension_numbers<[1], [0], [0], [1], [0, 0, 1, 1], [], []>} : vector<1x32xbf16>, vector<32x32xbf16>, vector<1x32xf32> -> vector<1x32xf32>
    %c0_101 = arith.constant 0 : index
    %c0_102 = arith.constant 0 : index
    %267 = vector.load %arg11[%c0_101, %c0_102] : memref<1x32xf32, #tpu.memory_space<vmem>>, vector<1x32xf32>
    %268 = arith.addf %266, %267 : vector<1x32xf32>
    %269 = vector.shape_cast %268 : vector<1x32xf32> to vector<1x1x32xf32>
    %cst_103 = arith.constant 0.000000e+00 : f32
    %270 = vector.broadcast %cst_103 : f32 to vector<1x1x96xf32>
    %271 = tpu.concatenate %256, %269, %270 in 2 : vector<1x1x128xf32>, vector<1x1x32xf32>, vector<1x1x96xf32> -> vector<1x1x256xf32>
    %c0_104 = arith.constant 0 : index
    %c0_105 = arith.constant 0 : index
    %c0_106 = arith.constant 0 : index
    %272 = vector.load %arg12[%c0_104, %c0_105, %c0_106] : memref<1x1x256xf32, #tpu.memory_space<vmem>>, vector<1x1x256xf32>
    tpu.vector_store %arg12[%c0_104, %c0_105, %c0_106], %271 {strides = array<i32>} : memref<1x1x256xf32, #tpu.memory_space<vmem>>, vector<1x1x256xf32>,
    return
  }
  func.func @transform_0(%arg0: i32) -> (i32, i32, i32) {
    %c0_i32 = arith.constant 0 : i32
    %c0_i32_0 = arith.constant 0 : i32
    %c0_i32_1 = arith.constant 0 : i32
    return %arg0, %c0_i32, %c0_i32_0 : i32, i32, i32
  }
  func.func @transform_1(%arg0: i32) -> (i32, i32, i32) {
    %c0_i32 = arith.constant 0 : i32
    %c0_i32_0 = arith.constant 0 : i32
    %c0_i32_1 = arith.constant 0 : i32
    return %arg0, %c0_i32, %c0_i32_0 : i32, i32, i32
  }
  func.func @transform_2(%arg0: i32) -> (i32, i32, i32, i32) {
    %c0_i32 = arith.constant 0 : i32
    %c0_i32_0 = arith.constant 0 : i32
    %c0_i32_1 = arith.constant 0 : i32
    %c0_i32_2 = arith.constant 0 : i32
    %c0_i32_3 = arith.constant 0 : i32
    return %c0_i32, %c0_i32_0, %c0_i32_1, %c0_i32_2 : i32, i32, i32, i32
  }
  func.func @transform_3(%arg0: i32) -> (i32, i32, i32, i32) {
    %c0_i32 = arith.constant 0 : i32
    %c0_i32_0 = arith.constant 0 : i32
    %c0_i32_1 = arith.constant 0 : i32
    %c0_i32_2 = arith.constant 0 : i32
    %c0_i32_3 = arith.constant 0 : i32
    return %c0_i32, %c0_i32_0, %c0_i32_1, %c0_i32_2 : i32, i32, i32, i32
  }
  func.func @transform_4(%arg0: i32) -> (i32, i32, i32) {
    %c0_i32 = arith.constant 0 : i32
    %c0_i32_0 = arith.constant 0 : i32
    %c0_i32_1 = arith.constant 0 : i32
    %c0_i32_2 = arith.constant 0 : i32
    return %c0_i32, %c0_i32_0, %c0_i32_1 : i32, i32, i32
  }
  func.func @transform_5(%arg0: i32) -> (i32, i32, i32) {
    %c0_i32 = arith.constant 0 : i32
    %c0_i32_0 = arith.constant 0 : i32
    %c0_i32_1 = arith.constant 0 : i32
    %c0_i32_2 = arith.constant 0 : i32
    return %c0_i32, %c0_i32_0, %c0_i32_1 : i32, i32, i32
  }
  func.func @transform_6(%arg0: i32) -> (i32, i32, i32) {
    %c0_i32 = arith.constant 0 : i32
    %c0_i32_0 = arith.constant 0 : i32
    %c0_i32_1 = arith.constant 0 : i32
    %c0_i32_2 = arith.constant 0 : i32
    return %c0_i32, %c0_i32_0, %c0_i32_1 : i32, i32, i32
  }
  func.func @transform_7(%arg0: i32) -> (i32, i32, i32) {
    %c0_i32 = arith.constant 0 : i32
    %c0_i32_0 = arith.constant 0 : i32
    %c0_i32_1 = arith.constant 0 : i32
    %c0_i32_2 = arith.constant 0 : i32
    return %c0_i32, %c0_i32_0, %c0_i32_1 : i32, i32, i32
  }
  func.func @transform_8(%arg0: i32) -> (i32, i32, i32) {
    %c0_i32 = arith.constant 0 : i32
    %c0_i32_0 = arith.constant 0 : i32
    %c0_i32_1 = arith.constant 0 : i32
    %c0_i32_2 = arith.constant 0 : i32
    return %c0_i32, %c0_i32_0, %c0_i32_1 : i32, i32, i32
  }
  func.func @transform_9(%arg0: i32) -> (i32, i32) {
    %c0_i32 = arith.constant 0 : i32
    %c0_i32_0 = arith.constant 0 : i32
    %c0_i32_1 = arith.constant 0 : i32
    return %c0_i32, %c0_i32_0 : i32, i32
  }
  func.func @transform_10(%arg0: i32) -> (i32, i32) {
    %c0_i32 = arith.constant 0 : i32
    %c0_i32_0 = arith.constant 0 : i32
    %c0_i32_1 = arith.constant 0 : i32
    return %c0_i32, %c0_i32_0 : i32, i32
  }
  func.func @transform_11(%arg0: i32) -> (i32, i32, i32) {
    %c0_i32 = arith.constant 0 : i32
    %c0_i32_0 = arith.constant 0 : i32
    %c0_i32_1 = arith.constant 0 : i32
    return %arg0, %c0_i32, %c0_i32_0 : i32, i32, i32
  }
}

</mosaic_0001>

<bundles_post_ra>
// kernel: tpu_custom_call.1
= control target key start
LH: loop header
LB: loop body
LE: loop exit
PB: predicated region body
PF: predicated region fallthrough
CT: control target
= control target key end

     0   :  { %s2452_s0 = inlined_call_operand.hbm [shape: f32[2,8,32], index: 0, kind: input, shape index: {}]   ;;  %s2453_s1 = inlined_call_operand.vmem [shape: f32[2,1,8], index: 1, kind: input, shape index: {}]   ;;  %s2454_s2 = inlined_call_operand.vmem [shape: bf16[2,3,32,32], index: 2, kind: input, shape index: {}]   ;;  %s2455_s3 = inlined_call_operand.hbm [shape: f32[2,3,1,32], index: 3, kind: input, shape index: {}]   ;;  %s2456_s4 = inlined_call_operand.hbm [shape: bf16[2,32,32], index: 4, kind: input, shape index: {}]   ;;  %s2457_s5 = inlined_call_operand.hbm [shape: bf16[2,32,64], index: 5, kind: input, shape index: {}]   ;;  %s2458_s6 = inlined_call_operand.hbm [shape: f32[2,1,64], index: 6, kind: input, shape index: {}]   ;;  %s2459_s7 = inlined_call_operand.vmem [shape: bf16[2,64,32], index: 7, kind: input, shape index: {}]   ;;  %s2460_s8 = inlined_call_operand.vmem [shape: f32[2,6,32], index: 8, kind: input, shape index: {}]   ;;  %s2461_s9 = inlined_call_operand.hbm [shape: bf16[32,32], index: 9, kind: input, shape index: {}]   ;;  %s2462_s10 = inlined_call_operand.vmem [shape: f32[1,32], index: 10, kind: input, shape index: {}]   ;;  %s2463_s11 = inlined_call_operand.hbm [shape: f32[2,1,256], index: 11, kind: output, shape index: {}]  }
   0x1   :  { %2465 = sst [smem:[#allocation19_spill]] %s2455_s3 }
   0x2   :  { %2466 = sst [smem:[#allocation20_spill]] %s2456_s4 }
   0x3   :  { %2467 = sst [smem:[#allocation21_spill]] %s2457_s5 }
   0x4   :  { %2468 = sst [smem:[#allocation22_spill]] %s2458_s6 }
   0x5   :  { %2469 = sst [smem:[#allocation23_spill]] %s2463_s11 }
   0x6   :  { %16 = vsyncpa [#allocation3], 0 }
   0x7   :  { %18 = vsyncpa [#allocation3 + $0x1], 0 }
   0x8   :  { %19 = vsyncpa [#allocation6], 0 }
   0x9   :  { %20 = vsyncpa [#allocation9], 0 }
   0xa   :  { %21 = vsyncpa [#allocation12], 0 }
   0xb   :  { %22 = vsyncpa [#allocation4], 0 }
   0xc   :  { %24 = vsyncpa [#allocation4 + $0x1], 0  ;;  %s2123_s17 = smov 0   ;;  %s2125_s18 = smov 0  }
   0xd   :  { %s2127_s19 = smov 0   ;;  %s2129_s20 = smov 0  }
   0xe LB: > { %s2470_s3 = sld [smem:[#allocation19_spill]]  ;;  %s2147_s24 = sadd.s32 4294967295, %s2046_s20   ;;  %s2046_s20 = sphi %s2129_s20, %s2485_s20   ;;  %s2042_s19 = sphi %s2127_s19, %s2484_s19   ;;  %s2038_s18 = sphi %s2125_s18, %s2483_s18   ;;  %s2034_s17 = sphi %s2123_s17, %s2482_s17  }
   0xf   : > { %p1444_p0 = scmp.ge.s32.totalorder %s2046_s20, 1  ;;  %p51_p1 = scmp.eq.s32.totalorder %s2147_s24, 0 }
  0x10   : > { %p302_p2 = scmp.lt.s32.totalorder %s2046_s20, 3  ;;  %s2048_s26 = smov [#allocation5]  }
  0x11   : > { %s318_s27 = sshll.u32 %s2048_s26, 4  ;;  %s2473_s5 = sld [smem:[#allocation21_spill]]  ;;  %s319_s27 = int_to_ptr.vmem [resolvable:$true] %s318_s27 }
  0x12   : > { %p2152_p3 = pnand %p1444_p0, %p302_p2  ;;  %s2049_s13 = smov 16  }
  0x13   : > { %s2050_s14 = smov 1   ;;  %s2051_s15 = smov [#allocation8]  }
  0x14   : > { %s316_s23 = sshll.u32 %s2470_s3, 4  ;;  %p1677_p4 = pneg %p2152_p3  ;;  %s317_s23 = int_to_ptr.hbm [resolvable:$true] %s316_s23 }
  0x15   : > { %s346_s16 = sshll.u32 %s2051_s15, 4  ;;  %s2474_s4 = sld [smem:[#allocation20_spill]]  ;;  %s347_s16 = int_to_ptr.vmem [resolvable:$true] %s346_s16 }
  0x16   : > { %p2161_p6 = pnand %p1677_p4, %p51_p1  ;;  %s2052_s3 = smov 64  }
  0x17   : > { %s344_s12 = sshll.u32 %s2473_s5, 4  ;;  %s2053_s29 = smov 4   ;;  %s345_s12 = int_to_ptr.hbm [resolvable:$true] %s344_s12 }
  0x18   : > { %1680 = dma.hbm_to_vmem [thread:$0]  (!%p2161_p6), %s317_s23, 96, %s319_s27, [#allocation6], %s2049_s13, %s2049_s13, %s2050_s14  }
  0x19   : > { %1686 = dma.hbm_to_vmem [thread:$0]  (!%p2161_p6), %s345_s12, 512, %s347_s16, [#allocation9], %s2052_s3, %s2052_s3, %s2053_s29  }
  0x1a   : > { %s2475_s6 = sld [smem:[#allocation22_spill]]  ;;  %s2054_s23 = smov [#allocation7]  }
  0x1b   : > { %s330_s26 = sshll.u32 %s2474_s4, 4  ;;  %s332_s27 = sshll.u32 %s2054_s23, 4  ;;  %s331_s26 = int_to_ptr.hbm [resolvable:$true] %s330_s26  ;;  %s333_s27 = int_to_ptr.vmem [resolvable:$true] %s332_s27 }
  0x1c   : > { %1683 = dma.hbm_to_vmem [thread:$0]  (!%p2161_p6), %s331_s26, 512, %s333_s27, [#allocation6], %s2052_s3, %s2052_s3, %s2053_s29  }
  0x1d   : > { %s2055_s15 = smov [#allocation10]   ;;  %s378_s5 = sshll.u32 %s2461_s9, 4  ;;  %s379_s5 = int_to_ptr.hbm [resolvable:$true] %s378_s5 }
  0x1e   : > { %s360_s12 = sshll.u32 %s2055_s15, 4  ;;  %s2056_s22 = smov [#allocation11]   ;;  %s361_s12 = int_to_ptr.vmem [resolvable:$true] %s360_s12 }
  0x1f   : > { %s380_s30 = sshll.u32 %s2056_s22, 4  ;;  %s1443_s26 = sadd.s32 4294967294, %s2046_s20   ;;  %s381_s30 = int_to_ptr.vmem [resolvable:$true] %s380_s30 }
  0x20   : > { %s358_s11 = sshll.u32 %s2475_s6, 4  ;;  %s2189_s23 = sadd.s32 1, %s2046_s20   ;;  %s359_s11 = int_to_ptr.hbm [resolvable:$true] %s358_s11 }
  0x21   : > { %1689 = dma.hbm_to_vmem [thread:$0]  (!%p2161_p6), %s359_s11, 32, %s361_s12, [#allocation9], %s2049_s13, %s2049_s13, %s2050_s14  }
  0x22   : > { %1692 = dma.hbm_to_vmem [thread:$0]  (!%p2161_p6), %s379_s5, 256, %s381_s30, [#allocation12], %s2052_s3, %s2052_s3, %s2053_s29  }
  0x23   : > { %s37_s27 = sadd.s32 1, %s2042_s19  ;;  %s34_s15 = ssub.s32 %s2046_s20, %s2189_s23 }
  0x24   : > { %p44_p7 = scmp.ne.s32.totalorder %s2042_s19, %s2038_s18  ;;  %p35_p8 = scmp.eq.s32.totalorder %s34_s15, 0 }
  0x25   : > { %p45_p9 = scmp.eq.s32.totalorder %s2046_s20, 0  ;;  %p50_p10 = scmp.ne.s32.totalorder %s2038_s18, %s2034_s17 }
  0x26   : > { %p289_p11 = scmp.eq.s32.totalorder %s2147_s24, 1  ;;  %p295_p0 = scmp.eq.s32.totalorder %s1443_s26, 1 }
  0x27   : > { %s2201_s11 = scalar_select %p35_p8, %s2042_s19, %s37_s27  }
  0x28   : > { %p2205_p12 = por %p51_p1, %p50_p10  ;;  %p2209_p13 = por %p289_p11, %p44_p7 }
  0x29   : > { %p46_p2 = por %p45_p9, %p44_p7  ;;  %s397_s13 = sand.u32 1, %s2042_s19  }
  0x2a   : > { %p2214_p4 = por %p295_p0, %p50_p10  ;;  %p1706_p6 = scmp.lt.s32.totalorder %s2046_s20, 2 }
  0x2b   : > { %s1451_s29 = sshll.u32 %s397_s13, 3  ;;  %s1452_s12 = sshll.u32 %s2046_s20, 3 }
  0x2c   : > { %s405_s5 = scalar_lea.hbm %s2452_s0, %s1452_s12  ;;  %s401_s30 = scalar_lea.vmem [#allocation2], %s1451_s29 }
  0x2d   : > { %s407_s22 = sshll.u32 %s405_s5, 4  ;;  %s409_s27 = sshll.u32 %s401_s30, 4  ;;  %s408_s22 = int_to_ptr.hbm [resolvable:$true] %s407_s22  ;;  %s410_s27 = int_to_ptr.vmem [resolvable:$true] %s409_s27 }
  0x2e   : > { %p2223_p8 = pnand %p1706_p6, %p46_p2  ;;  %s398_s15 = scalar_lea.sflag [#allocation3], %s397_s13 }
  0x2f   : > { %s1938_s4 = sshra.s32 %s408_s22, 4  ;;  %s1945_s29 = scalar_lea.hbm %s2452_s0, 16  ;;  %s1939_s4 = int_to_ptr.hbm [resolvable:$true] %s1938_s4 }
  0x30   : > { %s1940_s6 = scalar_lea.hbm %s1939_s4, 8  ;;  %p1942_p9 = pneg %p2223_p8 }
  0x31   : > { %p1941_p7 = scmp.ne.s32.totalorder %s1939_s4, %s1940_s6  ;;  %p1946_p0 = scmp.lt.s32.totalorder %s1939_s4, %s2452_s0 }
  0x32   : > { %p1947_p2 = scmp.lt.s32.totalorder %s1945_s29, %s1940_s6 }
  0x33   : > { %p1943_p10 = pnand %p1942_p9, %p1941_p7 }
  0x34   : > { %p1948_p6 = por %p1947_p2, %p1946_p0 }
  0x35   : > { %p1944_p11 = pneg %p1943_p10 }
  0x37   : > { %p1949_p5 = pnand %p1948_p6, %p1944_p11 }
  0x39   : > { %1952 = shalt.err (!%p1949_p5)
}
  0x3a   : > { %1696 = dma.hbm_to_vmem [thread:$0]  (!%p2223_p8), %s408_s22, 128, %s410_s27, %s398_s15  }
  0x3b   : > { %424 = sbr.rel (%p2152_p3) target bundleno = 3435 (0xd6b), region = 64  ;;  %s2240_s13 = sand.u32 (!%p2152_p3), 1, %s2038_s18  }
  0x3c   : > { %s1454_s30 = sshll.u32 (!%p2152_p3), %s2240_s13, 3  ;;  %s427_s12 = scalar_lea.sflag (!%p2152_p3), [#allocation3], %s2240_s13 }
  0x3d   : > { %s430_s16 = scalar_lea.vmem (!%p2152_p3), [#allocation2], %s1454_s30 }
  0x40   : > { %2013 = dma.done.wait (%p2205_p12), %s427_s12, 128  }
  0x41   : > { %2015 = vsyncadd (%p2205_p12), %s427_s12, 4294967168 }
  0x42   : > { %2017 = dma.done.wait (%p51_p1), [#allocation6], 608  }
  0x43   : > { %2019 = vsyncadd (%p51_p1), [#allocation6], 4294966688 }
  0x44   : > { %2021 = dma.done.wait (%p51_p1), [#allocation9], 544  }
  0x45   : > { %2023 = vsyncadd (%p51_p1), [#allocation9], 4294966752 }
  0x46   : > { %2025 = dma.done.wait (%p51_p1), [#allocation12], 256  }
  0x47   : > { %2027 = vsyncadd (%p51_p1), [#allocation12], 4294967040  ;;  %v1624_v0 = vld [vmem:[%s2454_s2 + $0x8] sm:$0xff]  ;;  %v1626_v1 = vld [vmem:[%s2454_s2 + $0x18] sm:$0xff]  ;;  %vm537_vm0 = vcmask 261120   ;;  %p498_p1 = scmp.lt.s32.totalorder %s2147_s24, 1 }
  0x48   : > { %v1623_v2 = vld [vmem:[%s2454_s2] sm:$0xff]  ;;  %v1625_v3 = vld [vmem:[%s2454_s2 + $0x10] sm:$0xff]  ;;  %547 = vmatpush.bf16.msra.mxu0 %v1624_v0  ;;  %575 = vmatpush.bf16.msra.mxu1 %v1626_v1  ;;  %v1628_v17 = vld [vmem:[%s2454_s2 + $0x28] sm:$0xff]  ;;  %vm636_vm1 = vcmask 64512   ;;  %vm653_vm2 = vcmask 1043456   ;;  %v2057_v54 = vmov 32.0  }
  0x49   : > { %v2272_v4 = vld [vmem:[%s430_s16] sm:$0xff]  ;;  %v1762_v6 = vld [vmem:[#allocation5 + $0x1] ss:$0 sm:$0xff]  ;;  %v1761_v9 = vld [vmem:[#allocation5] ss:$0 sm:$0xff]  ;;  %603 = vmatpush.bf16.msra.mxu2 %v1628_v17  ;;  %s499_s12 = scalar_select %p498_p1, %s2147_s24, 1 }
  0x4a   : > { %v521_v5 = vpack.c.bf16 %v2272_v4, %v2272_v4  ;;  %v1627_v18 = vld [vmem:[%s2454_s2 + $0x20] sm:$0xff]  ;;  %v1763_v34 = vld [vmem:[#allocation5 + $0x2] ss:$0 sm:$0xff]  ;;  %v1629_v43 = vld [vmem:[#allocation7] sm:$0xff]  ;;  %vm810_vm7 = vcmask 523264   ;;  %s2061_s29 = smov 64  }
  0x4b   : > { %s2292_s6 = scalar_lea.vmem %s2453_s1, %s499_s12  ;;  %v1630_v38 = vld [vmem:[#allocation7 + $0x8] sm:$0xff]  ;;  %s2062_s21 = smov 96  }
  0x4c   : > { %548 = vmatpush.bf16.msra.mxu0 %v1623_v2  ;;  %576 = vmatpush.bf16.msra.mxu1 %v1625_v3  ;;  %v503_v19 = vld [vmem:[%s2292_s6] sm:$0x1]  ;;  %v1631_v3 = vld [vmem:[#allocation8] sm:$0xff]  ;;  %s1460_s5 = sshll.u32 %s2240_s13, 1  ;;  %s1620_s30 = sshll.u32 %s2147_s24, 1 }
  0x4d   : > { %604 = vmatpush.bf16.msra.mxu2 %v1627_v18  ;;  %v2295_v20 = vmul.f32 -1e+09, %v503_v19  ;;  %v2308_v47 = vld [vmem:[%s2460_s8] sm:$0x3f]  ;;  %s2480_s28 = sld [smem:[#allocation23_spill]]  ;;  %s497_s27 = scalar_lea.vmem [#allocation13], %s1460_s5 }
  0x4e   : > { %v675_v48 = vperm.slane %v2308_v47, 0  ;;  %v1632_v2 = vld [vmem:[#allocation8 + $0x8] sm:$0xff]  ;;  %v736_v18 = vperm.slane %v2308_v47, 3  ;;  %s1313_s26 = sshll.u32 %s497_s27, 4  ;;  %s1301_s24 = scalar_lea.sflag [#allocation4], %s2240_s13  ;;  %s1314_s26 = int_to_ptr.vmem [resolvable:$true] %s1313_s26 }
  0x4f   : > { %1469 = vmatmul.msk.bf16.vlgmr.msra.gmra.mxu0 %vm537_vm0, %v521_v5  ;;  %1478 = vmatmul.msk.bf16.vlgmr.msra.gmra.mxu1 %vm537_vm0, %v521_v5  ;;  %v633_v21 = vperm.slane %v2295_v20, 0 }
  0x50   : > { %1487 = vmatmul.msk.bf16.vlgmr.msra.gmra.mxu2 %vm537_vm0, %v521_v5  ;;  %697 = vmatpush.bf16.msrb.mxu1 %v1630_v38 }
  0x51   : > { %768 = vmatpush.bf16.msrb.mxu2 %v1632_v2 }
  0x53   : > { %s1311_s22 = scalar_lea.hbm %s2480_s28, %s1620_s30  ;;  %s1988_s30 = scalar_lea.hbm %s2480_s28, 4 }
  0x54   : > { %698 = vmatpush.bf16.msrb.mxu1 %v1629_v43  ;;  %v1638_v43 = vld [vmem:[%s2454_s2 + $0x38] sm:$0xff]  ;;  %s1315_s15 = sshll.u32 %s1311_s22, 4  ;;  %s1316_s15 = int_to_ptr.hbm [resolvable:$true] %s1315_s15 }
  0x55   : > { %769 = vmatpush.bf16.msrb.mxu2 %v1631_v3  ;;  %v1766_v3 = vld [vmem:[#allocation5 + $0x4] ss:$0 sm:$0xff] }
  0xcc   : > { %v550_v7 = vpop.f32.mrf.mxu0  ;;  %v578_v8 = vpop.f32.mrf.mxu1 }
  0xcd   : > { %v579_v10 = vadd.f32 %v1762_v6, %v578_v8  ;;  %v551_v12 = vadd.f32 %v1761_v9, %v550_v7  ;;  %v1635_v7 = vld [vmem:[%s2459_s7 + $0x10] sm:$0xff] }
  0xcf   : > { %v611_v11 = vpack.c.bf16 %v579_v10, %v579_v10  ;;  %v610_v16 = vpack.c.bf16 %v551_v12, %v551_v12 }
  0xd1   : > { %v616_v13 = vsel %vm537_vm0, %v611_v11, 0 }
  0xd2   : > { %625 = vmatpush.bf16.xpose.msra.mxu3 %v616_v13 }
  0xd3   : > { %v606_v27 = vpop.f32.mrf.mxu2 }
  0xd4   : > { %v552_v14 = vpop.f32.mrf.mxu0  ;;  %v580_v15 = vpop.f32.mrf.mxu1  ;;  %v607_v35 = vadd.f32 %v1763_v34, %v606_v27 }
  0xd5   : > { %v734_v15 = vperm.slane %v2308_v47, 2 }
  0xd6   : > { %v649_v36 = vpack.c.bf16 %v607_v35, %v607_v35 }
  0xd8   : > { %v655_v37 = vsel %vm653_vm2, %v649_v36, 0 }
  0xd9   : > { %1488 = vmatmul.msk.bf16.vlgmr.msra.gmra.mxu3 %vm537_vm0, %v610_v16  ;;  %664 = vmatpush.bf16.msrb.mxu0 %v655_v37 }
  0xdb   : > { %v608_v31 = vpop.f32.mrf.mxu2 }
  0xdd   : > { %898 = vmatpush.bf16.msra.mxu0 %v1638_v43 }
 0x15c   : > { %v627_v22 = vpop.f32.mrf.mxu3 }
 0x15d   : > { %v631_v23 = vmul.f32 0.17677669, %v627_v22 }
 0x15f   : > { %v635_v24 = vadd.f32 %v633_v21, %v631_v23 }
 0x161   : > { %v637_v25 = vsel %vm636_vm1, %v635_v24, -inf }
 0x162   : > { %638 = vmax.xlane.f32.xlu0 %v637_v25  ;;  %v1633_v25 = vld [vmem:[%s2459_s7] sm:$0xff] }
 0x164   : > { %v629_v26 = vpop.f32.mrf.mxu3 }
 0x165   : > { %v1764_v26 = vld [vmem:[#allocation10] ss:$0 sm:$0xff] }
 0x1d5   : > { %v639_v28 = vpop.xlane.xlu0 %638 }
 0x1d6   : > { %v640_v29 = vsub.f32 %v635_v24, %v639_v28  ;;  %v1634_v24 = vld [vmem:[%s2459_s7 + $0x8] sm:$0xff] }
 0x1d8   : > { %v641_v30 = vmul.f32 1.442695, %v640_v29 }
 0x1da   : > { %1770 = vpow2.f32 %v641_v30 }
 0x1e0   : > { %v1771_v32 = vpop.eup %1770 }
 0x1e1   : > { %v643_v33 = vsel %vm636_vm1, %v1771_v32, 0.0 }
 0x1e2   : > { %644 = vadd.xlane.f32.xlu0 %v643_v33 }
 0x255   : > { %v645_v39 = vpop.xlane.xlu0 %644 }
 0x256   : > { %1772 = vrcp.f32 %v645_v39 }
 0x257   : > { %1774 = vrcp.f32 %v2057_v54 }
 0x25c   : > { %v1773_v40 = vpop.eup %1772 }
 0x25d   : > { %v647_v41 = vmul.f32 %v1773_v40, %v1771_v32  ;;  %v1775_v55 = vpop.eup %1774  ;;  %v785_v32 = vperm.slane %v2308_v47, 1 }
 0x25e   : > { %v709_v56 = vmul.f32 32.0, %v1775_v55  ;;  %vm713_vm3 = vweird.f32 %v1775_v55 }
 0x25f   : > { %v648_v42 = vpack.c.bf16 %v647_v41, %v647_v41 }
 0x260   : > { %v710_v57 = vsub.f32 1.0, %v709_v56 }
 0x261   : > { %1489 = vmatmul.msk.bf16.vlgmr.msrb.gmra.mxu0 %vm636_vm1, %v648_v42 }
 0x262   : > { %v711_v58 = vmul.f32 %v1775_v55, %v710_v57 }
 0x264   : > { %v712_v59 = vadd.f32 %v1775_v55, %v711_v58 }
 0x266   : > { %v2313_v60 = vsel %vm713_vm3, %v1775_v55, %v712_v59  ;;  %v850_v59 = vperm.slane %v2308_v47, 4  ;;  %vm1213_vm3 = vcmask 1047556  }
 0x2de   : > { %v666_v44 = vpop.f32.mrf.mxu0 }
 0x2df   : > { %v670_v45 = vpack.c.bf16 %v666_v44, %v666_v44  ;;  %v1640_v44 = vld [vmem:[%s2454_s2 + $0x48] sm:$0xff] }
 0x2e0   : > { %926 = vmatpush.bf16.msra.mxu1 %v1640_v44 }
 0x2e1   : > { %1498 = vmatmul.msk.bf16.vlgmr.msrb.gmra.mxu1 %vm537_vm0, %v670_v45  ;;  %v1642_v45 = vld [vmem:[%s2454_s2 + $0x58] sm:$0xff] }
 0x2e2   : > { %954 = vmatpush.bf16.msra.mxu2 %v1642_v45 }
 0x2e6   : > { %v668_v46 = vpop.f32.mrf.mxu0 }
 0x2e7   : > { %v1637_v46 = vld [vmem:[%s2454_s2 + $0x30] sm:$0xff] }
 0x2e8   : > { %899 = vmatpush.bf16.msra.mxu0 %v1637_v46 }
 0x35e   : > { %v700_v49 = vpop.f32.mrf.mxu1 }
 0x35f   : > { %v701_v50 = vadd.f32 %v700_v49, %v675_v48  ;;  %v1639_v48 = vld [vmem:[%s2454_s2 + $0x40] sm:$0xff]  ;;  %v1641_v49 = vld [vmem:[%s2454_s2 + $0x50] sm:$0xff] }
 0x360   : > { %927 = vmatpush.bf16.msra.mxu1 %v1639_v48  ;;  %955 = vmatpush.bf16.msra.mxu2 %v1641_v49 }
 0x361   : > { %v704_v51 = vadd.f32 %v701_v50, %v2272_v4  ;;  %v1636_v4 = vld [vmem:[%s2459_s7 + $0x18] sm:$0xff] }
 0x362   : > { %818 = vmatpush.bf16.msrb.mxu3 %v1636_v4 }
 0x363   : > { %v705_v52 = vsel %vm537_vm0, %v704_v51, 0.0 }
 0x364   : > { %706 = vadd.xlane.f32.xlu1 %v705_v52 }
 0x366   : > { %v702_v53 = vpop.f32.mrf.mxu1  ;;  %819 = vmatpush.bf16.msrb.mxu3 %v1635_v7  ;;  %v1765_v7 = vld [vmem:[#allocation5 + $0x3] ss:$0 sm:$0xff] }
 0x36a   : > { %820 = vmatpush.bf16.msrb.mxu3 %v1634_v24 }
 0x36e   : > { %821 = vmatpush.bf16.msrb.mxu3 %v1633_v25 }
 0x3d7   : > { %v707_v61 = vpop.xlane.xlu1 %706 }
 0x3d8   : > { %v715_v62 = vmul.f32 %v2313_v60, %v707_v61 }
 0x3da   : > { %v716_v63 = vsub.f32 %v704_v51, %v715_v62  ;;  %v852_v62 = vperm.slane %v2308_v47, 5 }
 0x3dc   : > { %v717_v0 = vmul.f32 %v716_v63, %v716_v63 }
 0x3de   : > { %v718_v1 = vsel %vm537_vm0, %v717_v0, 0.0 }
 0x3df   : > { %719 = vadd.xlane.f32.xlu1 %v718_v1 }
 0x452   : > { %v720_v5 = vpop.xlane.xlu1 %719 }
 0x453   : > { %v721_v6 = vmul.f32 %v720_v5, %v2313_v60 }
 0x455   : > { %v722_v8 = vadd.f32 1e-05, %v721_v6 }
 0x457   : > { %1776 = vrsqrt.f32 %v722_v8  ;;  %vm729_vm5 = vweird.f32 %v722_v8 }
 0x45d   : > { %v1777_v9 = vpop.eup %1776 }
 0x45e   : > { %v724_v10 = vmul.f32 %v1777_v9, %v722_v8  ;;  %vm730_vm4 = vweird.f32 %v1777_v9 }
 0x45f   : > { %vm731_vm6 = vmor %vm729_vm5, %vm730_vm4  ;;  %vm1241_vm4 = vcmask 785408   ;;  %vm1292_vm5 = vcmask 1040384  }
 0x460   : > { %v725_v11 = vmul.f32 %v1777_v9, %v724_v10 }
 0x462   : > { %v726_v12 = vmul.f32 0.5, %v725_v11 }
 0x464   : > { %v727_v13 = vsub.f32 1.5, %v726_v12 }
 0x466   : > { %v728_v14 = vmul.f32 %v1777_v9, %v727_v13 }
 0x468   : > { %v732_v16 = vsel %vm731_vm6, %v1777_v9, %v728_v14  ;;  %v1767_v9 = vld [vmem:[#allocation5 + $0x5] ss:$0 sm:$0xff] }
 0x469   : > { %v733_v17 = vmul.f32 %v732_v16, %v716_v63 }
 0x46b   : > { %v735_v19 = vmul.f32 %v734_v15, %v733_v17 }
 0x46d   : > { %v737_v22 = vadd.f32 %v736_v18, %v735_v19 }
 0x46f   : > { %v738_v23 = vpack.c.bf16 %v737_v22, %v737_v22 }
 0x471   : > { %1507 = vmatmul.msk.bf16.vlgmr.msrb.gmra.mxu2 %vm537_vm0, %v738_v23 }
 0x4f4   : > { %v771_v27 = vpop.f32.mrf.mxu2 }
 0x4f5   : > { %v772_v28 = vadd.f32 %v1764_v26, %v771_v27 }
 0x4f7   : > { %v775_v29 = vmax.f32 %v772_v28, 0.0 }
 0x4f9   : > { %v776_v30 = vpack.c.bf16 %v775_v29, %v775_v29 }
 0x4fb   : > { %1524 = vmatmul.msk.bf16.vlgmr.msrb.gmra.mxu3 %vm810_vm7, %v776_v30 }
 0x4fc   : > { %v773_v31 = vpop.f32.mrf.mxu2 }
 0x4fd   : > { %v1644_v31 = vld [vmem:[#allocation7 + $0x18] sm:$0xff] }
 0x4fe   : > { %1044 = vmatpush.bf16.msrb.mxu1 %v1644_v31 }
 0x57e   : > { %v823_v33 = vpop.f32.mrf.mxu3 }
 0x57f   : > { %v824_v34 = vadd.f32 %v823_v33, %v785_v32 }
 0x581   : > { %v827_v35 = vadd.f32 %v824_v34, %v737_v22 }
 0x583   : > { %v828_v36 = vsel %vm537_vm0, %v827_v35, 0.0 }
 0x584   : > { %829 = vadd.xlane.f32.xlu2 %v828_v36 }
 0x586   : > { %v825_v37 = vpop.f32.mrf.mxu3 }
 0x5f7   : > { %v830_v38 = vpop.xlane.xlu2 %829 }
 0x5f8   : > { %v831_v39 = vmul.f32 %v830_v38, %v2313_v60  ;;  %v2374_v38 = vld [vmem:[%s2460_s8 + $0x8] sm:$0x3f] }
 0x5fa   : > { %v832_v40 = vsub.f32 %v827_v35, %v831_v39  ;;  %v1022_v39 = vperm.slane %v2374_v38, 0 }
 0x5fc   : > { %v833_v41 = vmul.f32 %v832_v40, %v832_v40 }
 0x5fe   : > { %v834_v42 = vsel %vm537_vm0, %v833_v41, 0.0 }
 0x5ff   : > { %835 = vadd.xlane.f32.xlu2 %v834_v42 }
 0x672   : > { %v836_v50 = vpop.xlane.xlu2 %835 }
 0x673   : > { %v837_v51 = vmul.f32 %v836_v50, %v2313_v60 }
 0x675   : > { %v838_v52 = vadd.f32 1e-05, %v837_v51  ;;  %v1646_v51 = vld [vmem:[#allocation8 + $0x18] sm:$0xff] }
 0x676   : > { %1110 = vmatpush.bf16.msrb.mxu2 %v1646_v51  ;;  %v2059_v51 = vmov 1934713408  }
 0x677   : > { %1778 = vrsqrt.f32 %v838_v52  ;;  %vm845_vm9 = vweird.f32 %v838_v52 }
 0x67d   : > { %v1779_v53 = vpop.eup %1778 }
 0x67e   : > { %v840_v54 = vmul.f32 %v1779_v53, %v838_v52  ;;  %vm846_vm8 = vweird.f32 %v1779_v53  ;;  %v1645_v52 = vld [vmem:[#allocation8 + $0x10] sm:$0xff] }
 0x67f   : > { %vm847_vm10 = vmor %vm845_vm9, %vm846_vm8  ;;  %1111 = vmatpush.bf16.msrb.mxu2 %v1645_v52  ;;  %v1216_v52 = vunpack.c.l.s4 %v2059_v51 }
 0x680   : > { %v841_v55 = vmul.f32 %v1779_v53, %v840_v54 }
 0x682   : > { %v842_v56 = vmul.f32 0.5, %v841_v55 }
 0x684   : > { %v843_v57 = vsub.f32 1.5, %v842_v56  ;;  %v1649_v56 = vld [vmem:[%s2459_s7 + $0x30] sm:$0xff] }
 0x686   : > { %v844_v58 = vmul.f32 %v1779_v53, %v843_v57 }
 0x688   : > { %v848_v61 = vsel %vm847_vm10, %v1779_v53, %v844_v58  ;;  %v1650_v53 = vld [vmem:[%s2459_s7 + $0x38] sm:$0xff] }
 0x689   : > { %v849_v63 = vmul.f32 %v848_v61, %v832_v40 }
 0x68b   : > { %v851_v0 = vmul.f32 %v850_v59, %v849_v63 }
 0x68d   : > { %v853_v1 = vadd.f32 %v852_v62, %v851_v0 }
 0x68f   : > { %v873_v2 = vpack.c.bf16 %v853_v1, %v853_v1 }
 0x691   : > { %1546 = vmatmul.msk.bf16.vlgmr.msra.gmra.mxu0 %vm537_vm0, %v873_v2  ;;  %1555 = vmatmul.msk.bf16.vlgmr.msra.gmra.mxu1 %vm537_vm0, %v873_v2 }
 0x692   : > { %1564 = vmatmul.msk.bf16.vlgmr.msra.gmra.mxu2 %vm537_vm0, %v873_v2 }
 0x70e   : > { %v901_v4 = vpop.f32.mrf.mxu0  ;;  %v929_v5 = vpop.f32.mrf.mxu1 }
 0x70f   : > { %v930_v6 = vadd.f32 %v1766_v3, %v929_v5  ;;  %v902_v47 = vadd.f32 %v1765_v7, %v901_v4  ;;  %v1076_v3 = vperm.slane %v2374_v38, 3 }
 0x711   : > { %v962_v8 = vpack.c.bf16 %v930_v6, %v930_v6  ;;  %v961_v16 = vpack.c.bf16 %v902_v47, %v902_v47 }
 0x713   : > { %v967_v10 = vsel %vm537_vm0, %v962_v8, 0  ;;  %v1648_v8 = vld [vmem:[%s2459_s7 + $0x28] sm:$0xff] }
 0x714   : > { %976 = vmatpush.bf16.xpose.msra.mxu3 %v967_v10  ;;  %v1768_v10 = vld [vmem:[#allocation10 + $0x1] ss:$0 sm:$0xff] }
 0x715   : > { %v957_v11 = vpop.f32.mrf.mxu2 }
 0x716   : > { %v958_v12 = vadd.f32 %v1767_v9, %v957_v11  ;;  %v903_v13 = vpop.f32.mrf.mxu0  ;;  %v931_v14 = vpop.f32.mrf.mxu1  ;;  %v1647_v9 = vld [vmem:[%s2459_s7 + $0x20] sm:$0xff] }
 0x718   : > { %v996_v15 = vpack.c.bf16 %v958_v12, %v958_v12 }
 0x71a   : > { %v1001_v17 = vsel %vm653_vm2, %v996_v15, 0  ;;  %v1128_v15 = vperm.slane %v2374_v38, 1 }
 0x71b   : > { %1010 = vmatpush.bf16.msrb.mxu0 %v1001_v17  ;;  %1565 = vmatmul.msk.bf16.vlgmr.msra.gmra.mxu3 %vm537_vm0, %v961_v16 }
 0x71c   : > { %1160 = vmatpush.bf16.msrb.mxu3 %v1650_v53 }
 0x71d   : > { %v959_v18 = vpop.f32.mrf.mxu2 }
 0x720   : > { %1161 = vmatpush.bf16.msrb.mxu3 %v1649_v56 }
 0x724   : > { %1162 = vmatpush.bf16.msrb.mxu3 %v1648_v8 }
 0x728   : > { %1163 = vmatpush.bf16.msrb.mxu3 %v1647_v9 }
 0x79e   : > { %v978_v19 = vpop.f32.mrf.mxu3 }
 0x79f   : > { %v982_v22 = vmul.f32 0.17677669, %v978_v19 }
 0x7a1   : > { %v983_v23 = vadd.f32 %v982_v22, %v633_v21  ;;  %v1643_v21 = vld [vmem:[#allocation7 + $0x10] sm:$0xff] }
 0x7a2   : > { %1045 = vmatpush.bf16.msrb.mxu1 %v1643_v21  ;;  %v1651_v21 = vld [vmem:[#allocation11] sm:$0xff] }
 0x7a3   : > { %v984_v24 = vsel %vm636_vm1, %v983_v23, -inf }
 0x7a4   : > { %985 = vmax.xlane.f32.xlu0 %v984_v24 }
 0x7a6   : > { %v980_v25 = vpop.f32.mrf.mxu3 }
 0x7a7   : > { %v1769_v25 = vld [vmem:[%s2292_s6] ss:$0 sm:$0xff]  ;;  %s2060_s6 = smov 32  }
 0x817   : > { %v986_v26 = vpop.xlane.xlu0 %985 }
 0x818   : > { %v987_v27 = vsub.f32 %v983_v23, %v986_v26  ;;  %v1197_v23 = vlaneseq }
 0x81a   : > { %v988_v28 = vmul.f32 1.442695, %v987_v27  ;;  %v1198_v24 = vshrl.u32 %v1197_v23, 7  ;;  %vm1297_vm6 = vcmp.lt.s32.totalorder %v1197_v23, 256 }
 0x81c   : > { %1780 = vpow2.f32 %v988_v28  ;;  %1760 = vset.pattern.permute.xlu0 %v1198_v24 }
 0x822   : > { %v1781_v29 = vpop.eup %1780 }
 0x823   : > { %v990_v30 = vsel %vm636_vm1, %v1781_v29, 0.0 }
 0x824   : > { %991 = vadd.xlane.f32.xlu1 %v990_v30 }
 0x897   : > { %v992_v32 = vpop.xlane.xlu1 %991 }
 0x898   : > { %1782 = vrcp.f32 %v992_v32 }
 0x89e   : > { %v1783_v33 = vpop.eup %1782 }
 0x89f   : > { %v994_v34 = vmul.f32 %v1783_v33, %v1781_v29 }
 0x8a1   : > { %v995_v20 = vpack.c.bf16 %v994_v34, %v994_v34  ;;  %v1652_v34 = vld [vmem:[#allocation11 + $0x8] sm:$0xff] }
 0x8a2   : > { %1281 = vmatpush.bf16.msra.mxu0 %v1652_v34 }
 0x8a3   : > { %1566 = vmatmul.msk.bf16.vlgmr.msrb.gmra.mxu0 %vm636_vm1, %v995_v20 }
 0x8a6   : > { %1282 = vmatpush.bf16.msra.mxu0 %v1651_v21 }
 0x920   : > { %v1012_v35 = vpop.f32.mrf.mxu0 }
 0x921   : > { %v1016_v36 = vpack.c.bf16 %v1012_v35, %v1012_v35 }
 0x923   : > { %1575 = vmatmul.msk.bf16.vlgmr.msrb.gmra.mxu1 %vm537_vm0, %v1016_v36 }
 0x928   : > { %v1014_v37 = vpop.f32.mrf.mxu0 }
 0x9a0   : > { %v1047_v40 = vpop.f32.mrf.mxu1 }
 0x9a1   : > { %v1048_v41 = vadd.f32 %v1047_v40, %v1022_v39 }
 0x9a3   : > { %v1051_v42 = vadd.f32 %v1048_v41, %v853_v1  ;;  %v1074_v1 = vperm.slane %v2374_v38, 2  ;;  %v1192_v41 = vperm.slane %v2374_v38, 4 }
 0x9a5   : > { %v1052_v43 = vsel %vm537_vm0, %v1051_v42, 0.0 }
 0x9a6   : > { %1053 = vadd.xlane.f32.xlu2 %v1052_v43 }
 0x9a8   : > { %v1049_v44 = vpop.f32.mrf.mxu1 }
 0xa19   : > { %v1054_v45 = vpop.xlane.xlu2 %1053 }
 0xa1a   : > { %v1055_v46 = vmul.f32 %v1054_v45, %v2313_v60  ;;  %v2058_v45 = vmov 1983009808  }
 0xa1c   : > { %v1056_v48 = vsub.f32 %v1051_v42, %v1055_v46  ;;  %v1209_v46 = vunpack.c.l.s4 %v2058_v45 }
 0xa1e   : > { %v1057_v49 = vmul.f32 %v1056_v48, %v1056_v48  ;;  %v1210_v53 = vunpack.c.0.s8 %v1209_v46 }
 0xa20   : > { %v1058_v50 = vsel %vm537_vm0, %v1057_v49, 0.0 }
 0xa21   : > { %1059 = vadd.xlane.f32.xlu0 %v1058_v50 }
 0xa35   : > { %1201 = vperm.xlu0 %1760, %v1769_v25  }
 0xa94   : > { %v1060_v54 = vpop.xlane.xlu0 %1059 }
 0xa95   : > { %v1061_v55 = vmul.f32 %v1060_v54, %v2313_v60 }
 0xa97   : > { %v1062_v57 = vadd.f32 1e-05, %v1061_v55 }
 0xa99   : > { %1784 = vrsqrt.f32 %v1062_v57  ;;  %vm1069_vm12 = vweird.f32 %v1062_v57 }
 0xa9f   : > { %v1785_v58 = vpop.eup %1784 }
 0xaa0   : > { %v1064_v59 = vmul.f32 %v1785_v58, %v1062_v57  ;;  %vm1070_vm11 = vweird.f32 %v1785_v58  ;;  %v1217_v57 = vunpack.c.0.s8 %v1216_v52 }
 0xaa1   : > { %vm1071_vm13 = vmor %vm1069_vm12, %vm1070_vm11 }
 0xaa2   : > { %v1065_v61 = vmul.f32 %v1785_v58, %v1064_v59 }
 0xaa4   : > { %v1066_v62 = vmul.f32 0.5, %v1065_v61 }
 0xaa6   : > { %v1067_v63 = vsub.f32 1.5, %v1066_v62 }
 0xaa7   : > { %v1202_v43 = vpop.permute.xlu0 %1201 }
 0xaa8   : > { %v1068_v0 = vmul.f32 %v1785_v58, %v1067_v63  ;;  %v1203_v49 = vsub.f32 1.0, %v1202_v43  ;;  %vm1243_vm2 = vcmp.gt.f32.partialorder %v1202_v43, 0.0 }
 0xaaa   : > { %v1072_v2 = vsel %vm1071_vm13, %v1785_v58, %v1068_v0 }
 0xaab   : > { %v1073_v4 = vmul.f32 %v1072_v2, %v1056_v48 }
 0xaad   : > { %v1075_v5 = vmul.f32 %v1074_v1, %v1073_v4 }
 0xaaf   : > { %v1077_v6 = vadd.f32 %v1076_v3, %v1075_v5 }
 0xab1   : > { %v1078_v7 = vpack.c.bf16 %v1077_v6, %v1077_v6 }
 0xab3   : > { %1584 = vmatmul.msk.bf16.vlgmr.msrb.gmra.mxu2 %vm537_vm0, %v1078_v7 }
 0xb36   : > { %v1113_v47 = vpop.f32.mrf.mxu2 }
 0xb37   : > { %v1114_v11 = vadd.f32 %v1768_v10, %v1113_v47 }
 0xb39   : > { %v1117_v12 = vmax.f32 %v1114_v11, 0.0 }
 0xb3b   : > { %v1118_v13 = vpack.c.bf16 %v1117_v12, %v1117_v12  ;;  %v1259_v12 = vld [vmem:[%s2462_s10] sm:$0x1] }
 0xb3d   : > { %1609 = vmatmul.msk.bf16.vlgmr.msrb.gmra.mxu3 %vm810_vm7, %v1118_v13 }
 0xb3e   : > { %v1115_v14 = vpop.f32.mrf.mxu2 }
 0xbc0   : > { %v1165_v16 = vpop.f32.mrf.mxu3 }
 0xbc1   : > { %v1166_v17 = vadd.f32 %v1165_v16, %v1128_v15 }
 0xbc3   : > { %v1169_v18 = vadd.f32 %v1166_v17, %v1077_v6 }
 0xbc5   : > { %v1170_v19 = vsel %vm537_vm0, %v1169_v18, 0.0 }
 0xbc6   : > { %1171 = vadd.xlane.f32.xlu1 %v1170_v19 }
 0xbc8   : > { %v1167_v22 = vpop.f32.mrf.mxu3 }
 0xc39   : > { %v1172_v26 = vpop.xlane.xlu1 %1171 }
 0xc3a   : > { %v1173_v27 = vmul.f32 %v1172_v26, %v2313_v60 }
 0xc3c   : > { %v1174_v28 = vsub.f32 %v1169_v18, %v1173_v27 }
 0xc3e   : > { %v1175_v29 = vmul.f32 %v1174_v28, %v1174_v28 }
 0xc40   : > { %v1176_v30 = vsel %vm537_vm0, %v1175_v29, 0.0 }
 0xc41   : > { %1177 = vadd.xlane.f32.xlu2 %v1176_v30 }
 0xcb4   : > { %v1178_v31 = vpop.xlane.xlu2 %1177 }
 0xcb5   : > { %v1179_v32 = vmul.f32 %v1178_v31, %v2313_v60  ;;  %v1194_v60 = vperm.slane %v2374_v38, 5 }
 0xcb7   : > { %v1180_v33 = vadd.f32 1e-05, %v1179_v32 }
 0xcb9   : > { %1786 = vrsqrt.f32 %v1180_v33  ;;  %vm1187_vm15 = vweird.f32 %v1180_v33 }
 0xcbf   : > { %v1787_v20 = vpop.eup %1786 }
 0xcc0   : > { %v1182_v35 = vmul.f32 %v1787_v20, %v1180_v33  ;;  %vm1188_vm14 = vweird.f32 %v1787_v20 }
 0xcc1   : > { %vm1189_vm1 = vmor %vm1187_vm15, %vm1188_vm14 }
 0xcc2   : > { %v1183_v36 = vmul.f32 %v1787_v20, %v1182_v35 }
 0xcc4   : > { %v1184_v37 = vmul.f32 0.5, %v1183_v36 }
 0xcc6   : > { %v1185_v39 = vsub.f32 1.5, %v1184_v37 }
 0xcc8   : > { %v1186_v40 = vmul.f32 %v1787_v20, %v1185_v39 }
 0xcca   : > { %v1190_v42 = vsel %vm1189_vm1, %v1787_v20, %v1186_v40 }
 0xccb   : > { %v1191_v44 = vmul.f32 %v1190_v42, %v1174_v28 }
 0xccd   : > { %v1193_v48 = vmul.f32 %v1192_v41, %v1191_v44 }
 0xccf   : > { %v1195_v50 = vadd.f32 %v1194_v60, %v1193_v48 }
 0xcd1   : > { %v1204_v54 = vmul.f32 %v1203_v49, %v1195_v50 }
 0xcd3   : > { %v1206_v55 = vrot.slane %v1204_v54, 4  ;;  %v1246_v56 = vsel %vm1243_vm2, -1e+09, %v1204_v54 }
 0xcd4   : > { %v1247_v58 = vsel %vm537_vm0, %v1246_v56, -inf }
 0xcd5   : > { %v1211_v59 = vperm.slane %v1206_v55, %v1210_v53  ;;  %v1248_v61 = vrot.slane %v1247_v58, 4 }
 0xcd7   : > { %v1249_v38 = vmax.f32 %v1247_v58, %v1248_v61  ;;  %v1218_v62 = vperm.slane %v1211_v59, %v1217_v57  ;;  %v1212_v63 = vrot.slane %v1211_v59, 4 }
 0xcd9   : > { %v1250_v0 = vrot.slane %v1249_v38, 2  ;;  %v1223_v1 = vrot.slane %v1218_v62, 4  ;;  %v1214_v2 = vsel %vm1213_vm3, 0.0, %v1212_v63 }
 0xcda   : > { %v1222_v3 = vperm.slane %v1214_v2, %v1217_v57 }
 0xcdb   : > { %v1251_v4 = vmax.f32 %v1249_v38, %v1250_v0  ;;  %v1224_v5 = vsel %vm1213_vm3, 0.0, %v1223_v1 }
 0xcdc   : > { %1228 = vrot.lane.b32.xlu1 %v1224_v5, %s2060_s6  ;;  %1232 = vrot.lane.b32.xlu2 %v1222_v3, %s2061_s29  ;;  %v1225_v8 = vrot.slane %v1222_v3, 4  ;;  %s1982_s6 = sshra.s32 %s1316_s15, 4  ;;  %s1983_s6 = int_to_ptr.hbm [resolvable:$true] %s1982_s6 }
 0xcdd   : > { %v1252_v6 = vrot.slane %v1251_v4, 1  ;;  %s1984_s29 = scalar_lea.hbm %s1983_s6, 2  ;;  %p1989_p8 = scmp.lt.s32.totalorder %s1983_s6, %s2480_s28 }
 0xcde   : > { %v1226_v10 = vsel %vm1213_vm3, 0.0, %v1225_v8  ;;  %p1985_p3 = scmp.ne.s32.totalorder %s1983_s6, %s1984_s29  ;;  %p1990_p7 = scmp.lt.s32.totalorder %s1988_s30, %s1984_s29 }
 0xcdf   : > { %v1253_v7 = vmax.f32 %v1251_v4, %v1252_v6 }
 0xce0   : > { %p1986_p5 = pnand %p1985_p3, %p2209_p13  ;;  %p1991_p9 = por %p1990_p7, %p1989_p8 }
 0xce1   : > { %v1254_v9 = vpack.c.bf16 %v1253_v7, %v1253_v7 }
 0xce2   : > { %p1987_p12 = pneg %p1986_p5 }
 0xce3   : > { %1618 = vmatmul.msk.bf16.vlgmr.msra.gmra.mxu0 %vm537_vm0, %v1254_v9 }
 0xce4   : > { %1236 = vrot.lane.b32.xlu2 %v1226_v10, %s2062_s21  ;;  %p1992_p10 = pnand %p1991_p9, %p1987_p12 }
 0xd36   : > { %v1233_v47 = vpop.permute.xlu2 %1232 }
 0xd3e   : > { %v1237_v18 = vpop.permute.xlu2 %1236 }
 0xd4e   : > { %v1229_v11 = vpop.permute.xlu1 %1228 }
 0xd4f   : > { %v1239_v13 = vsel %vm537_vm0, %v1218_v62, %v1229_v11 }
 0xd50   : > { %v1240_v16 = vsel %vm810_vm7, %v1239_v13, %v1233_v47 }
 0xd51   : > { %v1242_v22 = vsel %vm1241_vm4, %v1240_v16, %v1237_v18 }
 0xd60   : > { %v1284_v14 = vpop.f32.mrf.mxu0 }
 0xd61   : > { %v1285_v15 = vadd.f32 %v1284_v14, %v1259_v12 }
 0xd63   : > { %v1288_v17 = vsel %vm537_vm0, %v1285_v15, 0.0 }
 0xd64   : > { %v1291_v19 = vrot.slane %v1288_v17, 7 }
 0xd66   : > { %v1293_v24 = vsel %vm1292_vm5, %v1242_v22, %v1291_v19 }
 0xd67   : > { %1299 = vst.msk [vmem:[%s497_s27] sm:$0x3] %vm1297_vm6, %v1293_v24 }
 0xd68   : > { %v1286_v25 = vpop.f32.mrf.mxu0 }
 0xd69   : > { %1995 = shalt.err (!%p1992_p10)
}
 0xd6a   : > { %1675 = dma.vmem_to_hbm [thread:$0]  (%p2209_p13), %s1314_s26, 32, %s1316_s15, %s1301_s24  }
 0xd6b PF: > { %s1327_s13 = sand.u32 1, %s2034_s17   ;;  %p2481_p11 = scmp.ge.s32.totalorder %s2046_s20, 2 }
 0xd6c   : > { %s1328_s4 = scalar_lea.sflag [#allocation4], %s1327_s13 }
 0xd6d   : > { %p1698_p0 = pnand %p2481_p11, %p2214_p4 }
 0xd6f   : > { %p1699_p2 = pneg %p1698_p0 }
 0xd71   : > { %2029 = dma.done.wait (%p1699_p2), %s1328_s4, 32  }
 0xd72   : > { %2031 = vsyncadd (%p1699_p2), %s1328_s4, 4294967264  ;;  %p27_p6 = scmp.ge.s32.totalorder %s2189_s23, 4   ;;  %s2482_s17 = smov %s2038_s18 }
 0xd73   : > { %s2483_s18 = smov %s2042_s19  ;;  %s2484_s19 = smov %s2201_s11 }
 0xd74   : > { %s2485_s20 = smov %s2189_s23  ;;  %29 = sbr.rel (!%p27_p6) target bundleno = 14 (0xe), region = 139 }
 0xd79   :  { %1334 = vsyncpa [#allocation3], 1 }
 0xd7a   :  { %1336 = vsyncpa [#allocation3 + $0x1], 1 }
 0xd7b   :  { %1337 = vsyncpa [#allocation6], 1 }
 0xd7c   :  { %1338 = vsyncpa [#allocation9], 1 }
 0xd7d   :  { %1339 = vsyncpa [#allocation12], 1 }
 0xd7e   :  { %1340 = vsyncpa [#allocation4], 1 }
 0xd7f   :  { %1342 = vsyncpa [#allocation4 + $0x1], 1 }

// kernel: tpu_custom_call.1
= control target key start
LH: loop header
LB: loop body
LE: loop exit
PB: predicated region body
PF: predicated region fallthrough
CT: control target
= control target key end

     0   :  { %s2452_s0 = inlined_call_operand.hbm [shape: f32[2,8,32], index: 0, kind: input, shape index: {}]   ;;  %s2453_s1 = inlined_call_operand.vmem [shape: f32[2,1,8], index: 1, kind: input, shape index: {}]   ;;  %s2454_s2 = inlined_call_operand.vmem [shape: bf16[2,3,32,32], index: 2, kind: input, shape index: {}]   ;;  %s2455_s3 = inlined_call_operand.hbm [shape: f32[2,3,1,32], index: 3, kind: input, shape index: {}]   ;;  %s2456_s4 = inlined_call_operand.hbm [shape: bf16[2,32,32], index: 4, kind: input, shape index: {}]   ;;  %s2457_s5 = inlined_call_operand.hbm [shape: bf16[2,32,64], index: 5, kind: input, shape index: {}]   ;;  %s2458_s6 = inlined_call_operand.hbm [shape: f32[2,1,64], index: 6, kind: input, shape index: {}]   ;;  %s2459_s7 = inlined_call_operand.vmem [shape: bf16[2,64,32], index: 7, kind: input, shape index: {}]   ;;  %s2460_s8 = inlined_call_operand.vmem [shape: f32[2,6,32], index: 8, kind: input, shape index: {}]   ;;  %s2461_s9 = inlined_call_operand.hbm [shape: bf16[32,32], index: 9, kind: input, shape index: {}]   ;;  %s2462_s10 = inlined_call_operand.vmem [shape: f32[1,32], index: 10, kind: input, shape index: {}]   ;;  %s2463_s11 = inlined_call_operand.hbm [shape: f32[2,1,256], index: 11, kind: output, shape index: {}]  }
   0x1   :  { %2465 = sst [smem:[#allocation19_spill]] %s2455_s3 }
   0x2   :  { %2466 = sst [smem:[#allocation20_spill]] %s2456_s4 }
   0x3   :  { %2467 = sst [smem:[#allocation21_spill]] %s2457_s5 }
   0x4   :  { %2468 = sst [smem:[#allocation22_spill]] %s2458_s6 }
   0x5   :  { %2469 = sst [smem:[#allocation23_spill]] %s2463_s11 }
   0x6   :  { %16 = vsyncpa [#allocation3], 0 }
   0x7   :  { %18 = vsyncpa [#allocation3 + $0x1], 0 }
   0x8   :  { %19 = vsyncpa [#allocation6], 0 }
   0x9   :  { %20 = vsyncpa [#allocation9], 0 }
   0xa   :  { %21 = vsyncpa [#allocation12], 0 }
   0xb   :  { %22 = vsyncpa [#allocation4], 0 }
   0xc   :  { %24 = vsyncpa [#allocation4 + $0x1], 0  ;;  %s2123_s17 = smov 0   ;;  %s2125_s18 = smov 0  }
   0xd   :  { %s2127_s19 = smov 0   ;;  %s2129_s20 = smov 0  }
   0xe LB: > { %s2470_s3 = sld [smem:[#allocation19_spill]]  ;;  %s2147_s24 = sadd.s32 4294967295, %s2046_s20   ;;  %s2046_s20 = sphi %s2129_s20, %s2485_s20   ;;  %s2042_s19 = sphi %s2127_s19, %s2484_s19   ;;  %s2038_s18 = sphi %s2125_s18, %s2483_s18   ;;  %s2034_s17 = sphi %s2123_s17, %s2482_s17  }
   0xf   : > { %p1444_p0 = scmp.ge.s32.totalorder %s2046_s20, 1  ;;  %p51_p1 = scmp.eq.s32.totalorder %s2147_s24, 0 }
  0x10   : > { %p302_p2 = scmp.lt.s32.totalorder %s2046_s20, 3  ;;  %s2048_s26 = smov [#allocation5]  }
  0x11   : > { %s318_s27 = sshll.u32 %s2048_s26, 4  ;;  %s2473_s5 = sld [smem:[#allocation21_spill]]  ;;  %s319_s27 = int_to_ptr.vmem [resolvable:$true] %s318_s27 }
  0x12   : > { %p2152_p3 = pnand %p1444_p0, %p302_p2  ;;  %s2049_s13 = smov 16  }
  0x13   : > { %s2050_s14 = smov 1   ;;  %s2051_s15 = smov [#allocation8]  }
  0x14   : > { %s316_s23 = sshll.u32 %s2470_s3, 4  ;;  %p1677_p4 = pneg %p2152_p3  ;;  %s317_s23 = int_to_ptr.hbm [resolvable:$true] %s316_s23 }
  0x15   : > { %s346_s16 = sshll.u32 %s2051_s15, 4  ;;  %s2474_s4 = sld [smem:[#allocation20_spill]]  ;;  %s347_s16 = int_to_ptr.vmem [resolvable:$true] %s346_s16 }
  0x16   : > { %p2161_p6 = pnand %p1677_p4, %p51_p1  ;;  %s2052_s3 = smov 64  }
  0x17   : > { %s344_s12 = sshll.u32 %s2473_s5, 4  ;;  %s2053_s29 = smov 4   ;;  %s345_s12 = int_to_ptr.hbm [resolvable:$true] %s344_s12 }
  0x18   : > { %1680 = dma.hbm_to_vmem [thread:$0]  (!%p2161_p6), %s317_s23, 96, %s319_s27, [#allocation6], %s2049_s13, %s2049_s13, %s2050_s14  }
  0x19   : > { %1686 = dma.hbm_to_vmem [thread:$0]  (!%p2161_p6), %s345_s12, 512, %s347_s16, [#allocation9], %s2052_s3, %s2052_s3, %s2053_s29  }
  0x1a   : > { %s2475_s6 = sld [smem:[#allocation22_spill]]  ;;  %s2054_s23 = smov [#allocation7]  }
  0x1b   : > { %s330_s26 = sshll.u32 %s2474_s4, 4  ;;  %s332_s27 = sshll.u32 %s2054_s23, 4  ;;  %s331_s26 = int_to_ptr.hbm [resolvable:$true] %s330_s26  ;;  %s333_s27 = int_to_ptr.vmem [resolvable:$true] %s332_s27 }
  0x1c   : > { %1683 = dma.hbm_to_vmem [thread:$0]  (!%p2161_p6), %s331_s26, 512, %s333_s27, [#allocation6], %s2052_s3, %s2052_s3, %s2053_s29  }
  0x1d   : > { %s2055_s15 = smov [#allocation10]   ;;  %s378_s5 = sshll.u32 %s2461_s9, 4  ;;  %s379_s5 = int_to_ptr.hbm [resolvable:$true] %s378_s5 }
  0x1e   : > { %s360_s12 = sshll.u32 %s2055_s15, 4  ;;  %s2056_s22 = smov [#allocation11]   ;;  %s361_s12 = int_to_ptr.vmem [resolvable:$true] %s360_s12 }
  0x1f   : > { %s380_s30 = sshll.u32 %s2056_s22, 4  ;;  %s1443_s26 = sadd.s32 4294967294, %s2046_s20   ;;  %s381_s30 = int_to_ptr.vmem [resolvable:$true] %s380_s30 }
  0x20   : > { %s358_s11 = sshll.u32 %s2475_s6, 4  ;;  %s2189_s23 = sadd.s32 1, %s2046_s20   ;;  %s359_s11 = int_to_ptr.hbm [resolvable:$true] %s358_s11 }
  0x21   : > { %1689 = dma.hbm_to_vmem [thread:$0]  (!%p2161_p6), %s359_s11, 32, %s361_s12, [#allocation9], %s2049_s13, %s2049_s13, %s2050_s14  }
  0x22   : > { %1692 = dma.hbm_to_vmem [thread:$0]  (!%p2161_p6), %s379_s5, 256, %s381_s30, [#allocation12], %s2052_s3, %s2052_s3, %s2053_s29  }
  0x23   : > { %s37_s27 = sadd.s32 1, %s2042_s19  ;;  %s34_s15 = ssub.s32 %s2046_s20, %s2189_s23 }
  0x24   : > { %p44_p7 = scmp.ne.s32.totalorder %s2042_s19, %s2038_s18  ;;  %p35_p8 = scmp.eq.s32.totalorder %s34_s15, 0 }
  0x25   : > { %p45_p9 = scmp.eq.s32.totalorder %s2046_s20, 0  ;;  %p50_p10 = scmp.ne.s32.totalorder %s2038_s18, %s2034_s17 }
  0x26   : > { %p289_p11 = scmp.eq.s32.totalorder %s2147_s24, 1  ;;  %p295_p0 = scmp.eq.s32.totalorder %s1443_s26, 1 }
  0x27   : > { %s2201_s11 = scalar_select %p35_p8, %s2042_s19, %s37_s27  }
  0x28   : > { %p2205_p12 = por %p51_p1, %p50_p10  ;;  %p2209_p13 = por %p289_p11, %p44_p7 }
  0x29   : > { %p46_p2 = por %p45_p9, %p44_p7  ;;  %s397_s13 = sand.u32 1, %s2042_s19  }
  0x2a   : > { %p2214_p4 = por %p295_p0, %p50_p10  ;;  %p1706_p6 = scmp.lt.s32.totalorder %s2046_s20, 2 }
  0x2b   : > { %s1451_s29 = sshll.u32 %s397_s13, 3  ;;  %s1452_s12 = sshll.u32 %s2046_s20, 3 }
  0x2c   : > { %s405_s5 = scalar_lea.hbm %s2452_s0, %s1452_s12  ;;  %s401_s30 = scalar_lea.vmem [#allocation2], %s1451_s29 }
  0x2d   : > { %s407_s22 = sshll.u32 %s405_s5, 4  ;;  %s409_s27 = sshll.u32 %s401_s30, 4  ;;  %s408_s22 = int_to_ptr.hbm [resolvable:$true] %s407_s22  ;;  %s410_s27 = int_to_ptr.vmem [resolvable:$true] %s409_s27 }
  0x2e   : > { %p2223_p8 = pnand %p1706_p6, %p46_p2  ;;  %s398_s15 = scalar_lea.sflag [#allocation3], %s397_s13 }
  0x2f   : > { %s1938_s4 = sshra.s32 %s408_s22, 4  ;;  %s1945_s29 = scalar_lea.hbm %s2452_s0, 16  ;;  %s1939_s4 = int_to_ptr.hbm [resolvable:$true] %s1938_s4 }
  0x30   : > { %s1940_s6 = scalar_lea.hbm %s1939_s4, 8  ;;  %p1942_p9 = pneg %p2223_p8 }
  0x31   : > { %p1941_p7 = scmp.ne.s32.totalorder %s1939_s4, %s1940_s6  ;;  %p1946_p0 = scmp.lt.s32.totalorder %s1939_s4, %s2452_s0 }
  0x32   : > { %p1947_p2 = scmp.lt.s32.totalorder %s1945_s29, %s1940_s6 }
  0x33   : > { %p1943_p10 = pnand %p1942_p9, %p1941_p7 }
  0x34   : > { %p1948_p6 = por %p1947_p2, %p1946_p0 }
  0x35   : > { %p1944_p11 = pneg %p1943_p10 }
  0x37   : > { %p1949_p5 = pnand %p1948_p6, %p1944_p11 }
  0x39   : > { %1952 = shalt.err (!%p1949_p5)
}
  0x3a   : > { %1696 = dma.hbm_to_vmem [thread:$0]  (!%p2223_p8), %s408_s22, 128, %s410_s27, %s398_s15  }
  0x3b   : > { %424 = sbr.rel (%p2152_p3) target bundleno = 3435 (0xd6b), region = 64  ;;  %s2240_s13 = sand.u32 (!%p2152_p3), 1, %s2038_s18  }
  0x3c   : > { %s1454_s30 = sshll.u32 (!%p2152_p3), %s2240_s13, 3  ;;  %s427_s12 = scalar_lea.sflag (!%p2152_p3), [#allocation3], %s2240_s13 }
  0x3d   : > { %s430_s16 = scalar_lea.vmem (!%p2152_p3), [#allocation2], %s1454_s30 }
  0x40   : > { %2013 = dma.done.wait (%p2205_p12), %s427_s12, 128  }
  0x41   : > { %2015 = vsyncadd (%p2205_p12), %s427_s12, 4294967168 }
  0x42   : > { %2017 = dma.done.wait (%p51_p1), [#allocation6], 608  }
  0x43   : > { %2019 = vsyncadd (%p51_p1), [#allocation6], 4294966688 }
  0x44   : > { %2021 = dma.done.wait (%p51_p1), [#allocation9], 544  }
  0x45   : > { %2023 = vsyncadd (%p51_p1), [#allocation9], 4294966752 }
  0x46   : > { %2025 = dma.done.wait (%p51_p1), [#allocation12], 256  }
  0x47   : > { %2027 = vsyncadd (%p51_p1), [#allocation12], 4294967040  ;;  %v1624_v0 = vld [vmem:[%s2454_s2 + $0x8] sm:$0xff]  ;;  %v1626_v1 = vld [vmem:[%s2454_s2 + $0x18] sm:$0xff]  ;;  %vm537_vm0 = vcmask 261120   ;;  %p498_p1 = scmp.lt.s32.totalorder %s2147_s24, 1 }
  0x48   : > { %v1623_v2 = vld [vmem:[%s2454_s2] sm:$0xff]  ;;  %v1625_v3 = vld [vmem:[%s2454_s2 + $0x10] sm:$0xff]  ;;  %547 = vmatpush.bf16.msra.mxu0 %v1624_v0  ;;  %575 = vmatpush.bf16.msra.mxu1 %v1626_v1  ;;  %v1628_v17 = vld [vmem:[%s2454_s2 + $0x28] sm:$0xff]  ;;  %vm636_vm1 = vcmask 64512   ;;  %vm653_vm2 = vcmask 1043456   ;;  %v2057_v54 = vmov 32.0  }
  0x49   : > { %v2272_v4 = vld [vmem:[%s430_s16] sm:$0xff]  ;;  %v1762_v6 = vld [vmem:[#allocation5 + $0x1] ss:$0 sm:$0xff]  ;;  %v1761_v9 = vld [vmem:[#allocation5] ss:$0 sm:$0xff]  ;;  %603 = vmatpush.bf16.msra.mxu2 %v1628_v17  ;;  %s499_s12 = scalar_select %p498_p1, %s2147_s24, 1 }
  0x4a   : > { %v521_v5 = vpack.c.bf16 %v2272_v4, %v2272_v4  ;;  %v1627_v18 = vld [vmem:[%s2454_s2 + $0x20] sm:$0xff]  ;;  %v1763_v34 = vld [vmem:[#allocation5 + $0x2] ss:$0 sm:$0xff]  ;;  %v1629_v43 = vld [vmem:[#allocation7] sm:$0xff]  ;;  %vm810_vm7 = vcmask 523264   ;;  %s2061_s29 = smov 64  }
  0x4b   : > { %s2292_s6 = scalar_lea.vmem %s2453_s1, %s499_s12  ;;  %v1630_v38 = vld [vmem:[#allocation7 + $0x8] sm:$0xff]  ;;  %s2062_s21 = smov 96  }
  0x4c   : > { %548 = vmatpush.bf16.msra.mxu0 %v1623_v2  ;;  %576 = vmatpush.bf16.msra.mxu1 %v1625_v3  ;;  %v503_v19 = vld [vmem:[%s2292_s6] sm:$0x1]  ;;  %v1631_v3 = vld [vmem:[#allocation8] sm:$0xff]  ;;  %s1460_s5 = sshll.u32 %s2240_s13, 1  ;;  %s1620_s30 = sshll.u32 %s2147_s24, 1 }
  0x4d   : > { %604 = vmatpush.bf16.msra.mxu2 %v1627_v18  ;;  %v2295_v20 = vmul.f32 -1e+09, %v503_v19  ;;  %v2308_v47 = vld [vmem:[%s2460_s8] sm:$0x3f]  ;;  %s2480_s28 = sld [smem:[#allocation23_spill]]  ;;  %s497_s27 = scalar_lea.vmem [#allocation13], %s1460_s5 }
  0x4e   : > { %v675_v48 = vperm.slane %v2308_v47, 0  ;;  %v1632_v2 = vld [vmem:[#allocation8 + $0x8] sm:$0xff]  ;;  %v736_v18 = vperm.slane %v2308_v47, 3  ;;  %s1313_s26 = sshll.u32 %s497_s27, 4  ;;  %s1301_s24 = scalar_lea.sflag [#allocation4], %s2240_s13  ;;  %s1314_s26 = int_to_ptr.vmem [resolvable:$true] %s1313_s26 }
  0x4f   : > { %1469 = vmatmul.msk.bf16.vlgmr.msra.gmra.mxu0 %vm537_vm0, %v521_v5  ;;  %1478 = vmatmul.msk.bf16.vlgmr.msra.gmra.mxu1 %vm537_vm0, %v521_v5  ;;  %v633_v21 = vperm.slane %v2295_v20, 0 }
  0x50   : > { %1487 = vmatmul.msk.bf16.vlgmr.msra.gmra.mxu2 %vm537_vm0, %v521_v5  ;;  %697 = vmatpush.bf16.msrb.mxu1 %v1630_v38 }
  0x51   : > { %768 = vmatpush.bf16.msrb.mxu2 %v1632_v2 }
  0x53   : > { %s1311_s22 = scalar_lea.hbm %s2480_s28, %s1620_s30  ;;  %s1988_s30 = scalar_lea.hbm %s2480_s28, 4 }
  0x54   : > { %698 = vmatpush.bf16.msrb.mxu1 %v1629_v43  ;;  %v1638_v43 = vld [vmem:[%s2454_s2 + $0x38] sm:$0xff]  ;;  %s1315_s15 = sshll.u32 %s1311_s22, 4  ;;  %s1316_s15 = int_to_ptr.hbm [resolvable:$true] %s1315_s15 }
  0x55   : > { %769 = vmatpush.bf16.msrb.mxu2 %v1631_v3  ;;  %v1766_v3 = vld [vmem:[#allocation5 + $0x4] ss:$0 sm:$0xff] }
  0xcc   : > { %v550_v7 = vpop.f32.mrf.mxu0  ;;  %v578_v8 = vpop.f32.mrf.mxu1 }
  0xcd   : > { %v579_v10 = vadd.f32 %v1762_v6, %v578_v8  ;;  %v551_v12 = vadd.f32 %v1761_v9, %v550_v7  ;;  %v1635_v7 = vld [vmem:[%s2459_s7 + $0x10] sm:$0xff] }
  0xcf   : > { %v611_v11 = vpack.c.bf16 %v579_v10, %v579_v10  ;;  %v610_v16 = vpack.c.bf16 %v551_v12, %v551_v12 }
  0xd1   : > { %v616_v13 = vsel %vm537_vm0, %v611_v11, 0 }
  0xd2   : > { %625 = vmatpush.bf16.xpose.msra.mxu3 %v616_v13 }
  0xd3   : > { %v606_v27 = vpop.f32.mrf.mxu2 }
  0xd4   : > { %v552_v14 = vpop.f32.mrf.mxu0  ;;  %v580_v15 = vpop.f32.mrf.mxu1  ;;  %v607_v35 = vadd.f32 %v1763_v34, %v606_v27 }
  0xd5   : > { %v734_v15 = vperm.slane %v2308_v47, 2 }
  0xd6   : > { %v649_v36 = vpack.c.bf16 %v607_v35, %v607_v35 }
  0xd8   : > { %v655_v37 = vsel %vm653_vm2, %v649_v36, 0 }
  0xd9   : > { %1488 = vmatmul.msk.bf16.vlgmr.msra.gmra.mxu3 %vm537_vm0, %v610_v16  ;;  %664 = vmatpush.bf16.msrb.mxu0 %v655_v37 }
  0xdb   : > { %v608_v31 = vpop.f32.mrf.mxu2 }
  0xdd   : > { %898 = vmatpush.bf16.msra.mxu0 %v1638_v43 }
 0x15c   : > { %v627_v22 = vpop.f32.mrf.mxu3 }
 0x15d   : > { %v631_v23 = vmul.f32 0.17677669, %v627_v22 }
 0x15f   : > { %v635_v24 = vadd.f32 %v633_v21, %v631_v23 }
 0x161   : > { %v637_v25 = vsel %vm636_vm1, %v635_v24, -inf }
 0x162   : > { %638 = vmax.xlane.f32.xlu0 %v637_v25  ;;  %v1633_v25 = vld [vmem:[%s2459_s7] sm:$0xff] }
 0x164   : > { %v629_v26 = vpop.f32.mrf.mxu3 }
 0x165   : > { %v1764_v26 = vld [vmem:[#allocation10] ss:$0 sm:$0xff] }
 0x1d5   : > { %v639_v28 = vpop.xlane.xlu0 %638 }
 0x1d6   : > { %v640_v29 = vsub.f32 %v635_v24, %v639_v28  ;;  %v1634_v24 = vld [vmem:[%s2459_s7 + $0x8] sm:$0xff] }
 0x1d8   : > { %v641_v30 = vmul.f32 1.442695, %v640_v29 }
 0x1da   : > { %1770 = vpow2.f32 %v641_v30 }
 0x1e0   : > { %v1771_v32 = vpop.eup %1770 }
 0x1e1   : > { %v643_v33 = vsel %vm636_vm1, %v1771_v32, 0.0 }
 0x1e2   : > { %644 = vadd.xlane.f32.xlu0 %v643_v33 }
 0x255   : > { %v645_v39 = vpop.xlane.xlu0 %644 }
 0x256   : > { %1772 = vrcp.f32 %v645_v39 }
 0x257   : > { %1774 = vrcp.f32 %v2057_v54 }
 0x25c   : > { %v1773_v40 = vpop.eup %1772 }
 0x25d   : > { %v647_v41 = vmul.f32 %v1773_v40, %v1771_v32  ;;  %v1775_v55 = vpop.eup %1774  ;;  %v785_v32 = vperm.slane %v2308_v47, 1 }
 0x25e   : > { %v709_v56 = vmul.f32 32.0, %v1775_v55  ;;  %vm713_vm3 = vweird.f32 %v1775_v55 }
 0x25f   : > { %v648_v42 = vpack.c.bf16 %v647_v41, %v647_v41 }
 0x260   : > { %v710_v57 = vsub.f32 1.0, %v709_v56 }
 0x261   : > { %1489 = vmatmul.msk.bf16.vlgmr.msrb.gmra.mxu0 %vm636_vm1, %v648_v42 }
 0x262   : > { %v711_v58 = vmul.f32 %v1775_v55, %v710_v57 }
 0x264   : > { %v712_v59 = vadd.f32 %v1775_v55, %v711_v58 }
 0x266   : > { %v2313_v60 = vsel %vm713_vm3, %v1775_v55, %v712_v59  ;;  %v850_v59 = vperm.slane %v2308_v47, 4  ;;  %vm1213_vm3 = vcmask 1047556  }
 0x2de   : > { %v666_v44 = vpop.f32.mrf.mxu0 }
 0x2df   : > { %v670_v45 = vpack.c.bf16 %v666_v44, %v666_v44  ;;  %v1640_v44 = vld [vmem:[%s2454_s2 + $0x48] sm:$0xff] }
 0x2e0   : > { %926 = vmatpush.bf16.msra.mxu1 %v1640_v44 }
 0x2e1   : > { %1498 = vmatmul.msk.bf16.vlgmr.msrb.gmra.mxu1 %vm537_vm0, %v670_v45  ;;  %v1642_v45 = vld [vmem:[%s2454_s2 + $0x58] sm:$0xff] }
 0x2e2   : > { %954 = vmatpush.bf16.msra.mxu2 %v1642_v45 }
 0x2e6   : > { %v668_v46 = vpop.f32.mrf.mxu0 }
 0x2e7   : > { %v1637_v46 = vld [vmem:[%s2454_s2 + $0x30] sm:$0xff] }
 0x2e8   : > { %899 = vmatpush.bf16.msra.mxu0 %v1637_v46 }
 0x35e   : > { %v700_v49 = vpop.f32.mrf.mxu1 }
 0x35f   : > { %v701_v50 = vadd.f32 %v700_v49, %v675_v48  ;;  %v1639_v48 = vld [vmem:[%s2454_s2 + $0x40] sm:$0xff]  ;;  %v1641_v49 = vld [vmem:[%s2454_s2 + $0x50] sm:$0xff] }
 0x360   : > { %927 = vmatpush.bf16.msra.mxu1 %v1639_v48  ;;  %955 = vmatpush.bf16.msra.mxu2 %v1641_v49 }
 0x361   : > { %v704_v51 = vadd.f32 %v701_v50, %v2272_v4  ;;  %v1636_v4 = vld [vmem:[%s2459_s7 + $0x18] sm:$0xff] }
 0x362   : > { %818 = vmatpush.bf16.msrb.mxu3 %v1636_v4 }
 0x363   : > { %v705_v52 = vsel %vm537_vm0, %v704_v51, 0.0 }
 0x364   : > { %706 = vadd.xlane.f32.xlu1 %v705_v52 }
 0x366   : > { %v702_v53 = vpop.f32.mrf.mxu1  ;;  %819 = vmatpush.bf16.msrb.mxu3 %v1635_v7  ;;  %v1765_v7 = vld [vmem:[#allocation5 + $0x3] ss:$0 sm:$0xff] }
 0x36a   : > { %820 = vmatpush.bf16.msrb.mxu3 %v1634_v24 }
 0x36e   : > { %821 = vmatpush.bf16.msrb.mxu3 %v1633_v25 }
 0x3d7   : > { %v707_v61 = vpop.xlane.xlu1 %706 }
 0x3d8   : > { %v715_v62 = vmul.f32 %v2313_v60, %v707_v61 }
 0x3da   : > { %v716_v63 = vsub.f32 %v704_v51, %v715_v62  ;;  %v852_v62 = vperm.slane %v2308_v47, 5 }
 0x3dc   : > { %v717_v0 = vmul.f32 %v716_v63, %v716_v63 }
 0x3de   : > { %v718_v1 = vsel %vm537_vm0, %v717_v0, 0.0 }
 0x3df   : > { %719 = vadd.xlane.f32.xlu1 %v718_v1 }
 0x452   : > { %v720_v5 = vpop.xlane.xlu1 %719 }
 0x453   : > { %v721_v6 = vmul.f32 %v720_v5, %v2313_v60 }
 0x455   : > { %v722_v8 = vadd.f32 1e-05, %v721_v6 }
 0x457   : > { %1776 = vrsqrt.f32 %v722_v8  ;;  %vm729_vm5 = vweird.f32 %v722_v8 }
 0x45d   : > { %v1777_v9 = vpop.eup %1776 }
 0x45e   : > { %v724_v10 = vmul.f32 %v1777_v9, %v722_v8  ;;  %vm730_vm4 = vweird.f32 %v1777_v9 }
 0x45f   : > { %vm731_vm6 = vmor %vm729_vm5, %vm730_vm4  ;;  %vm1241_vm4 = vcmask 785408   ;;  %vm1292_vm5 = vcmask 1040384  }
 0x460   : > { %v725_v11 = vmul.f32 %v1777_v9, %v724_v10 }
 0x462   : > { %v726_v12 = vmul.f32 0.5, %v725_v11 }
 0x464   : > { %v727_v13 = vsub.f32 1.5, %v726_v12 }
 0x466   : > { %v728_v14 = vmul.f32 %v1777_v9, %v727_v13 }
 0x468   : > { %v732_v16 = vsel %vm731_vm6, %v1777_v9, %v728_v14  ;;  %v1767_v9 = vld [vmem:[#allocation5 + $0x5] ss:$0 sm:$0xff] }
 0x469   : > { %v733_v17 = vmul.f32 %v732_v16, %v716_v63 }
 0x46b   : > { %v735_v19 = vmul.f32 %v734_v15, %v733_v17 }
 0x46d   : > { %v737_v22 = vadd.f32 %v736_v18, %v735_v19 }
 0x46f   : > { %v738_v23 = vpack.c.bf16 %v737_v22, %v737_v22 }
 0x471   : > { %1507 = vmatmul.msk.bf16.vlgmr.msrb.gmra.mxu2 %vm537_vm0, %v738_v23 }
 0x4f4   : > { %v771_v27 = vpop.f32.mrf.mxu2 }
 0x4f5   : > { %v772_v28 = vadd.f32 %v1764_v26, %v771_v27 }
 0x4f7   : > { %v775_v29 = vmax.f32 %v772_v28, 0.0 }
 0x4f9   : > { %v776_v30 = vpack.c.bf16 %v775_v29, %v775_v29 }
 0x4fb   : > { %1524 = vmatmul.msk.bf16.vlgmr.msrb.gmra.mxu3 %vm810_vm7, %v776_v30 }
 0x4fc   : > { %v773_v31 = vpop.f32.mrf.mxu2 }
 0x4fd   : > { %v1644_v31 = vld [vmem:[#allocation7 + $0x18] sm:$0xff] }
 0x4fe   : > { %1044 = vmatpush.bf16.msrb.mxu1 %v1644_v31 }
 0x57e   : > { %v823_v33 = vpop.f32.mrf.mxu3 }
 0x57f   : > { %v824_v34 = vadd.f32 %v823_v33, %v785_v32 }
 0x581   : > { %v827_v35 = vadd.f32 %v824_v34, %v737_v22 }
 0x583   : > { %v828_v36 = vsel %vm537_vm0, %v827_v35, 0.0 }
 0x584   : > { %829 = vadd.xlane.f32.xlu2 %v828_v36 }
 0x586   : > { %v825_v37 = vpop.f32.mrf.mxu3 }
 0x5f7   : > { %v830_v38 = vpop.xlane.xlu2 %829 }
 0x5f8   : > { %v831_v39 = vmul.f32 %v830_v38, %v2313_v60  ;;  %v2374_v38 = vld [vmem:[%s2460_s8 + $0x8] sm:$0x3f] }
 0x5fa   : > { %v832_v40 = vsub.f32 %v827_v35, %v831_v39  ;;  %v1022_v39 = vperm.slane %v2374_v38, 0 }
 0x5fc   : > { %v833_v41 = vmul.f32 %v832_v40, %v832_v40 }
 0x5fe   : > { %v834_v42 = vsel %vm537_vm0, %v833_v41, 0.0 }
 0x5ff   : > { %835 = vadd.xlane.f32.xlu2 %v834_v42 }
 0x672   : > { %v836_v50 = vpop.xlane.xlu2 %835 }
 0x673   : > { %v837_v51 = vmul.f32 %v836_v50, %v2313_v60 }
 0x675   : > { %v838_v52 = vadd.f32 1e-05, %v837_v51  ;;  %v1646_v51 = vld [vmem:[#allocation8 + $0x18] sm:$0xff] }
 0x676   : > { %1110 = vmatpush.bf16.msrb.mxu2 %v1646_v51  ;;  %v2059_v51 = vmov 1934713408  }
 0x677   : > { %1778 = vrsqrt.f32 %v838_v52  ;;  %vm845_vm9 = vweird.f32 %v838_v52 }
 0x67d   : > { %v1779_v53 = vpop.eup %1778 }
 0x67e   : > { %v840_v54 = vmul.f32 %v1779_v53, %v838_v52  ;;  %vm846_vm8 = vweird.f32 %v1779_v53  ;;  %v1645_v52 = vld [vmem:[#allocation8 + $0x10] sm:$0xff] }
 0x67f   : > { %vm847_vm10 = vmor %vm845_vm9, %vm846_vm8  ;;  %1111 = vmatpush.bf16.msrb.mxu2 %v1645_v52  ;;  %v1216_v52 = vunpack.c.l.s4 %v2059_v51 }
 0x680   : > { %v841_v55 = vmul.f32 %v1779_v53, %v840_v54 }
 0x682   : > { %v842_v56 = vmul.f32 0.5, %v841_v55 }
 0x684   : > { %v843_v57 = vsub.f32 1.5, %v842_v56  ;;  %v1649_v56 = vld [vmem:[%s2459_s7 + $0x30] sm:$0xff] }
 0x686   : > { %v844_v58 = vmul.f32 %v1779_v53, %v843_v57 }
 0x688   : > { %v848_v61 = vsel %vm847_vm10, %v1779_v53, %v844_v58  ;;  %v1650_v53 = vld [vmem:[%s2459_s7 + $0x38] sm:$0xff] }
 0x689   : > { %v849_v63 = vmul.f32 %v848_v61, %v832_v40 }
 0x68b   : > { %v851_v0 = vmul.f32 %v850_v59, %v849_v63 }
 0x68d   : > { %v853_v1 = vadd.f32 %v852_v62, %v851_v0 }
 0x68f   : > { %v873_v2 = vpack.c.bf16 %v853_v1, %v853_v1 }
 0x691   : > { %1546 = vmatmul.msk.bf16.vlgmr.msra.gmra.mxu0 %vm537_vm0, %v873_v2  ;;  %1555 = vmatmul.msk.bf16.vlgmr.msra.gmra.mxu1 %vm537_vm0, %v873_v2 }
 0x692   : > { %1564 = vmatmul.msk.bf16.vlgmr.msra.gmra.mxu2 %vm537_vm0, %v873_v2 }
 0x70e   : > { %v901_v4 = vpop.f32.mrf.mxu0  ;;  %v929_v5 = vpop.f32.mrf.mxu1 }
 0x70f   : > { %v930_v6 = vadd.f32 %v1766_v3, %v929_v5  ;;  %v902_v47 = vadd.f32 %v1765_v7, %v901_v4  ;;  %v1076_v3 = vperm.slane %v2374_v38, 3 }
 0x711   : > { %v962_v8 = vpack.c.bf16 %v930_v6, %v930_v6  ;;  %v961_v16 = vpack.c.bf16 %v902_v47, %v902_v47 }
 0x713   : > { %v967_v10 = vsel %vm537_vm0, %v962_v8, 0  ;;  %v1648_v8 = vld [vmem:[%s2459_s7 + $0x28] sm:$0xff] }
 0x714   : > { %976 = vmatpush.bf16.xpose.msra.mxu3 %v967_v10  ;;  %v1768_v10 = vld [vmem:[#allocation10 + $0x1] ss:$0 sm:$0xff] }
 0x715   : > { %v957_v11 = vpop.f32.mrf.mxu2 }
 0x716   : > { %v958_v12 = vadd.f32 %v1767_v9, %v957_v11  ;;  %v903_v13 = vpop.f32.mrf.mxu0  ;;  %v931_v14 = vpop.f32.mrf.mxu1  ;;  %v1647_v9 = vld [vmem:[%s2459_s7 + $0x20] sm:$0xff] }
 0x718   : > { %v996_v15 = vpack.c.bf16 %v958_v12, %v958_v12 }
 0x71a   : > { %v1001_v17 = vsel %vm653_vm2, %v996_v15, 0  ;;  %v1128_v15 = vperm.slane %v2374_v38, 1 }
 0x71b   : > { %1010 = vmatpush.bf16.msrb.mxu0 %v1001_v17  ;;  %1565 = vmatmul.msk.bf16.vlgmr.msra.gmra.mxu3 %vm537_vm0, %v961_v16 }
 0x71c   : > { %1160 = vmatpush.bf16.msrb.mxu3 %v1650_v53 }
 0x71d   : > { %v959_v18 = vpop.f32.mrf.mxu2 }
 0x720   : > { %1161 = vmatpush.bf16.msrb.mxu3 %v1649_v56 }
 0x724   : > { %1162 = vmatpush.bf16.msrb.mxu3 %v1648_v8 }
 0x728   : > { %1163 = vmatpush.bf16.msrb.mxu3 %v1647_v9 }
 0x79e   : > { %v978_v19 = vpop.f32.mrf.mxu3 }
 0x79f   : > { %v982_v22 = vmul.f32 0.17677669, %v978_v19 }
 0x7a1   : > { %v983_v23 = vadd.f32 %v982_v22, %v633_v21  ;;  %v1643_v21 = vld [vmem:[#allocation7 + $0x10] sm:$0xff] }
 0x7a2   : > { %1045 = vmatpush.bf16.msrb.mxu1 %v1643_v21  ;;  %v1651_v21 = vld [vmem:[#allocation11] sm:$0xff] }
 0x7a3   : > { %v984_v24 = vsel %vm636_vm1, %v983_v23, -inf }
 0x7a4   : > { %985 = vmax.xlane.f32.xlu0 %v984_v24 }
 0x7a6   : > { %v980_v25 = vpop.f32.mrf.mxu3 }
 0x7a7   : > { %v1769_v25 = vld [vmem:[%s2292_s6] ss:$0 sm:$0xff]  ;;  %s2060_s6 = smov 32  }
 0x817   : > { %v986_v26 = vpop.xlane.xlu0 %985 }
 0x818   : > { %v987_v27 = vsub.f32 %v983_v23, %v986_v26  ;;  %v1197_v23 = vlaneseq }
 0x81a   : > { %v988_v28 = vmul.f32 1.442695, %v987_v27  ;;  %v1198_v24 = vshrl.u32 %v1197_v23, 7  ;;  %vm1297_vm6 = vcmp.lt.s32.totalorder %v1197_v23, 256 }
 0x81c   : > { %1780 = vpow2.f32 %v988_v28  ;;  %1760 = vset.pattern.permute.xlu0 %v1198_v24 }
 0x822   : > { %v1781_v29 = vpop.eup %1780 }
 0x823   : > { %v990_v30 = vsel %vm636_vm1, %v1781_v29, 0.0 }
 0x824   : > { %991 = vadd.xlane.f32.xlu1 %v990_v30 }
 0x897   : > { %v992_v32 = vpop.xlane.xlu1 %991 }
 0x898   : > { %1782 = vrcp.f32 %v992_v32 }
 0x89e   : > { %v1783_v33 = vpop.eup %1782 }
 0x89f   : > { %v994_v34 = vmul.f32 %v1783_v33, %v1781_v29 }
 0x8a1   : > { %v995_v20 = vpack.c.bf16 %v994_v34, %v994_v34  ;;  %v1652_v34 = vld [vmem:[#allocation11 + $0x8] sm:$0xff] }
 0x8a2   : > { %1281 = vmatpush.bf16.msra.mxu0 %v1652_v34 }
 0x8a3   : > { %1566 = vmatmul.msk.bf16.vlgmr.msrb.gmra.mxu0 %vm636_vm1, %v995_v20 }
 0x8a6   : > { %1282 = vmatpush.bf16.msra.mxu0 %v1651_v21 }
 0x920   : > { %v1012_v35 = vpop.f32.mrf.mxu0 }
 0x921   : > { %v1016_v36 = vpack.c.bf16 %v1012_v35, %v1012_v35 }
 0x923   : > { %1575 = vmatmul.msk.bf16.vlgmr.msrb.gmra.mxu1 %vm537_vm0, %v1016_v36 }
 0x928   : > { %v1014_v37 = vpop.f32.mrf.mxu0 }
 0x9a0   : > { %v1047_v40 = vpop.f32.mrf.mxu1 }
 0x9a1   : > { %v1048_v41 = vadd.f32 %v1047_v40, %v1022_v39 }
 0x9a3   : > { %v1051_v42 = vadd.f32 %v1048_v41, %v853_v1  ;;  %v1074_v1 = vperm.slane %v2374_v38, 2  ;;  %v1192_v41 = vperm.slane %v2374_v38, 4 }
 0x9a5   : > { %v1052_v43 = vsel %vm537_vm0, %v1051_v42, 0.0 }
 0x9a6   : > { %1053 = vadd.xlane.f32.xlu2 %v1052_v43 }
 0x9a8   : > { %v1049_v44 = vpop.f32.mrf.mxu1 }
 0xa19   : > { %v1054_v45 = vpop.xlane.xlu2 %1053 }
 0xa1a   : > { %v1055_v46 = vmul.f32 %v1054_v45, %v2313_v60  ;;  %v2058_v45 = vmov 1983009808  }
 0xa1c   : > { %v1056_v48 = vsub.f32 %v1051_v42, %v1055_v46  ;;  %v1209_v46 = vunpack.c.l.s4 %v2058_v45 }
 0xa1e   : > { %v1057_v49 = vmul.f32 %v1056_v48, %v1056_v48  ;;  %v1210_v53 = vunpack.c.0.s8 %v1209_v46 }
 0xa20   : > { %v1058_v50 = vsel %vm537_vm0, %v1057_v49, 0.0 }
 0xa21   : > { %1059 = vadd.xlane.f32.xlu0 %v1058_v50 }
 0xa35   : > { %1201 = vperm.xlu0 %1760, %v1769_v25  }
 0xa94   : > { %v1060_v54 = vpop.xlane.xlu0 %1059 }
 0xa95   : > { %v1061_v55 = vmul.f32 %v1060_v54, %v2313_v60 }
 0xa97   : > { %v1062_v57 = vadd.f32 1e-05, %v1061_v55 }
 0xa99   : > { %1784 = vrsqrt.f32 %v1062_v57  ;;  %vm1069_vm12 = vweird.f32 %v1062_v57 }
 0xa9f   : > { %v1785_v58 = vpop.eup %1784 }
 0xaa0   : > { %v1064_v59 = vmul.f32 %v1785_v58, %v1062_v57  ;;  %vm1070_vm11 = vweird.f32 %v1785_v58  ;;  %v1217_v57 = vunpack.c.0.s8 %v1216_v52 }
 0xaa1   : > { %vm1071_vm13 = vmor %vm1069_vm12, %vm1070_vm11 }
 0xaa2   : > { %v1065_v61 = vmul.f32 %v1785_v58, %v1064_v59 }
 0xaa4   : > { %v1066_v62 = vmul.f32 0.5, %v1065_v61 }
 0xaa6   : > { %v1067_v63 = vsub.f32 1.5, %v1066_v62 }
 0xaa7   : > { %v1202_v43 = vpop.permute.xlu0 %1201 }
 0xaa8   : > { %v1068_v0 = vmul.f32 %v1785_v58, %v1067_v63  ;;  %v1203_v49 = vsub.f32 1.0, %v1202_v43  ;;  %vm1243_vm2 = vcmp.gt.f32.partialorder %v1202_v43, 0.0 }
 0xaaa   : > { %v1072_v2 = vsel %vm1071_vm13, %v1785_v58, %v1068_v0 }
 0xaab   : > { %v1073_v4 = vmul.f32 %v1072_v2, %v1056_v48 }
 0xaad   : > { %v1075_v5 = vmul.f32 %v1074_v1, %v1073_v4 }
 0xaaf   : > { %v1077_v6 = vadd.f32 %v1076_v3, %v1075_v5 }
 0xab1   : > { %v1078_v7 = vpack.c.bf16 %v1077_v6, %v1077_v6 }
 0xab3   : > { %1584 = vmatmul.msk.bf16.vlgmr.msrb.gmra.mxu2 %vm537_vm0, %v1078_v7 }
 0xb36   : > { %v1113_v47 = vpop.f32.mrf.mxu2 }
 0xb37   : > { %v1114_v11 = vadd.f32 %v1768_v10, %v1113_v47 }
 0xb39   : > { %v1117_v12 = vmax.f32 %v1114_v11, 0.0 }
 0xb3b   : > { %v1118_v13 = vpack.c.bf16 %v1117_v12, %v1117_v12  ;;  %v1259_v12 = vld [vmem:[%s2462_s10] sm:$0x1] }
 0xb3d   : > { %1609 = vmatmul.msk.bf16.vlgmr.msrb.gmra.mxu3 %vm810_vm7, %v1118_v13 }
 0xb3e   : > { %v1115_v14 = vpop.f32.mrf.mxu2 }
 0xbc0   : > { %v1165_v16 = vpop.f32.mrf.mxu3 }
 0xbc1   : > { %v1166_v17 = vadd.f32 %v1165_v16, %v1128_v15 }
 0xbc3   : > { %v1169_v18 = vadd.f32 %v1166_v17, %v1077_v6 }
 0xbc5   : > { %v1170_v19 = vsel %vm537_vm0, %v1169_v18, 0.0 }
 0xbc6   : > { %1171 = vadd.xlane.f32.xlu1 %v1170_v19 }
 0xbc8   : > { %v1167_v22 = vpop.f32.mrf.mxu3 }
 0xc39   : > { %v1172_v26 = vpop.xlane.xlu1 %1171 }
 0xc3a   : > { %v1173_v27 = vmul.f32 %v1172_v26, %v2313_v60 }
 0xc3c   : > { %v1174_v28 = vsub.f32 %v1169_v18, %v1173_v27 }
 0xc3e   : > { %v1175_v29 = vmul.f32 %v1174_v28, %v1174_v28 }
 0xc40   : > { %v1176_v30 = vsel %vm537_vm0, %v1175_v29, 0.0 }
 0xc41   : > { %1177 = vadd.xlane.f32.xlu2 %v1176_v30 }
 0xcb4   : > { %v1178_v31 = vpop.xlane.xlu2 %1177 }
 0xcb5   : > { %v1179_v32 = vmul.f32 %v1178_v31, %v2313_v60  ;;  %v1194_v60 = vperm.slane %v2374_v38, 5 }
 0xcb7   : > { %v1180_v33 = vadd.f32 1e-05, %v1179_v32 }
 0xcb9   : > { %1786 = vrsqrt.f32 %v1180_v33  ;;  %vm1187_vm15 = vweird.f32 %v1180_v33 }
 0xcbf   : > { %v1787_v20 = vpop.eup %1786 }
 0xcc0   : > { %v1182_v35 = vmul.f32 %v1787_v20, %v1180_v33  ;;  %vm1188_vm14 = vweird.f32 %v1787_v20 }
 0xcc1   : > { %vm1189_vm1 = vmor %vm1187_vm15, %vm1188_vm14 }
 0xcc2   : > { %v1183_v36 = vmul.f32 %v1787_v20, %v1182_v35 }
 0xcc4   : > { %v1184_v37 = vmul.f32 0.5, %v1183_v36 }
 0xcc6   : > { %v1185_v39 = vsub.f32 1.5, %v1184_v37 }
 0xcc8   : > { %v1186_v40 = vmul.f32 %v1787_v20, %v1185_v39 }
 0xcca   : > { %v1190_v42 = vsel %vm1189_vm1, %v1787_v20, %v1186_v40 }
 0xccb   : > { %v1191_v44 = vmul.f32 %v1190_v42, %v1174_v28 }
 0xccd   : > { %v1193_v48 = vmul.f32 %v1192_v41, %v1191_v44 }
 0xccf   : > { %v1195_v50 = vadd.f32 %v1194_v60, %v1193_v48 }
 0xcd1   : > { %v1204_v54 = vmul.f32 %v1203_v49, %v1195_v50 }
 0xcd3   : > { %v1206_v55 = vrot.slane %v1204_v54, 4  ;;  %v1246_v56 = vsel %vm1243_vm2, -1e+09, %v1204_v54 }
 0xcd4   : > { %v1247_v58 = vsel %vm537_vm0, %v1246_v56, -inf }
 0xcd5   : > { %v1211_v59 = vperm.slane %v1206_v55, %v1210_v53  ;;  %v1248_v61 = vrot.slane %v1247_v58, 4 }
 0xcd7   : > { %v1249_v38 = vmax.f32 %v1247_v58, %v1248_v61  ;;  %v1218_v62 = vperm.slane %v1211_v59, %v1217_v57  ;;  %v1212_v63 = vrot.slane %v1211_v59, 4 }
 0xcd9   : > { %v1250_v0 = vrot.slane %v1249_v38, 2  ;;  %v1223_v1 = vrot.slane %v1218_v62, 4  ;;  %v1214_v2 = vsel %vm1213_vm3, 0.0, %v1212_v63 }
 0xcda   : > { %v1222_v3 = vperm.slane %v1214_v2, %v1217_v57 }
 0xcdb   : > { %v1251_v4 = vmax.f32 %v1249_v38, %v1250_v0  ;;  %v1224_v5 = vsel %vm1213_vm3, 0.0, %v1223_v1 }
 0xcdc   : > { %1228 = vrot.lane.b32.xlu1 %v1224_v5, %s2060_s6  ;;  %1232 = vrot.lane.b32.xlu2 %v1222_v3, %s2061_s29  ;;  %v1225_v8 = vrot.slane %v1222_v3, 4  ;;  %s1982_s6 = sshra.s32 %s1316_s15, 4  ;;  %s1983_s6 = int_to_ptr.hbm [resolvable:$true] %s1982_s6 }
 0xcdd   : > { %v1252_v6 = vrot.slane %v1251_v4, 1  ;;  %s1984_s29 = scalar_lea.hbm %s1983_s6, 2  ;;  %p1989_p8 = scmp.lt.s32.totalorder %s1983_s6, %s2480_s28 }
 0xcde   : > { %v1226_v10 = vsel %vm1213_vm3, 0.0, %v1225_v8  ;;  %p1985_p3 = scmp.ne.s32.totalorder %s1983_s6, %s1984_s29  ;;  %p1990_p7 = scmp.lt.s32.totalorder %s1988_s30, %s1984_s29 }
 0xcdf   : > { %v1253_v7 = vmax.f32 %v1251_v4, %v1252_v6 }
 0xce0   : > { %p1986_p5 = pnand %p1985_p3, %p2209_p13  ;;  %p1991_p9 = por %p1990_p7, %p1989_p8 }
 0xce1   : > { %v1254_v9 = vpack.c.bf16 %v1253_v7, %v1253_v7 }
 0xce2   : > { %p1987_p12 = pneg %p1986_p5 }
 0xce3   : > { %1618 = vmatmul.msk.bf16.vlgmr.msra.gmra.mxu0 %vm537_vm0, %v1254_v9 }
 0xce4   : > { %1236 = vrot.lane.b32.xlu2 %v1226_v10, %s2062_s21  ;;  %p1992_p10 = pnand %p1991_p9, %p1987_p12 }
 0xd36   : > { %v1233_v47 = vpop.permute.xlu2 %1232 }
 0xd3e   : > { %v1237_v18 = vpop.permute.xlu2 %1236 }
 0xd4e   : > { %v1229_v11 = vpop.permute.xlu1 %1228 }
 0xd4f   : > { %v1239_v13 = vsel %vm537_vm0, %v1218_v62, %v1229_v11 }
 0xd50   : > { %v1240_v16 = vsel %vm810_vm7, %v1239_v13, %v1233_v47 }
 0xd51   : > { %v1242_v22 = vsel %vm1241_vm4, %v1240_v16, %v1237_v18 }
 0xd60   : > { %v1284_v14 = vpop.f32.mrf.mxu0 }
 0xd61   : > { %v1285_v15 = vadd.f32 %v1284_v14, %v1259_v12 }
 0xd63   : > { %v1288_v17 = vsel %vm537_vm0, %v1285_v15, 0.0 }
 0xd64   : > { %v1291_v19 = vrot.slane %v1288_v17, 7 }
 0xd66   : > { %v1293_v24 = vsel %vm1292_vm5, %v1242_v22, %v1291_v19 }
 0xd67   : > { %1299 = vst.msk [vmem:[%s497_s27] sm:$0x3] %vm1297_vm6, %v1293_v24 }
 0xd68   : > { %v1286_v25 = vpop.f32.mrf.mxu0 }
 0xd69   : > { %1995 = shalt.err (!%p1992_p10)
}
 0xd6a   : > { %1675 = dma.vmem_to_hbm [thread:$0]  (%p2209_p13), %s1314_s26, 32, %s1316_s15, %s1301_s24  }
 0xd6b PF: > { %s1327_s13 = sand.u32 1, %s2034_s17   ;;  %p2481_p11 = scmp.ge.s32.totalorder %s2046_s20, 2 }
 0xd6c   : > { %s1328_s4 = scalar_lea.sflag [#allocation4], %s1327_s13 }
 0xd6d   : > { %p1698_p0 = pnand %p2481_p11, %p2214_p4 }
 0xd6f   : > { %p1699_p2 = pneg %p1698_p0 }
 0xd71   : > { %2029 = dma.done.wait (%p1699_p2), %s1328_s4, 32  }
 0xd72   : > { %2031 = vsyncadd (%p1699_p2), %s1328_s4, 4294967264  ;;  %p27_p6 = scmp.ge.s32.totalorder %s2189_s23, 4   ;;  %s2482_s17 = smov %s2038_s18 }
 0xd73   : > { %s2483_s18 = smov %s2042_s19  ;;  %s2484_s19 = smov %s2201_s11 }
 0xd74   : > { %s2485_s20 = smov %s2189_s23  ;;  %29 = sbr.rel (!%p27_p6) target bundleno = 14 (0xe), region = 139 }
 0xd79   :  { %1334 = vsyncpa [#allocation3], 1 }
 0xd7a   :  { %1336 = vsyncpa [#allocation3 + $0x1], 1 }
 0xd7b   :  { %1337 = vsyncpa [#allocation6], 1 }
 0xd7c   :  { %1338 = vsyncpa [#allocation9], 1 }
 0xd7d   :  { %1339 = vsyncpa [#allocation12], 1 }
 0xd7e   :  { %1340 = vsyncpa [#allocation4], 1 }
 0xd7f   :  { %1342 = vsyncpa [#allocation4 + $0x1], 1 }

</bundles_post_ra>
